<compile_context>
chip_gen: v7x
topology: tpu7x:2x2x1
jax: 0.10.0
libtpu: 0.0.40
codegen_flags: <defaults>
</compile_context>

<pallas_src>
import math
from functools import partial

import jax
import jax.numpy as jnp
from jax.experimental import pallas as pl

# ---- hyperparameters (the "opt" of the PyTorch module) ----
BATCH = 2
SEQ_LEN = 8
DIM = 32
NUM_NODE = 50
SAMPLE_NUM = 4      # opt.n_sample
HOP = 2             # opt.n_iter
STEP = 1            # opt.step
ALPHA = 0.2         # opt.alpha (LeakyReLU slope)
BETA = 0.01         # opt.beta
ACTIVATE = "relu"   # opt.activate
NEG_INF = -9e15


def _leaky(x, slope):
    return jnp.where(x > 0, x, slope * x)


# ----------------------------------------------------------------------------
# Fused forward kernel: local attention + target attention + 2-hop global
# aggregation pipeline + combine, one invocation, everything resident in VMEM.
# ----------------------------------------------------------------------------
def _combine_kernel(h_ref, adj_ref, mask_ref, tgt_ref, ev1_ref, ev2_ref,
                    w0_ref, w1_ref, sbl_ref, ssbl_ref, a_ref, wt_ref,
                    gsq_ref, gvec_ref, out_ref, *, slope, step, n_sample,
                    act_name):
    h = h_ref[...]          # (B, L, D)
    adj = adj_ref[...]      # (B, L, L) int32
    mask3 = mask_ref[...]   # (B, L, 1) float
    tgt = tgt_ref[...]      # (B, D)
    a = a_ref[...]          # (4, D)   a_0..a_3 stacked
    wt = wt_ref[...]        # (D, D)
    gsq = gsq_ref[...]      # (HOP, 3, D, D)  [w1a, w3a, w3b] per hop
    gvec = gvec_ref[...]    # (HOP, 2, D)     [w1b, w2^T] per hop

    B, L, D = h.shape
    S = n_sample
    act = jnp.tanh if act_name == "tanh" else (lambda x: jnp.maximum(x, 0.0))

    # ---------------- LocalAggregator ----------------
    def local_step(hh):
        # stack the 4 relation-scaled copies of h on the row axis -> 1 matmul
        hk = jnp.concatenate(
            [hh * a[k:k + 1, :][None, :, :] for k in range(4)], axis=1)  # (B,4L,D)
        e = jnp.einsum('bid,bjd->bij', hk, hh,
                       preferred_element_type=jnp.float32)               # (B,4L,L)
        e = _leaky(e, slope)
        att = jnp.full((B, L, L), NEG_INF, dtype=jnp.float32)
        for k in range(4):
            att = jnp.where(adj == k + 1, e[:, k * L:(k + 1) * L, :], att)
        att = att - jnp.max(att, axis=-1, keepdims=True)
        p = jnp.exp(att)
        p = p * pl.reciprocal(jnp.sum(p, axis=-1, keepdims=True), approx=True)
        return jnp.einsum('bij,bjd->bid', p, hh,
                          preferred_element_type=jnp.float32)            # (B, L, D)

    # TODO(synk): LocalAggregator's `step` arg is unused in the reference GCE-GNN
    # forward; applied `step` times here (step=1 -> identical).
    h_local = h
    for _ in range(step):
        h_local = local_step(h_local)

    # ---------------- TargetAggregator ----------------
    # TODO(synk): TargetAggregator source was not provided with the module; this
    # is a target-conditioned attention consistent with its call signature and
    # the (B, L, D) shape required downstream.
    q = jnp.dot(tgt, wt, preferred_element_type=jnp.float32)             # (B, D)
    s = jnp.sum(h * q[:, None, :], axis=-1, keepdims=True)               # (B, L, 1)
    s = _leaky(s, slope)
    s = jnp.where(mask3 > 0, s, NEG_INF)
    s = s - jnp.max(s, axis=1, keepdims=True)
    pt = jnp.exp(s)
    pt = pt * pl.reciprocal(jnp.sum(pt, axis=1, keepdims=True), approx=True)
    h_target = pt * h                                                     # (B, L, D)

    # ---------------- GlobalAggregator (GCE-GNN), all hops fused ----------------
    def global_agg(sv, nb, wts, sess_n, n):
        # sv: (N, D) self vectors; nb: (S, N, D) neighbors (sample axis outer);
        # wts: (S, N, 1) neighbor weights; sess_n: (N, D) session vector per row.
        w1a, w3a, w3b = gsq[n, 0], gsq[n, 1], gsq[n, 2]                   # (D, D)
        w1b = gvec[n, 0:1, :]                                             # (1, D)
        w2r = gvec[n, 1:2, :]                                             # (1, D)
        S_, N, Dd = nb.shape
        prod = nb * sess_n[None]                                          # (S, N, D)
        a2 = jnp.dot(prod.reshape(S_ * N, Dd), w1a,
                     preferred_element_type=jnp.float32).reshape(S_, N, Dd)
        a2 = _leaky(a2 + wts * w1b, 0.2)            # GlobalAggregator uses slope 0.2
        # score: VPU multiply + lane reduce instead of an N=1 MXU matmul
        sc = jnp.sum(a2 * w2r, axis=-1, keepdims=True)                    # (S, N, 1)
        sc = sc - jnp.max(sc, axis=0, keepdims=True)
        alpha = jnp.exp(sc)
        alpha = alpha * pl.reciprocal(jnp.sum(alpha, axis=0, keepdims=True),
                                      approx=True)
        agg = jnp.sum(alpha * nb, axis=0)                                 # (N, D)
        out = (jnp.dot(sv, w3a, preferred_element_type=jnp.float32)
               + jnp.dot(agg, w3b, preferred_element_type=jnp.float32))
        return act(out)                                                   # (N, D)

    ev1 = ev1_ref[...]      # (S, B*L, D)     1-hop entities, sample axis outer
    ev2 = ev2_ref[...]      # (S, S*B*L, D)   2-hop entities
    w0 = w0_ref[...]        # (S, B*L, 1)
    w1w = w1_ref[...]       # (S, S*B*L, 1)
    sbl = sbl_ref[...]      # (B*L, D)        session vector per (b, m) row
    ssbl = ssbl_ref[...]    # (S*B*L, D)      session vector per (s1, b, m) row

    # n_hop = 0  (aggregator 0 applied at both depths)
    hop0 = global_agg(h.reshape(B * L, D), ev1, w0, sbl, 0)               # (B*L, D)
    hop1 = global_agg(ev1.reshape(S * B * L, D), ev2, w1w, ssbl, 0)       # (S*B*L, D)
    # n_hop = 1  (aggregator 1)
    h_glob = global_agg(hop0, hop1.reshape(S, B * L, D), w0, sbl, 1)      # (B*L, D)
    h_global = h_glob.reshape(B, L, D)

    # packed lane-dense (B, L, 4D) output: [h_local | h_target | h_global | sum]
    out_ref[:, :, 0 * D:1 * D] = h_local
    out_ref[:, :, 1 * D:2 * D] = h_target
    out_ref[:, :, 2 * D:3 * D] = h_global
    out_ref[:, :, 3 * D:4 * D] = h_local + h_global


def fused_combine_graph(h, adj, mask3, tgt, ev1_nb, ev2_nb, w0_t, w1_t,
                        sess_bl, sess_sbl, a_stack, target_w, gsq, gvec):
    B, L, D = h.shape
    kernel = partial(_combine_kernel, slope=ALPHA, step=STEP,
                     n_sample=SAMPLE_NUM, act_name=ACTIVATE)
    # Single invocation (grid=()): whole problem lives in VMEM, no per-step
    # pipeline bookkeeping, one launch instead of four.
    return pl.pallas_call(
        kernel,
        out_shape=jax.ShapeDtypeStruct((B, L, 4 * D), jnp.float32),
    )(h, adj, mask3, tgt, ev1_nb, ev2_nb, w0_t, w1_t, sess_bl, sess_sbl,
      a_stack, target_w, gsq, gvec)


# ----------------------------------------------------------------------------
# Glue: neighbor sampling, SSL contrastive loss (stay in plain JAX)
# ----------------------------------------------------------------------------
def sample_neighbors(adj_all, num_w, target_ids):
    flat = target_ids.reshape(-1)
    return adj_all[flat], num_w[flat]


def ssl_loss(h_local, h_global, key):
    # Matches the reference SSL: score sums over dim 1 (seq axis), shuffle is
    # a row + column permutation; torch.randperm -> jax.random.permutation.
    B, L, D = h_local.shape
    k1, k2 = jax.random.split(key)
    perm_b = jax.random.permutation(k1, B)
    perm_l = jax.random.permutation(k2, L)
    shuffled = h_local[perm_b][:, perm_l]

    def score(x1, x2):
        return jnp.sum(x1 * x2, axis=1)      # (B, D)

    pos = score(h_local, h_global)
    neg1 = score(h_global, shuffled)
    return jnp.sum(-jnp.log(1e-8 + jax.nn.sigmoid(pos))
                   - jnp.log(1e-8 + (1.0 - jax.nn.sigmoid(neg1))))


# ----------------------------------------------------------------------------
# Full forward
# ----------------------------------------------------------------------------
def combine_graph_forward(params, inputs, adj, mask_item, item, targets, ssl_key):
    assert HOP == 2, "fused global pipeline is specialized to n_iter == 2"
    B, L = inputs.shape
    D, S = DIM, SAMPLE_NUM
    emb = params["embedding"]
    maskf = mask_item.astype(jnp.float32)

    h = emb[inputs]                        # (B, L, D)
    targets1 = emb[targets]                # (B, D)

    # --- global neighbor sampling (embedding gathers - glue) ---
    item_neighbors = [inputs]
    weight_neighbors = []
    support = L
    for _ in range(HOP):
        samp_i, samp_w = sample_neighbors(params["adj_all"], params["num"],
                                          item_neighbors[-1])
        support *= S
        item_neighbors.append(samp_i.reshape(B, support))
        weight_neighbors.append(samp_w.reshape(B, support))
    ev1 = emb[item_neighbors[1]]           # (B, L*S, D)
    ev2 = emb[item_neighbors[2]]           # (B, L*S*S, D)

    # --- session pooling ---
    item_emb = emb[item] * maskf[..., None]
    sess = jnp.sum(item_emb, axis=1) / jnp.sum(maskf, axis=-1, keepdims=True)  # (B, D)

    # --- layout-friendly views for the fused kernel (tiny XLA glue) ---
    # Sample axis outermost -> every in-kernel reshape is a leading-dim split/
    # merge and the per-sample softmax reduces over the outer axis.
    ev1_nb = ev1.reshape(B, L, S, D).transpose(2, 0, 1, 3).reshape(S, B * L, D)
    ev2_nb = (ev2.reshape(B, L, S, S, D).transpose(3, 2, 0, 1, 4)
              .reshape(S, S * B * L, D))
    w0_t = (weight_neighbors[0].reshape(B, L, S).transpose(2, 0, 1)
            .reshape(S, B * L, 1))
    w1_t = (weight_neighbors[1].reshape(B, L, S, S).transpose(3, 2, 0, 1)
            .reshape(S, S * B * L, 1))
    sess_bl = jnp.broadcast_to(sess[:, None, :], (B, L, D)).reshape(B * L, D)
    sess_sbl = jnp.broadcast_to(sess[None, :, None, :],
                                (S, B, L, D)).reshape(S * B * L, D)
    gsq = jnp.stack([jnp.stack([g["w1a"], g["w3a"], g["w3b"]], axis=0)
                     for g in params["global"]], axis=0)               # (HOP,3,D,D)
    gvec = jnp.stack([jnp.stack([g["w1b"].reshape(D), g["w2"].reshape(D)], axis=0)
                      for g in params["global"]], axis=0)              # (HOP,2,D)

    packed = fused_combine_graph(h, adj, maskf[..., None], targets1,
                                 ev1_nb, ev2_nb, w0_t, w1_t,
                                 sess_bl, sess_sbl,
                                 params["local_a"], params["target_w"],
                                 gsq, gvec)                            # (B, L, 4D)

    h_local = packed[..., 0 * D:1 * D]
    h_target = packed[..., 1 * D:2 * D]
    h_global = packed[..., 2 * D:3 * D]
    out_sum = packed[..., 3 * D:4 * D]     # h_local + h_global, folded in-kernel

    # dropouts are identity at eval time (training=False)
    output = jnp.concatenate([h_target, out_sum], axis=1)              # (B, 2L, D)
    con_loss = ssl_loss(h_local, h_global, ssl_key)
    return output, BETA * con_loss


# ----------------------------------------------------------------------------
# Deterministic parameter init (uniform(-1/sqrt(dim), 1/sqrt(dim)), as in
# reset_parameters). Optimizer / scheduler / loss_function are training-only.
# ----------------------------------------------------------------------------
def init_params(key):
    stdv = 1.0 / math.sqrt(DIM)
    keys = jax.random.split(key, 10)

    def uni(k, shape):
        return jax.random.uniform(k, shape, jnp.float32, -stdv, stdv)

    params = {
        "embedding": uni(keys[0], (NUM_NODE, DIM)),
        "local_a": uni(keys[1], (4, DIM)),       # a_0..a_3 of LocalAggregator
        "target_w": uni(keys[2], (DIM, DIM)),    # TargetAggregator projection
        "global": [],
    }
    for i in range(HOP):
        sub = jax.random.split(keys[3 + i], 5)
        params["global"].append({
            "w1a": uni(sub[0], (DIM, DIM)),      # w_1[:dim, :]
            "w1b": uni(sub[1], (1, DIM)),        # w_1[dim:, :] (weight channel)
            "w2": uni(sub[2], (DIM, 1)),
            "w3a": uni(sub[3], (DIM, DIM)),      # w_3[:dim, :]
            "w3b": uni(sub[4], (DIM, DIM)),      # w_3[dim:, :]
        })
    # adj_all / num sampling tables (constructor args of the torch module)
    params["adj_all"] = jax.random.randint(keys[8], (NUM_NODE, SAMPLE_NUM), 0, NUM_NODE)
    params["num"] = jax.random.uniform(keys[9], (NUM_NODE, SAMPLE_NUM),
                                       jnp.float32, 0.0, 1.0)
    return params


if __name__ == "__main__":
    key = jax.random.PRNGKey(0)
    k_par, k_in, k_adj, k_item, k_tgt, k_ssl = jax.random.split(key, 6)

    params = init_params(k_par)
    inputs = jax.random.randint(k_in, (BATCH, SEQ_LEN), 0, NUM_NODE)
    adj = jax.random.randint(k_adj, (BATCH, SEQ_LEN, SEQ_LEN), 0, 5)   # relations 0..4
    item = jax.random.randint(k_item, (BATCH, SEQ_LEN), 0, NUM_NODE)
    targets = jax.random.randint(k_tgt, (BATCH,), 0, NUM_NODE)
    lengths = jnp.array([SEQ_LEN, 5], dtype=jnp.int32)
    mask_item = (jnp.arange(SEQ_LEN)[None, :] < lengths[:, None]).astype(jnp.int32)

    fwd = jax.jit(combine_graph_forward)
    output, con_loss = fwd(params, inputs, adj, mask_item, item, targets, k_ssl)
    jax.block_until_ready((output, con_loss))

    assert output.shape == (BATCH, 2 * SEQ_LEN, DIM)
    assert output.dtype == jnp.float32
    assert con_loss.shape == ()
    print("KERNEL_OK")
</pallas_src>

<mosaic_0001>
module attributes {stable_mosaic.version = 11 : i64} {
  func.func @_combine_kernel(%arg0: memref<2x8x32xf32, #tpu.memory_space<vmem>>, %arg1: memref<2x8x8xi32, #tpu.memory_space<vmem>>, %arg2: memref<2x8x1xf32, #tpu.memory_space<vmem>>, %arg3: memref<2x32xf32, #tpu.memory_space<vmem>>, %arg4: memref<4x16x32xf32, #tpu.memory_space<vmem>>, %arg5: memref<4x64x32xf32, #tpu.memory_space<vmem>>, %arg6: memref<4x16x1xf32, #tpu.memory_space<vmem>>, %arg7: memref<4x64x1xf32, #tpu.memory_space<vmem>>, %arg8: memref<16x32xf32, #tpu.memory_space<vmem>>, %arg9: memref<64x32xf32, #tpu.memory_space<vmem>>, %arg10: memref<4x32xf32, #tpu.memory_space<vmem>>, %arg11: memref<32x32xf32, #tpu.memory_space<vmem>>, %arg12: memref<2x3x32x32xf32, #tpu.memory_space<vmem>>, %arg13: memref<2x2x32xf32, #tpu.memory_space<vmem>>, %arg14: memref<2x8x128xf32, #tpu.memory_space<vmem>>) attributes {dimension_semantics = [], scalar_prefetch = 0 : i64, scratch_operands = 0 : i64, tpu.core_type = #tpu.core_type<tc>} {
    %c0 = arith.constant 0 : index
    %c0_0 = arith.constant 0 : index
    %c0_1 = arith.constant 0 : index
    %0 = vector.load %arg0[%c0, %c0_0, %c0_1] : memref<2x8x32xf32, #tpu.memory_space<vmem>>, vector<2x8x32xf32>
    %c0_2 = arith.constant 0 : index
    %c0_3 = arith.constant 0 : index
    %c0_4 = arith.constant 0 : index
    %1 = vector.load %arg1[%c0_2, %c0_3, %c0_4] : memref<2x8x8xi32, #tpu.memory_space<vmem>>, vector<2x8x8xi32>
    %c0_5 = arith.constant 0 : index
    %c0_6 = arith.constant 0 : index
    %c0_7 = arith.constant 0 : index
    %2 = vector.load %arg2[%c0_5, %c0_6, %c0_7] : memref<2x8x1xf32, #tpu.memory_space<vmem>>, vector<2x8x1xf32>
    %c0_8 = arith.constant 0 : index
    %c0_9 = arith.constant 0 : index
    %3 = vector.load %arg3[%c0_8, %c0_9] : memref<2x32xf32, #tpu.memory_space<vmem>>, vector<2x32xf32>
    %c0_10 = arith.constant 0 : index
    %c0_11 = arith.constant 0 : index
    %4 = vector.load %arg10[%c0_10, %c0_11] : memref<4x32xf32, #tpu.memory_space<vmem>>, vector<4x32xf32>
    %c0_12 = arith.constant 0 : index
    %c0_13 = arith.constant 0 : index
    %5 = vector.load %arg11[%c0_12, %c0_13] : memref<32x32xf32, #tpu.memory_space<vmem>>, vector<32x32xf32>
    %c0_14 = arith.constant 0 : index
    %c0_15 = arith.constant 0 : index
    %c0_16 = arith.constant 0 : index
    %c0_17 = arith.constant 0 : index
    %6 = vector.load %arg12[%c0_14, %c0_15, %c0_16, %c0_17] : memref<2x3x32x32xf32, #tpu.memory_space<vmem>>, vector<2x3x32x32xf32>
    %c0_18 = arith.constant 0 : index
    %c0_19 = arith.constant 0 : index
    %c0_20 = arith.constant 0 : index
    %7 = vector.load %arg13[%c0_18, %c0_19, %c0_20] : memref<2x2x32xf32, #tpu.memory_space<vmem>>, vector<2x2x32xf32>
    %8 = vector.extract_strided_slice %4 {offsets = [0, 0], sizes = [1, 32], strides = [1, 1]} : vector<4x32xf32> to vector<1x32xf32>
    %9 = vector.shape_cast %8 : vector<1x32xf32> to vector<1x1x32xf32>
    %10 = vector.broadcast %9 : vector<1x1x32xf32> to vector<2x8x32xf32>
    %11 = arith.mulf %0, %10 : vector<2x8x32xf32>
    %12 = vector.extract_strided_slice %4 {offsets = [1, 0], sizes = [1, 32], strides = [1, 1]} : vector<4x32xf32> to vector<1x32xf32>
    %13 = vector.shape_cast %12 : vector<1x32xf32> to vector<1x1x32xf32>
    %14 = vector.broadcast %13 : vector<1x1x32xf32> to vector<2x8x32xf32>
    %15 = arith.mulf %0, %14 : vector<2x8x32xf32>
    %16 = vector.extract_strided_slice %4 {offsets = [2, 0], sizes = [1, 32], strides = [1, 1]} : vector<4x32xf32> to vector<1x32xf32>
    %17 = vector.shape_cast %16 : vector<1x32xf32> to vector<1x1x32xf32>
    %18 = vector.broadcast %17 : vector<1x1x32xf32> to vector<2x8x32xf32>
    %19 = arith.mulf %0, %18 : vector<2x8x32xf32>
    %20 = vector.extract_strided_slice %4 {offsets = [3, 0], sizes = [1, 32], strides = [1, 1]} : vector<4x32xf32> to vector<1x32xf32>
    %21 = vector.shape_cast %20 : vector<1x32xf32> to vector<1x1x32xf32>
    %22 = vector.broadcast %21 : vector<1x1x32xf32> to vector<2x8x32xf32>
    %23 = arith.mulf %0, %22 : vector<2x8x32xf32>
    %24 = tpu.concatenate %11, %15, %19, %23 in 1 : vector<2x8x32xf32>, vector<2x8x32xf32>, vector<2x8x32xf32>, vector<2x8x32xf32> -> vector<2x32x32xf32>
    "tpu.trace_start"() <{level = 10 : i32, message = "bid,bjd->bij"}> : () -> ()
    %cst = arith.constant dense<0.000000e+00> : vector<2x32x8xf32>
    %25 = tpu.matmul %24, %0, %cst {dimension_numbers = #tpu.dot_dimension_numbers<[2], [2], [1], [1], [0, 0, 0, 1, 1, 1], [0], [0]>} : vector<2x32x32xf32>, vector<2x8x32xf32>, vector<2x32x8xf32> -> vector<2x32x8xf32>
    %cst_21 = arith.constant 0.000000e+00 : f32
    "tpu.trace_stop"() : () -> ()
    %26 = vector.broadcast %cst_21 : f32 to vector<2x32x8xf32>
    %27 = arith.cmpf ogt, %25, %26 : vector<2x32x8xf32>
    %cst_22 = arith.constant 2.000000e-01 : f32
    %28 = vector.broadcast %cst_22 : f32 to vector<2x32x8xf32>
    %29 = arith.mulf %28, %25 : vector<2x32x8xf32>
    %30 = arith.select %27, %25, %29 : vector<2x32x8xi1>, vector<2x32x8xf32>
    %cst_23 = arith.constant -9.000000e+15 : f32
    %31 = vector.broadcast %cst_23 : f32 to vector<2x8x8xf32>
    %c1_i32 = arith.constant 1 : i32
    %32 = vector.broadcast %c1_i32 : i32 to vector<2x8x8xi32>
    %33 = arith.cmpi eq, %1, %32 : vector<2x8x8xi32>
    %34 = vector.extract_strided_slice %30 {offsets = [0, 0, 0], sizes = [2, 8, 8], strides = [1, 1, 1]} : vector<2x32x8xf32> to vector<2x8x8xf32>
    %35 = arith.select %33, %34, %31 : vector<2x8x8xi1>, vector<2x8x8xf32>
    %c2_i32 = arith.constant 2 : i32
    %36 = vector.broadcast %c2_i32 : i32 to vector<2x8x8xi32>
    %37 = arith.cmpi eq, %1, %36 : vector<2x8x8xi32>
    %38 = vector.extract_strided_slice %30 {offsets = [0, 8, 0], sizes = [2, 8, 8], strides = [1, 1, 1]} : vector<2x32x8xf32> to vector<2x8x8xf32>
    %39 = arith.select %37, %38, %35 : vector<2x8x8xi1>, vector<2x8x8xf32>
    %c3_i32 = arith.constant 3 : i32
    %40 = vector.broadcast %c3_i32 : i32 to vector<2x8x8xi32>
    %41 = arith.cmpi eq, %1, %40 : vector<2x8x8xi32>
    %42 = vector.extract_strided_slice %30 {offsets = [0, 16, 0], sizes = [2, 8, 8], strides = [1, 1, 1]} : vector<2x32x8xf32> to vector<2x8x8xf32>
    %43 = arith.select %41, %42, %39 : vector<2x8x8xi1>, vector<2x8x8xf32>
    %c4_i32 = arith.constant 4 : i32
    %44 = vector.broadcast %c4_i32 : i32 to vector<2x8x8xi32>
    %45 = arith.cmpi eq, %1, %44 : vector<2x8x8xi32>
    %46 = vector.extract_strided_slice %30 {offsets = [0, 24, 0], sizes = [2, 8, 8], strides = [1, 1, 1]} : vector<2x32x8xf32> to vector<2x8x8xf32>
    %47 = arith.select %45, %46, %43 : vector<2x8x8xi1>, vector<2x8x8xf32>
    %cst_24 = arith.constant dense<0xFF800000> : vector<2x8xf32>
    %48 = vector.multi_reduction <maximumf>, %47, %cst_24 [2] : vector<2x8x8xf32> to vector<2x8xf32>
    %49 = vector.shape_cast %48 : vector<2x8xf32> to vector<2x8x1xf32>
    %50 = vector.broadcast %49 : vector<2x8x1xf32> to vector<2x8x8xf32>
    %51 = arith.subf %47, %50 : vector<2x8x8xf32>
    %52 = math.exp %51 : vector<2x8x8xf32>
    %cst_25 = arith.constant dense<0.000000e+00> : vector<2x8xf32>
    %53 = vector.multi_reduction <add>, %52, %cst_25 [2] : vector<2x8x8xf32> to vector<2x8xf32>
    %54 = vector.shape_cast %53 : vector<2x8xf32> to vector<2x8x1xf32>
    %55 = tpu.reciprocal %54 {approx = true} : vector<2x8x1xf32> -> vector<2x8x1xf32>
    %56 = vector.broadcast %55 : vector<2x8x1xf32> to vector<2x8x8xf32>
    %57 = arith.mulf %52, %56 : vector<2x8x8xf32>
    "tpu.trace_start"() <{level = 10 : i32, message = "bij,bjd->bid"}> : () -> ()
    %cst_26 = arith.constant dense<0.000000e+00> : vector<2x8x32xf32>
    %58 = tpu.matmul %57, %0, %cst_26 {dimension_numbers = #tpu.dot_dimension_numbers<[2], [1], [1], [2], [0, 0, 0, 1, 1, 2], [0], [0]>} : vector<2x8x8xf32>, vector<2x8x32xf32>, vector<2x8x32xf32> -> vector<2x8x32xf32>
    "tpu.trace_stop"() : () -> ()
    %cst_27 = arith.constant dense<0.000000e+00> : vector<2x32xf32>
    %59 = tpu.matmul %3, %5, %cst_27 {dimension_numbers = #tpu.dot_dimension_numbers<[1], [0], [0], [1], [0, 0, 1, 1], [], []>} : vector<2x32xf32>, vector<32x32xf32>, vector<2x32xf32> -> vector<2x32xf32>
    %60 = vector.shape_cast %59 : vector<2x32xf32> to vector<2x1x32xf32>
    %61 = vector.broadcast %60 : vector<2x1x32xf32> to vector<2x8x32xf32>
    %62 = arith.mulf %0, %61 : vector<2x8x32xf32>
    %cst_28 = arith.constant dense<0.000000e+00> : vector<2x8xf32>
    %63 = vector.multi_reduction <add>, %62, %cst_28 [2] : vector<2x8x32xf32> to vector<2x8xf32>
    %64 = vector.shape_cast %63 : vector<2x8xf32> to vector<2x8x1xf32>
    %cst_29 = arith.constant 0.000000e+00 : f32
    %65 = vector.broadcast %cst_29 : f32 to vector<2x8x1xf32>
    %66 = arith.cmpf ogt, %64, %65 : vector<2x8x1xf32>
    %cst_30 = arith.constant 2.000000e-01 : f32
    %67 = vector.broadcast %cst_30 : f32 to vector<2x8x1xf32>
    %68 = arith.mulf %67, %64 : vector<2x8x1xf32>
    %69 = arith.select %66, %64, %68 : vector<2x8x1xi1>, vector<2x8x1xf32>
    %cst_31 = arith.constant 0.000000e+00 : f32
    %70 = vector.broadcast %cst_31 : f32 to vector<2x8x1xf32>
    %71 = arith.cmpf ogt, %2, %70 : vector<2x8x1xf32>
    %cst_32 = arith.constant -9.000000e+15 : f32
    %72 = vector.broadcast %cst_32 : f32 to vector<2x8x1xf32>
    %73 = arith.select %71, %69, %72 : vector<2x8x1xi1>, vector<2x8x1xf32>
    %cst_33 = arith.constant dense<0xFF800000> : vector<2x1xf32>
    %74 = vector.multi_reduction <maximumf>, %73, %cst_33 [1] : vector<2x8x1xf32> to vector<2x1xf32>
    %75 = vector.shape_cast %74 : vector<2x1xf32> to vector<2x1x1xf32>
    %76 = vector.broadcast %75 : vector<2x1x1xf32> to vector<2x8x1xf32>
    %77 = arith.subf %73, %76 : vector<2x8x1xf32>
    %78 = math.exp %77 : vector<2x8x1xf32>
    %cst_34 = arith.constant dense<0.000000e+00> : vector<2x1xf32>
    %79 = vector.multi_reduction <add>, %78, %cst_34 [1] : vector<2x8x1xf32> to vector<2x1xf32>
    %80 = vector.shape_cast %79 : vector<2x1xf32> to vector<2x1x1xf32>
    %81 = tpu.reciprocal %80 {approx = true} : vector<2x1x1xf32> -> vector<2x1x1xf32>
    %82 = vector.broadcast %81 : vector<2x1x1xf32> to vector<2x8x1xf32>
    %83 = arith.mulf %78, %82 : vector<2x8x1xf32>
    %84 = vector.broadcast %83 : vector<2x8x1xf32> to vector<2x8x32xf32>
    %85 = arith.mulf %84, %0 : vector<2x8x32xf32>
    %c0_35 = arith.constant 0 : index
    %c0_36 = arith.constant 0 : index
    %c0_37 = arith.constant 0 : index
    %86 = vector.load %arg4[%c0_35, %c0_36, %c0_37] : memref<4x16x32xf32, #tpu.memory_space<vmem>>, vector<4x16x32xf32>
    %c0_38 = arith.constant 0 : index
    %c0_39 = arith.constant 0 : index
    %c0_40 = arith.constant 0 : index
    %87 = vector.load %arg5[%c0_38, %c0_39, %c0_40] : memref<4x64x32xf32, #tpu.memory_space<vmem>>, vector<4x64x32xf32>
    %c0_41 = arith.constant 0 : index
    %c0_42 = arith.constant 0 : index
    %c0_43 = arith.constant 0 : index
    %88 = vector.load %arg6[%c0_41, %c0_42, %c0_43] : memref<4x16x1xf32, #tpu.memory_space<vmem>>, vector<4x16x1xf32>
    %c0_44 = arith.constant 0 : index
    %c0_45 = arith.constant 0 : index
    %c0_46 = arith.constant 0 : index
    %89 = vector.load %arg7[%c0_44, %c0_45, %c0_46] : memref<4x64x1xf32, #tpu.memory_space<vmem>>, vector<4x64x1xf32>
    %c0_47 = arith.constant 0 : index
    %c0_48 = arith.constant 0 : index
    %90 = vector.load %arg8[%c0_47, %c0_48] : memref<16x32xf32, #tpu.memory_space<vmem>>, vector<16x32xf32>
    %c0_49 = arith.constant 0 : index
    %c0_50 = arith.constant 0 : index
    %91 = vector.load %arg9[%c0_49, %c0_50] : memref<64x32xf32, #tpu.memory_space<vmem>>, vector<64x32xf32>
    %92 = vector.shape_cast %0 : vector<2x8x32xf32> to vector<16x32xf32>
    %93 = vector.extract_strided_slice %6 {offsets = [0, 0, 0, 0], sizes = [1, 1, 32, 32], strides = [1, 1, 1, 1]} : vector<2x3x32x32xf32> to vector<1x1x32x32xf32>
    %94 = vector.shape_cast %93 : vector<1x1x32x32xf32> to vector<32x32xf32>
    %95 = vector.extract_strided_slice %6 {offsets = [0, 1, 0, 0], sizes = [1, 1, 32, 32], strides = [1, 1, 1, 1]} : vector<2x3x32x32xf32> to vector<1x1x32x32xf32>
    %96 = vector.shape_cast %95 : vector<1x1x32x32xf32> to vector<32x32xf32>
    %97 = vector.extract_strided_slice %6 {offsets = [0, 2, 0, 0], sizes = [1, 1, 32, 32], strides = [1, 1, 1, 1]} : vector<2x3x32x32xf32> to vector<1x1x32x32xf32>
    %98 = vector.shape_cast %97 : vector<1x1x32x32xf32> to vector<32x32xf32>
    %99 = vector.extract_strided_slice %7 {offsets = [0, 0, 0], sizes = [1, 1, 32], strides = [1, 1, 1]} : vector<2x2x32xf32> to vector<1x1x32xf32>
    %100 = vector.shape_cast %99 : vector<1x1x32xf32> to vector<1x32xf32>
    %101 = vector.extract_strided_slice %7 {offsets = [0, 1, 0], sizes = [1, 1, 32], strides = [1, 1, 1]} : vector<2x2x32xf32> to vector<1x1x32xf32>
    %102 = vector.shape_cast %101 : vector<1x1x32xf32> to vector<1x32xf32>
    %103 = vector.shape_cast %90 : vector<16x32xf32> to vector<1x16x32xf32>
    %104 = vector.broadcast %103 : vector<1x16x32xf32> to vector<4x16x32xf32>
    %105 = arith.mulf %86, %104 : vector<4x16x32xf32>
    %106 = vector.shape_cast %105 : vector<4x16x32xf32> to vector<64x32xf32>
    %cst_51 = arith.constant dense<0.000000e+00> : vector<64x32xf32>
    %107 = tpu.matmul %106, %94, %cst_51 {dimension_numbers = #tpu.dot_dimension_numbers<[1], [0], [0], [1], [0, 0, 1, 1], [], []>} : vector<64x32xf32>, vector<32x32xf32>, vector<64x32xf32> -> vector<64x32xf32>
    %108 = vector.shape_cast %107 : vector<64x32xf32> to vector<4x16x32xf32>
    %109 = vector.shape_cast %100 : vector<1x32xf32> to vector<1x1x32xf32>
    %110 = vector.broadcast %88 : vector<4x16x1xf32> to vector<4x16x32xf32>
    %111 = vector.broadcast %109 : vector<1x1x32xf32> to vector<4x16x32xf32>
    %112 = arith.mulf %110, %111 : vector<4x16x32xf32>
    %113 = arith.addf %108, %112 : vector<4x16x32xf32>
    %cst_52 = arith.constant 0.000000e+00 : f32
    %114 = vector.broadcast %cst_52 : f32 to vector<4x16x32xf32>
    %115 = arith.cmpf ogt, %113, %114 : vector<4x16x32xf32>
    %cst_53 = arith.constant 2.000000e-01 : f32
    %116 = vector.broadcast %cst_53 : f32 to vector<4x16x32xf32>
    %117 = arith.mulf %116, %113 : vector<4x16x32xf32>
    %118 = arith.select %115, %113, %117 : vector<4x16x32xi1>, vector<4x16x32xf32>
    %119 = vector.shape_cast %102 : vector<1x32xf32> to vector<1x1x32xf32>
    %120 = vector.broadcast %119 : vector<1x1x32xf32> to vector<4x16x32xf32>
    %121 = arith.mulf %118, %120 : vector<4x16x32xf32>
    %cst_54 = arith.constant dense<0.000000e+00> : vector<4x16xf32>
    %122 = vector.multi_reduction <add>, %121, %cst_54 [2] : vector<4x16x32xf32> to vector<4x16xf32>
    %123 = vector.shape_cast %122 : vector<4x16xf32> to vector<4x16x1xf32>
    %cst_55 = arith.constant dense<0xFF800000> : vector<16x1xf32>
    %124 = vector.multi_reduction <maximumf>, %123, %cst_55 [0] : vector<4x16x1xf32> to vector<16x1xf32>
    %125 = vector.shape_cast %124 : vector<16x1xf32> to vector<1x16x1xf32>
    %126 = vector.broadcast %125 : vector<1x16x1xf32> to vector<4x16x1xf32>
    %127 = arith.subf %123, %126 : vector<4x16x1xf32>
    %128 = math.exp %127 : vector<4x16x1xf32>
    %cst_56 = arith.constant dense<0.000000e+00> : vector<16x1xf32>
    %129 = vector.multi_reduction <add>, %128, %cst_56 [0] : vector<4x16x1xf32> to vector<16x1xf32>
    %130 = vector.shape_cast %129 : vector<16x1xf32> to vector<1x16x1xf32>
    %131 = tpu.reciprocal %130 {approx = true} : vector<1x16x1xf32> -> vector<1x16x1xf32>
    %132 = vector.broadcast %131 : vector<1x16x1xf32> to vector<4x16x1xf32>
    %133 = arith.mulf %128, %132 : vector<4x16x1xf32>
    %134 = vector.broadcast %133 : vector<4x16x1xf32> to vector<4x16x32xf32>
    %135 = arith.mulf %134, %86 : vector<4x16x32xf32>
    %cst_57 = arith.constant dense<0.000000e+00> : vector<16x32xf32>
    %136 = vector.multi_reduction <add>, %135, %cst_57 [0] : vector<4x16x32xf32> to vector<16x32xf32>
    %cst_58 = arith.constant dense<0.000000e+00> : vector<16x32xf32>
    %137 = tpu.matmul %92, %96, %cst_58 {dimension_numbers = #tpu.dot_dimension_numbers<[1], [0], [0], [1], [0, 0, 1, 1], [], []>} : vector<16x32xf32>, vector<32x32xf32>, vector<16x32xf32> -> vector<16x32xf32>
    %cst_59 = arith.constant dense<0.000000e+00> : vector<16x32xf32>
    %138 = tpu.matmul %136, %98, %cst_59 {dimension_numbers = #tpu.dot_dimension_numbers<[1], [0], [0], [1], [0, 0, 1, 1], [], []>} : vector<16x32xf32>, vector<32x32xf32>, vector<16x32xf32> -> vector<16x32xf32>
    %139 = arith.addf %137, %138 : vector<16x32xf32>
    %cst_60 = arith.constant 0.000000e+00 : f32
    %140 = vector.broadcast %cst_60 : f32 to vector<16x32xf32>
    %141 = arith.maximumf %139, %140 : vector<16x32xf32>
    %142 = vector.shape_cast %86 : vector<4x16x32xf32> to vector<64x32xf32>
    %143 = vector.extract_strided_slice %6 {offsets = [0, 0, 0, 0], sizes = [1, 1, 32, 32], strides = [1, 1, 1, 1]} : vector<2x3x32x32xf32> to vector<1x1x32x32xf32>
    %144 = vector.shape_cast %143 : vector<1x1x32x32xf32> to vector<32x32xf32>
    %145 = vector.extract_strided_slice %6 {offsets = [0, 1, 0, 0], sizes = [1, 1, 32, 32], strides = [1, 1, 1, 1]} : vector<2x3x32x32xf32> to vector<1x1x32x32xf32>
    %146 = vector.shape_cast %145 : vector<1x1x32x32xf32> to vector<32x32xf32>
    %147 = vector.extract_strided_slice %6 {offsets = [0, 2, 0, 0], sizes = [1, 1, 32, 32], strides = [1, 1, 1, 1]} : vector<2x3x32x32xf32> to vector<1x1x32x32xf32>
    %148 = vector.shape_cast %147 : vector<1x1x32x32xf32> to vector<32x32xf32>
    %149 = vector.extract_strided_slice %7 {offsets = [0, 0, 0], sizes = [1, 1, 32], strides = [1, 1, 1]} : vector<2x2x32xf32> to vector<1x1x32xf32>
    %150 = vector.shape_cast %149 : vector<1x1x32xf32> to vector<1x32xf32>
    %151 = vector.extract_strided_slice %7 {offsets = [0, 1, 0], sizes = [1, 1, 32], strides = [1, 1, 1]} : vector<2x2x32xf32> to vector<1x1x32xf32>
    %152 = vector.shape_cast %151 : vector<1x1x32xf32> to vector<1x32xf32>
    %153 = vector.shape_cast %91 : vector<64x32xf32> to vector<1x64x32xf32>
    %154 = vector.broadcast %153 : vector<1x64x32xf32> to vector<4x64x32xf32>
    %155 = arith.mulf %87, %154 : vector<4x64x32xf32>
    %156 = vector.shape_cast %155 : vector<4x64x32xf32> to vector<256x32xf32>
    %cst_61 = arith.constant dense<0.000000e+00> : vector<256x32xf32>
    %157 = tpu.matmul %156, %144, %cst_61 {dimension_numbers = #tpu.dot_dimension_numbers<[1], [0], [0], [1], [0, 0, 1, 1], [], []>} : vector<256x32xf32>, vector<32x32xf32>, vector<256x32xf32> -> vector<256x32xf32>
    %158 = vector.shape_cast %157 : vector<256x32xf32> to vector<4x64x32xf32>
    %159 = vector.shape_cast %150 : vector<1x32xf32> to vector<1x1x32xf32>
    %160 = vector.broadcast %89 : vector<4x64x1xf32> to vector<4x64x32xf32>
    %161 = vector.broadcast %159 : vector<1x1x32xf32> to vector<4x64x32xf32>
    %162 = arith.mulf %160, %161 : vector<4x64x32xf32>
    %163 = arith.addf %158, %162 : vector<4x64x32xf32>
    %cst_62 = arith.constant 0.000000e+00 : f32
    %164 = vector.broadcast %cst_62 : f32 to vector<4x64x32xf32>
    %165 = arith.cmpf ogt, %163, %164 : vector<4x64x32xf32>
    %cst_63 = arith.constant 2.000000e-01 : f32
    %166 = vector.broadcast %cst_63 : f32 to vector<4x64x32xf32>
    %167 = arith.mulf %166, %163 : vector<4x64x32xf32>
    %168 = arith.select %165, %163, %167 : vector<4x64x32xi1>, vector<4x64x32xf32>
    %169 = vector.shape_cast %152 : vector<1x32xf32> to vector<1x1x32xf32>
    %170 = vector.broadcast %169 : vector<1x1x32xf32> to vector<4x64x32xf32>
    %171 = arith.mulf %168, %170 : vector<4x64x32xf32>
    %cst_64 = arith.constant dense<0.000000e+00> : vector<4x64xf32>
    %172 = vector.multi_reduction <add>, %171, %cst_64 [2] : vector<4x64x32xf32> to vector<4x64xf32>
    %173 = vector.shape_cast %172 : vector<4x64xf32> to vector<4x64x1xf32>
    %cst_65 = arith.constant dense<0xFF800000> : vector<64x1xf32>
    %174 = vector.multi_reduction <maximumf>, %173, %cst_65 [0] : vector<4x64x1xf32> to vector<64x1xf32>
    %175 = vector.shape_cast %174 : vector<64x1xf32> to vector<1x64x1xf32>
    %176 = vector.broadcast %175 : vector<1x64x1xf32> to vector<4x64x1xf32>
    %177 = arith.subf %173, %176 : vector<4x64x1xf32>
    %178 = math.exp %177 : vector<4x64x1xf32>
    %cst_66 = arith.constant dense<0.000000e+00> : vector<64x1xf32>
    %179 = vector.multi_reduction <add>, %178, %cst_66 [0] : vector<4x64x1xf32> to vector<64x1xf32>
    %180 = vector.shape_cast %179 : vector<64x1xf32> to vector<1x64x1xf32>
    %181 = tpu.reciprocal %180 {approx = true} : vector<1x64x1xf32> -> vector<1x64x1xf32>
    %182 = vector.broadcast %181 : vector<1x64x1xf32> to vector<4x64x1xf32>
    %183 = arith.mulf %178, %182 : vector<4x64x1xf32>
    %184 = vector.broadcast %183 : vector<4x64x1xf32> to vector<4x64x32xf32>
    %185 = arith.mulf %184, %87 : vector<4x64x32xf32>
    %cst_67 = arith.constant dense<0.000000e+00> : vector<64x32xf32>
    %186 = vector.multi_reduction <add>, %185, %cst_67 [0] : vector<4x64x32xf32> to vector<64x32xf32>
    %cst_68 = arith.constant dense<0.000000e+00> : vector<64x32xf32>
    %187 = tpu.matmul %142, %146, %cst_68 {dimension_numbers = #tpu.dot_dimension_numbers<[1], [0], [0], [1], [0, 0, 1, 1], [], []>} : vector<64x32xf32>, vector<32x32xf32>, vector<64x32xf32> -> vector<64x32xf32>
    %cst_69 = arith.constant dense<0.000000e+00> : vector<64x32xf32>
    %188 = tpu.matmul %186, %148, %cst_69 {dimension_numbers = #tpu.dot_dimension_numbers<[1], [0], [0], [1], [0, 0, 1, 1], [], []>} : vector<64x32xf32>, vector<32x32xf32>, vector<64x32xf32> -> vector<64x32xf32>
    %189 = arith.addf %187, %188 : vector<64x32xf32>
    %cst_70 = arith.constant 0.000000e+00 : f32
    %190 = vector.broadcast %cst_70 : f32 to vector<64x32xf32>
    %191 = arith.maximumf %189, %190 : vector<64x32xf32>
    %192 = vector.shape_cast %191 : vector<64x32xf32> to vector<4x16x32xf32>
    %193 = vector.extract_strided_slice %6 {offsets = [1, 0, 0, 0], sizes = [1, 1, 32, 32], strides = [1, 1, 1, 1]} : vector<2x3x32x32xf32> to vector<1x1x32x32xf32>
    %194 = vector.shape_cast %193 : vector<1x1x32x32xf32> to vector<32x32xf32>
    %195 = vector.extract_strided_slice %6 {offsets = [1, 1, 0, 0], sizes = [1, 1, 32, 32], strides = [1, 1, 1, 1]} : vector<2x3x32x32xf32> to vector<1x1x32x32xf32>
    %196 = vector.shape_cast %195 : vector<1x1x32x32xf32> to vector<32x32xf32>
    %197 = vector.extract_strided_slice %6 {offsets = [1, 2, 0, 0], sizes = [1, 1, 32, 32], strides = [1, 1, 1, 1]} : vector<2x3x32x32xf32> to vector<1x1x32x32xf32>
    %198 = vector.shape_cast %197 : vector<1x1x32x32xf32> to vector<32x32xf32>
    %199 = vector.extract_strided_slice %7 {offsets = [1, 0, 0], sizes = [1, 1, 32], strides = [1, 1, 1]} : vector<2x2x32xf32> to vector<1x1x32xf32>
    %200 = vector.shape_cast %199 : vector<1x1x32xf32> to vector<1x32xf32>
    %201 = vector.extract_strided_slice %7 {offsets = [1, 1, 0], sizes = [1, 1, 32], strides = [1, 1, 1]} : vector<2x2x32xf32> to vector<1x1x32xf32>
    %202 = vector.shape_cast %201 : vector<1x1x32xf32> to vector<1x32xf32>
    %203 = vector.shape_cast %90 : vector<16x32xf32> to vector<1x16x32xf32>
    %204 = vector.broadcast %203 : vector<1x16x32xf32> to vector<4x16x32xf32>
    %205 = arith.mulf %192, %204 : vector<4x16x32xf32>
    %206 = vector.shape_cast %205 : vector<4x16x32xf32> to vector<64x32xf32>
    %cst_71 = arith.constant dense<0.000000e+00> : vector<64x32xf32>
    %207 = tpu.matmul %206, %194, %cst_71 {dimension_numbers = #tpu.dot_dimension_numbers<[1], [0], [0], [1], [0, 0, 1, 1], [], []>} : vector<64x32xf32>, vector<32x32xf32>, vector<64x32xf32> -> vector<64x32xf32>
    %208 = vector.shape_cast %207 : vector<64x32xf32> to vector<4x16x32xf32>
    %209 = vector.shape_cast %200 : vector<1x32xf32> to vector<1x1x32xf32>
    %210 = vector.broadcast %88 : vector<4x16x1xf32> to vector<4x16x32xf32>
    %211 = vector.broadcast %209 : vector<1x1x32xf32> to vector<4x16x32xf32>
    %212 = arith.mulf %210, %211 : vector<4x16x32xf32>
    %213 = arith.addf %208, %212 : vector<4x16x32xf32>
    %cst_72 = arith.constant 0.000000e+00 : f32
    %214 = vector.broadcast %cst_72 : f32 to vector<4x16x32xf32>
    %215 = arith.cmpf ogt, %213, %214 : vector<4x16x32xf32>
    %cst_73 = arith.constant 2.000000e-01 : f32
    %216 = vector.broadcast %cst_73 : f32 to vector<4x16x32xf32>
    %217 = arith.mulf %216, %213 : vector<4x16x32xf32>
    %218 = arith.select %215, %213, %217 : vector<4x16x32xi1>, vector<4x16x32xf32>
    %219 = vector.shape_cast %202 : vector<1x32xf32> to vector<1x1x32xf32>
    %220 = vector.broadcast %219 : vector<1x1x32xf32> to vector<4x16x32xf32>
    %221 = arith.mulf %218, %220 : vector<4x16x32xf32>
    %cst_74 = arith.constant dense<0.000000e+00> : vector<4x16xf32>
    %222 = vector.multi_reduction <add>, %221, %cst_74 [2] : vector<4x16x32xf32> to vector<4x16xf32>
    %223 = vector.shape_cast %222 : vector<4x16xf32> to vector<4x16x1xf32>
    %cst_75 = arith.constant dense<0xFF800000> : vector<16x1xf32>
    %224 = vector.multi_reduction <maximumf>, %223, %cst_75 [0] : vector<4x16x1xf32> to vector<16x1xf32>
    %225 = vector.shape_cast %224 : vector<16x1xf32> to vector<1x16x1xf32>
    %226 = vector.broadcast %225 : vector<1x16x1xf32> to vector<4x16x1xf32>
    %227 = arith.subf %223, %226 : vector<4x16x1xf32>
    %228 = math.exp %227 : vector<4x16x1xf32>
    %cst_76 = arith.constant dense<0.000000e+00> : vector<16x1xf32>
    %229 = vector.multi_reduction <add>, %228, %cst_76 [0] : vector<4x16x1xf32> to vector<16x1xf32>
    %230 = vector.shape_cast %229 : vector<16x1xf32> to vector<1x16x1xf32>
    %231 = tpu.reciprocal %230 {approx = true} : vector<1x16x1xf32> -> vector<1x16x1xf32>
    %232 = vector.broadcast %231 : vector<1x16x1xf32> to vector<4x16x1xf32>
    %233 = arith.mulf %228, %232 : vector<4x16x1xf32>
    %234 = vector.broadcast %233 : vector<4x16x1xf32> to vector<4x16x32xf32>
    %235 = arith.mulf %234, %192 : vector<4x16x32xf32>
    %cst_77 = arith.constant dense<0.000000e+00> : vector<16x32xf32>
    %236 = vector.multi_reduction <add>, %235, %cst_77 [0] : vector<4x16x32xf32> to vector<16x32xf32>
    %cst_78 = arith.constant dense<0.000000e+00> : vector<16x32xf32>
    %237 = tpu.matmul %141, %196, %cst_78 {dimension_numbers = #tpu.dot_dimension_numbers<[1], [0], [0], [1], [0, 0, 1, 1], [], []>} : vector<16x32xf32>, vector<32x32xf32>, vector<16x32xf32> -> vector<16x32xf32>
    %cst_79 = arith.constant dense<0.000000e+00> : vector<16x32xf32>
    %238 = tpu.matmul %236, %198, %cst_79 {dimension_numbers = #tpu.dot_dimension_numbers<[1], [0], [0], [1], [0, 0, 1, 1], [], []>} : vector<16x32xf32>, vector<32x32xf32>, vector<16x32xf32> -> vector<16x32xf32>
    %239 = arith.addf %237, %238 : vector<16x32xf32>
    %cst_80 = arith.constant 0.000000e+00 : f32
    %240 = vector.broadcast %cst_80 : f32 to vector<16x32xf32>
    %241 = arith.maximumf %239, %240 : vector<16x32xf32>
    %242 = vector.shape_cast %241 : vector<16x32xf32> to vector<2x8x32xf32>
    %c0_81 = arith.constant 0 : index
    %c0_82 = arith.constant 0 : index
    %c0_83 = arith.constant 0 : index
    %243 = vector.load %arg14[%c0_81, %c0_82, %c0_83] : memref<2x8x128xf32, #tpu.memory_space<vmem>>, vector<2x8x32xf32>
    tpu.vector_store %arg14[%c0_81, %c0_82, %c0_83], %58 {strides = array<i32>} : memref<2x8x128xf32, #tpu.memory_space<vmem>>, vector<2x8x32xf32>,
    %c0_84 = arith.constant 0 : index
    %c0_85 = arith.constant 0 : index
    %c32 = arith.constant 32 : index
    %244 = vector.load %arg14[%c0_84, %c0_85, %c32] : memref<2x8x128xf32, #tpu.memory_space<vmem>>, vector<2x8x32xf32>
    tpu.vector_store %arg14[%c0_84, %c0_85, %c32], %85 {strides = array<i32>} : memref<2x8x128xf32, #tpu.memory_space<vmem>>, vector<2x8x32xf32>,
    %c0_86 = arith.constant 0 : index
    %c0_87 = arith.constant 0 : index
    %c64 = arith.constant 64 : index
    %245 = vector.load %arg14[%c0_86, %c0_87, %c64] : memref<2x8x128xf32, #tpu.memory_space<vmem>>, vector<2x8x32xf32>
    tpu.vector_store %arg14[%c0_86, %c0_87, %c64], %242 {strides = array<i32>} : memref<2x8x128xf32, #tpu.memory_space<vmem>>, vector<2x8x32xf32>,
    %246 = arith.addf %58, %242 : vector<2x8x32xf32>
    %c0_88 = arith.constant 0 : index
    %c0_89 = arith.constant 0 : index
    %c96 = arith.constant 96 : index
    %247 = vector.load %arg14[%c0_88, %c0_89, %c96] : memref<2x8x128xf32, #tpu.memory_space<vmem>>, vector<2x8x32xf32>
    tpu.vector_store %arg14[%c0_88, %c0_89, %c96], %246 {strides = array<i32>} : memref<2x8x128xf32, #tpu.memory_space<vmem>>, vector<2x8x32xf32>,
    return
  }
}

</mosaic_0001>

<bundles_post_ra>
// kernel: combine_graph_forward.1
= control target key start
LH: loop header
LB: loop body
LE: loop exit
PB: predicated region body
PF: predicated region fallthrough
CT: control target
= control target key end

     0   :  { %vm109_vm0 = vcmask 261120   ;;  %v85_v0 = vlaneseq  ;;  %v3807_v23 = vmov 0   ;;  %vm350_vm13 = vcmask 64512   ;;  %s5373_s0 = inlined_call_operand.vmem [shape: f32[2,8,32], index: 0, kind: input, shape index: {}]   ;;  %s5374_s10 = inlined_call_operand.vmem [shape: f32[4,32], index: 10, kind: input, shape index: {}]   ;;  %s5375_s13 = inlined_call_operand.vmem [shape: f32[2,2,32], index: 13, kind: input, shape index: {}]   ;;  %s5376_s1 = inlined_call_operand.vmem [shape: s32[2,8,8], index: 1, kind: input, shape index: {}]   ;;  %s5377_s6 = inlined_call_operand.vmem [shape: f32[4,16,1], index: 6, kind: input, shape index: {}]   ;;  %s5378_s7 = inlined_call_operand.vmem [shape: f32[4,64,1], index: 7, kind: input, shape index: {}]   ;;  %s5379_s12 = inlined_call_operand.vmem [shape: f32[2,3,32,32], index: 12, kind: input, shape index: {}]   ;;  %s5380_s4 = inlined_call_operand.vmem [shape: f32[4,16,32], index: 4, kind: input, shape index: {}]   ;;  %s5381_s8 = inlined_call_operand.vmem [shape: f32[16,32], index: 8, kind: input, shape index: {}]   ;;  %s5382_s5 = inlined_call_operand.vmem [shape: f32[4,64,32], index: 5, kind: input, shape index: {}]   ;;  %s5383_s9 = inlined_call_operand.vmem [shape: f32[64,32], index: 9, kind: input, shape index: {}]   ;;  %s5384_s14 = inlined_call_operand.vmem [shape: f32[2,8,128], index: 14, kind: output, shape index: {}]   ;;  %s5385_s11 = inlined_call_operand.vmem [shape: f32[32,32], index: 11, kind: input, shape index: {}]   ;;  %s5386_s3 = inlined_call_operand.vmem [shape: f32[2,32], index: 3, kind: input, shape index: {}]   ;;  %s5387_s2 = inlined_call_operand.vmem [shape: f32[2,8,1], index: 2, kind: input, shape index: {}]  }
   0x1   :  { %v3893_v1 = vld [vmem:[%s5373_s0 + $0x8] sm:$0xff]  ;;  %v3902_v3 = vld [vmem:[%s5373_s0] sm:$0xff]  ;;  %3624 = vset.pattern.permute.xlu1 %v3807_v23  ;;  %3623 = vset.pattern.permute.xlu0 %v3807_v23  ;;  %v736_v61 = vld [vmem:[%s5377_s6 + $0x10] sm:$0xff] }
   0x2   :  { %3316 = vmatprep.subr.msk.mxu1 %vm109_vm0, %v3893_v1  ;;  %v3897_v2 = vshrl.u32 %v85_v0, 7  ;;  %v54_v4 = vld [vmem:[%s5374_s10] sm:$0xf]  ;;  %3308 = vmatprep.subr.msk.mxu0 %vm109_vm0, %v3902_v3  ;;  %v50_v24 = vld [vmem:[%s5376_s1 + $0x8] sm:$0xff]  ;;  %v740_v62 = vld [vmem:[%s5377_s6 + $0x30] sm:$0xff] }
   0x3   :  { %3317 = vmatpush3.xpose.msk.msra.mxu1 %vm109_vm0, %v3893_v1  ;;  %3309 = vmatpush3.xpose.msk.msra.mxu0 %vm109_vm0, %v3902_v3  ;;  %v3925_v10 = vld [vmem:[%s5375_s13 + $0x2] sm:$0x3]  ;;  %vm335_vm1 = vcmp.eq.s32.totalorder %v50_v24, 1  ;;  %vm339_vm2 = vcmp.eq.s32.totalorder %v50_v24, 2  ;;  %vm343_vm7 = vcmp.eq.s32.totalorder %v50_v24, 3  ;;  %vm347_vm8 = vcmp.eq.s32.totalorder %v50_v24, 4 }
   0x4   :  { %v3912_v5 = vsub.s32 0, %v3897_v2  ;;  %v3915_v6 = vsub.s32 1, %v3897_v2  ;;  %v99_v7 = vsub.s32 2, %v3897_v2  ;;  %v105_v8 = vsub.s32 3, %v3897_v2  ;;  %v49_v27 = vld [vmem:[%s5376_s1] sm:$0xff]  ;;  %v735_v63 = vld [vmem:[%s5377_s6 + $0x8] sm:$0xff] }
   0x5   :  { %vm334_vm9 = vcmp.eq.s32.totalorder %v49_v27, 1  ;;  %vm338_vm10 = vcmp.eq.s32.totalorder %v49_v27, 2  ;;  %v734_v60 = vld [vmem:[%s5377_s6] sm:$0xff]  ;;  %v737_v0 = vld [vmem:[%s5377_s6 + $0x18] sm:$0xff] }
   0x6   :  { %5392 = vst [vmem:[#allocation2_spill] sm:$0xff] %v3912_v5  ;;  %v88_v9 = vrot.slane %v54_v4, %v3912_v5  ;;  %v94_v11 = vrot.slane %v54_v4, %v3915_v6  ;;  %v3930_v12 = vrot.slane %v3925_v10, %v3915_v6  ;;  %v100_v13 = vrot.slane %v54_v4, %v99_v7  ;;  %v741_v7 = vld [vmem:[%s5377_s6 + $0x38] sm:$0xff] }
   0x7   :  { %v106_v14 = vrot.slane %v54_v4, %v105_v8  ;;  %v739_v4 = vld [vmem:[%s5377_s6 + $0x28] sm:$0xff]  ;;  %v758_v8 = vld [vmem:[%s5378_s7 + $0x80] sm:$0xff] }
   0x8   :  { %v90_v15 = vmul.f32 %v88_v9, %v3893_v1  ;;  %v96_v16 = vmul.f32 %v94_v11, %v3893_v1  ;;  %v89_v17 = vmul.f32 %v88_v9, %v3902_v3  ;;  %v95_v18 = vmul.f32 %v94_v11, %v3902_v3  ;;  %v745_v9 = vld [vmem:[%s5378_s7 + $0x18] sm:$0xff]  ;;  %v767_v11 = vld [vmem:[%s5378_s7 + $0xc8] sm:$0xff] }
   0x9   :  { %v102_v19 = vmul.f32 %v100_v13, %v3893_v1  ;;  %v101_v20 = vmul.f32 %v100_v13, %v3902_v3  ;;  %v108_v21 = vmul.f32 %v106_v14, %v3893_v1  ;;  %v107_v22 = vmul.f32 %v106_v14, %v3902_v3  ;;  %v761_v13 = vld [vmem:[%s5378_s7 + $0x98] sm:$0xff]  ;;  %v754_v14 = vld [vmem:[%s5378_s7 + $0x60] sm:$0xff] }
   0xa   :  { %3318 = vmatprep.mubr.msk.f32.mxu1 %vm109_vm0, %v90_v15  ;;  %3310 = vmatprep.mubr.msk.f32.mxu0 %vm109_vm0, %v89_v17  ;;  %v747_v15 = vld [vmem:[%s5378_s7 + $0x28] sm:$0xff] }
   0xb   :  { %3319 = vmatmul.mubr.msk.f32.vlgmr.msra.gmra.mrb[0].mxu1 %vm109_vm0, %v96_v16  ;;  %3311 = vmatmul.mubr.msk.f32.vlgmr.msra.gmra.mrb[0].mxu0 %vm109_vm0, %v95_v18  ;;  %v769_v16 = vld [vmem:[%s5378_s7 + $0xd8] sm:$0xff]  ;;  %v763_v17 = vld [vmem:[%s5378_s7 + $0xa8] sm:$0xff]  ;;  %v756_v18 = vld [vmem:[%s5378_s7 + $0x70] sm:$0xff] }
   0xc   :  { %3321 = vmatprep.mubr.msk.f32.mxu1 %vm109_vm0, %v102_v19  ;;  %3313 = vmatprep.mubr.msk.f32.mxu0 %vm109_vm0, %v101_v20  ;;  %v749_v19 = vld [vmem:[%s5378_s7 + $0x38] sm:$0xff]  ;;  %v771_v20 = vld [vmem:[%s5378_s7 + $0xe8] sm:$0xff] }
   0xf   :  { %3322 = vmatmul.mubr.msk.f32.gmra.mrb[2].mxu1 %vm109_vm0, %v108_v21  ;;  %3314 = vmatmul.mubr.msk.f32.gmra.mrb[2].mxu0 %vm109_vm0, %v107_v22  ;;  %v765_v21 = vld [vmem:[%s5378_s7 + $0xb8] sm:$0xff] }
  0x10   :  { %v773_v22 = vld [vmem:[%s5378_s7 + $0xf8] sm:$0xff] }
  0xde   :  { %v3320_v25 = vpop.f32.mrb[0].mxu1  ;;  %v3312_v26 = vpop.f32.mrb[0].mxu0 }
  0xdf   :  { %vm315_vm3 = vcmp.gt.f32.partialorder %v3320_v25, 0.0  ;;  %v323_v28 = vmul.f32 0.2, %v3320_v25  ;;  %v291_v29 = vpop.f32.mrb[1].mxu1  ;;  %vm311_vm4 = vcmp.gt.f32.partialorder %v3312_v26, 0.0  ;;  %v191_v30 = vpop.f32.mrb[1].mxu0 }
  0xe0   :  { %vm314_vm5 = vcmp.gt.f32.partialorder %v291_v29, 0.0  ;;  %v322_v31 = vmul.f32 0.2, %v291_v29  ;;  %v319_v32 = vmul.f32 0.2, %v3312_v26  ;;  %vm310_vm6 = vcmp.gt.f32.partialorder %v191_v30, 0.0 }
  0xe1   :  { %v318_v33 = vmul.f32 0.2, %v191_v30  ;;  %v331_v34 = vsel %vm315_vm3, %v3320_v25, %v323_v28  ;;  %vm342_vm3 = vcmp.eq.s32.totalorder %v49_v27, 3  ;;  %v4024_v28 = vrot.slane %v3925_v10, %v3912_v5 }
  0xe2   :  { %v330_v35 = vsel %vm314_vm5, %v291_v29, %v322_v31  ;;  %v3323_v36 = vpop.f32.mrb[2].mxu1  ;;  %v327_v37 = vsel %vm311_vm4, %v3312_v26, %v319_v32  ;;  %v3315_v38 = vpop.f32.mrb[2].mxu0 }
  0xe3   :  { %v337_v39 = vsel %vm335_vm1, %v330_v35, -9e+15  ;;  %vm317_vm11 = vcmp.gt.f32.partialorder %v3323_v36, 0.0  ;;  %v325_v40 = vmul.f32 0.2, %v3323_v36  ;;  %v301_v41 = vpop.f32.mrb[3].mxu1  ;;  %v326_v42 = vsel %vm310_vm6, %v191_v30, %v318_v33 }
  0xe4   :  { %vm316_vm12 = vcmp.gt.f32.partialorder %v301_v41, 0.0  ;;  %v324_v43 = vmul.f32 0.2, %v301_v41  ;;  %v341_v44 = vsel %vm339_vm2, %v331_v34, %v337_v39  ;;  %v336_v45 = vsel %vm334_vm9, %v326_v42, -9e+15  ;;  %v201_v46 = vpop.f32.mrb[3].mxu0 }
  0xe5   :  { %vm313_vm14 = vcmp.gt.f32.partialorder %v3315_v38, 0.0  ;;  %v321_v47 = vmul.f32 0.2, %v3315_v38  ;;  %vm312_vm15 = vcmp.gt.f32.partialorder %v201_v46, 0.0  ;;  %v320_v49 = vmul.f32 0.2, %v201_v46 }
  0xe6   :  { %v332_v48 = vsel %vm316_vm12, %v301_v41, %v324_v43  ;;  %v340_v50 = vsel %vm338_vm10, %v327_v37, %v336_v45  ;;  %v333_v51 = vsel %vm317_vm11, %v3323_v36, %v325_v40  ;;  %vm346_vm1 = vcmp.eq.s32.totalorder %v49_v27, 4 }
  0xe7   :  { %v345_v52 = vsel %vm343_vm7, %v332_v48, %v341_v44  ;;  %v329_v53 = vsel %vm313_vm14, %v3315_v38, %v321_v47  ;;  %v328_v55 = vsel %vm312_vm15, %v201_v46, %v320_v49  ;;  %v738_v47 = vld [vmem:[%s5377_s6 + $0x20] sm:$0xff]  ;;  %vm3809_vm2 = vmmov 0  }
  0xe8   :  { %v349_v54 = vsel %vm347_vm8, %v333_v51, %v345_v52  ;;  %v344_v57 = vsel %vm342_vm3, %v328_v55, %v340_v50  ;;  %v742_v48 = vld [vmem:[%s5378_s7] sm:$0xff]  ;;  %v60_v50 = vld [vmem:[%s5379_s12 + $0x8] sm:$0xff]  ;;  %v3808_v51 = vmov 0.0   ;;  %v744_v55 = vld [vmem:[%s5378_s7 + $0x10] sm:$0xff] }
  0xe9   :  { %v354_v56 = vsel %vm350_vm13, %v349_v54, -inf  ;;  %v348_v58 = vsel %vm346_vm1, %v329_v53, %v344_v57  ;;  %v59_v49 = vld [vmem:[%s5379_s12] sm:$0xff]  ;;  %3329 = vmatprep.subr.mxu1 %v3808_v51  ;;  %3324 = vmatprep.subr.mxu0 %v3808_v51 }
  0xea   :  { %355 = vmax.xlane.f32.xlu0 %v354_v56  ;;  %v351_v59 = vsel %vm350_vm13, %v348_v58, -inf  ;;  %v4089_v52 = vpack.c.bf16 %v60_v50, %v59_v49  ;;  %3330 = vmatpush3.msra.mxu1 %v3893_v1  ;;  %v750_v53 = vld [vmem:[%s5378_s7 + $0x40] sm:$0xff]  ;;  %v743_v1 = vld [vmem:[%s5378_s7 + $0x8] sm:$0xff]  ;;  %v752_v56 = vld [vmem:[%s5378_s7 + $0x50] sm:$0xff] }
  0xeb   :  { %352 = vmax.xlane.f32.xlu1 %v351_v59  ;;  %3325 = vmatpush3.msra.mxu0 %v3902_v3  ;;  %v751_v3 = vld [vmem:[%s5378_s7 + $0x48] sm:$0xff]  ;;  %v766_v57 = vld [vmem:[%s5378_s7 + $0xc0] sm:$0xff]  ;;  %v760_v59 = vld [vmem:[%s5378_s7 + $0x90] sm:$0xff] }
  0xec   :  { %3331 = vmatprep.mubr.msk.f32.mxu1 %vm3809_vm2, %v3808_v51  ;;  %3532 = vmatprep.subr.bf16.mxu1 %v4089_v52 }
  0xed   :  { %3326 = vmatprep.mubr.msk.f32.mxu0 %vm3809_vm2, %v3808_v51 }
  0xfc   :  { %923 = vperm.xlu1 %3624, %v734_v60   ;;  %v746_v60 = vld [vmem:[%s5378_s7 + $0x20] sm:$0xff] }
 0x100   :  { %933 = vperm.xlu1 %3624, %v736_v61  }
 0x104   :  { %953 = vperm.xlu1 %3624, %v740_v62   ;;  %v768_v62 = vld [vmem:[%s5378_s7 + $0xd0] sm:$0xff] }
 0x108   :  { %928 = vperm.xlu1 %3624, %v735_v63  }
 0x10c   :  { %938 = vperm.xlu1 %3624, %v737_v0   ;;  %v755_v0 = vld [vmem:[%s5378_s7 + $0x68] sm:$0xff] }
 0x110   :  { %948 = vperm.xlu1 %3624, %v739_v4   ;;  %v762_v4 = vld [vmem:[%s5378_s7 + $0xa0] sm:$0xff] }
 0x114   :  { %958 = vperm.xlu1 %3624, %v741_v7  }
 0x118   :  { %1702 = vperm.xlu1 %3624, %v758_v8   ;;  %v748_v8 = vld [vmem:[%s5378_s7 + $0x30] sm:$0xff] }
 0x11c   :  { %1637 = vperm.xlu1 %3624, %v745_v9  }
 0x120   :  { %1747 = vperm.xlu1 %3624, %v767_v11   ;;  %v770_v11 = vld [vmem:[%s5378_s7 + $0xe0] sm:$0xff] }
 0x124   :  { %1717 = vperm.xlu1 %3624, %v761_v13   ;;  %v757_v13 = vld [vmem:[%s5378_s7 + $0x78] sm:$0xff] }
 0x128   :  { %1682 = vperm.xlu1 %3624, %v754_v14  }
 0x12c   :  { %1647 = vperm.xlu1 %3624, %v747_v15   ;;  %v764_v15 = vld [vmem:[%s5378_s7 + $0xb0] sm:$0xff] }
 0x130   :  { %1757 = vperm.xlu1 %3624, %v769_v16  }
 0x134   :  { %1727 = vperm.xlu1 %3624, %v763_v17   ;;  %v772_v17 = vld [vmem:[%s5378_s7 + $0xf0] sm:$0xff] }
 0x138   :  { %1692 = vperm.xlu1 %3624, %v756_v18  }
 0x13c   :  { %1657 = vperm.xlu1 %3624, %v749_v19  }
 0x140   :  { %1767 = vperm.xlu1 %3624, %v771_v20  }
 0x144   :  { %1737 = vperm.xlu1 %3624, %v765_v21  }
 0x148   :  { %1777 = vperm.xlu1 %3624, %v773_v22  }
 0x177   :  { %v356_v23 = vpop.xlane.xlu0 %355 }
 0x178   :  { %v358_v24 = vsub.f32 %v349_v54, %v356_v23  ;;  %v353_v25 = vpop.xlane.xlu1 %352  ;;  %v759_v54 = vld [vmem:[%s5378_s7 + $0x88] sm:$0xff] }
 0x179   :  { %v357_v27 = vsub.f32 %v348_v58, %v353_v25  ;;  %v753_v58 = vld [vmem:[%s5378_s7 + $0x58] sm:$0xff]  ;;  %s3812_s7 = smov 32  }
 0x17a   :  { %v361_v26 = vmul.f32 1.442695, %v358_v24 }
 0x17b   :  { %v359_v29 = vmul.f32 1.442695, %v357_v27  ;;  %v694_v27 = vld [vmem:[%s5380_s4] sm:$0xff] }
 0x17c   :  { %3625 = vpow2.f32 %v361_v26  ;;  %v4026_v30 = vpop.permute.xlu1 %923 }
 0x17d   :  { %3627 = vpow2.f32 %v359_v29  ;;  %v4030_v31 = vmul.f32 %v4024_v28, %v4026_v30  ;;  %v774_v29 = vld [vmem:[%s5381_s8] sm:$0xff] }
 0x180   :  { %v4032_v32 = vpop.permute.xlu1 %933 }
 0x181   :  { %v4036_v33 = vmul.f32 %v4024_v28, %v4032_v32 }
 0x184   :  { %v4038_v34 = vpop.permute.xlu1 %953 }
 0x185   :  { %v4044_v10 = vmul.f32 %v4024_v28, %v4038_v34 }
 0x186   :  { %v4040_v35 = vpop.eup %3625 }
 0x187   :  { %v366_v36 = vsel %vm350_vm13, %v4040_v35, 0.0  ;;  %v4048_v37 = vpop.eup %3627 }
 0x188   :  { %367 = vadd.xlane.f32.xlu0 %v366_v36  ;;  %v363_v38 = vsel %vm350_vm13, %v4048_v37, 0.0  ;;  %v4052_v39 = vpop.permute.xlu1 %928  ;;  %v61_v36 = vld [vmem:[%s5379_s12 + $0x10] sm:$0xff] }
 0x189   :  { %364 = vadd.xlane.f32.xlu1 %v363_v38  ;;  %v4056_v40 = vmul.f32 %v4024_v28, %v4052_v39  ;;  %v62_v38 = vld [vmem:[%s5379_s12 + $0x18] sm:$0xff] }
 0x18a   :  { %v3535_v50 = vpack.c.bf16 %v62_v38, %v61_v36  ;;  %v705_v36 = vld [vmem:[%s5382_s5 + $0x18] sm:$0xff] }
 0x18b   :  { %v4266_v38 = vld [vmem:[%s5383_s9 + $0x18] sm:$0xff] }
 0x18c   :  { %v4058_v41 = vpop.permute.xlu1 %938 }
 0x18d   :  { %v4062_v42 = vmul.f32 %v4024_v28, %v4058_v41 }
 0x190   :  { %v4064_v43 = vpop.permute.xlu1 %948 }
 0x191   :  { %v4068_v44 = vmul.f32 %v4024_v28, %v4064_v43 }
 0x194   :  { %v4070_v45 = vpop.permute.xlu1 %958 }
 0x195   :  { %v4074_v46 = vmul.f32 %v4024_v28, %v4070_v45 }
 0x198   :  { %v4129_v61 = vpop.permute.xlu1 %1702 }
 0x19c   :  { %v4134_v63 = vpop.permute.xlu1 %1637 }
 0x19e   :  { %943 = vperm.xlu0 %3623, %v738_v47  }
 0x1a0   :  { %v4142_v7 = vpop.permute.xlu1 %1747 }
 0x1a2   :  { %1622 = vperm.xlu0 %3623, %v742_v48   ;;  %v784_v48 = vmul.f32 %v774_v29, %v694_v27 }
 0x1a4   :  { %v4147_v9 = vpop.permute.xlu1 %1717 }
 0x1a6   :  { %1662 = vperm.xlu0 %3623, %v750_v53  }
 0x1a8   :  { %v4155_v14 = vpop.permute.xlu1 %1682 }
 0x1aa   :  { %1627 = vperm.xlu0 %3623, %v743_v1  }
 0x1ac   :  { %v4160_v16 = vpop.permute.xlu1 %1647 }
 0x1ae   :  { %1667 = vperm.xlu0 %3623, %v751_v3   ;;  %v775_v3 = vld [vmem:[%s5381_s8 + $0x8] sm:$0xff] }
 0x1b0   :  { %v4165_v18 = vpop.permute.xlu1 %1757 }
 0x1b2   :  { %1707 = vperm.xlu0 %3623, %v759_v54   ;;  %v695_v54 = vld [vmem:[%s5380_s4 + $0x8] sm:$0xff] }
 0x1b4   :  { %v4167_v19 = vpop.permute.xlu1 %1727 }
 0x1b6   :  { %1632 = vperm.xlu0 %3623, %v744_v55  }
 0x1b8   :  { %v4169_v20 = vpop.permute.xlu1 %1692 }
 0x1ba   :  { %1672 = vperm.xlu0 %3623, %v752_v56   ;;  %v697_v56 = vld [vmem:[%s5380_s4 + $0x18] sm:$0xff] }
 0x1bc   :  { %v4171_v21 = vpop.permute.xlu1 %1657 }
 0x1be   :  { %1742 = vperm.xlu0 %3623, %v766_v57   ;;  %v698_v57 = vld [vmem:[%s5380_s4 + $0x20] sm:$0xff] }
 0x1c0   :  { %v4173_v22 = vpop.permute.xlu1 %1767 }
 0x1c2   :  { %1677 = vperm.xlu0 %3623, %v753_v58   ;;  %v787_v58 = vmul.f32 %v775_v3, %v697_v56  ;;  %v4306_v56 = vld [vmem:[%s5383_s9 + $0x38] sm:$0xff] }
 0x1c4   :  { %v4175_v23 = vpop.permute.xlu1 %1737 }
 0x1c6   :  { %1712 = vperm.xlu0 %3623, %v760_v59   ;;  %v699_v59 = vld [vmem:[%s5380_s4 + $0x28] sm:$0xff] }
 0x1c8   :  { %v4177_v24 = vpop.permute.xlu1 %1777 }
 0x1ca   :  { %1642 = vperm.xlu0 %3623, %v746_v60   ;;  %v700_v60 = vld [vmem:[%s5380_s4 + $0x30] sm:$0xff] }
 0x1ce   :  { %1752 = vperm.xlu0 %3623, %v768_v62   ;;  %v789_v62 = vmul.f32 %v775_v3, %v699_v59  ;;  %v711_v59 = vld [vmem:[%s5382_s5 + $0x48] sm:$0xff] }
 0x1d2   :  { %1687 = vperm.xlu0 %3623, %v755_v0   ;;  %v790_v0 = vmul.f32 %v774_v29, %v700_v60  ;;  %v712_v60 = vld [vmem:[%s5382_s5 + $0x50] sm:$0xff] }
 0x1d6   :  { %1722 = vperm.xlu0 %3623, %v762_v4   ;;  %v702_v4 = vld [vmem:[%s5382_s5] sm:$0xff] }
 0x1da   :  { %1652 = vperm.xlu0 %3623, %v748_v8   ;;  %v4235_v8 = vld [vmem:[%s5383_s9] sm:$0xff] }
 0x1de   :  { %1762 = vperm.xlu0 %3623, %v770_v11  }
 0x1e2   :  { %1697 = vperm.xlu0 %3623, %v757_v13   ;;  %v1267_v13 = vmul.f32 %v4235_v8, %v702_v4  ;;  %v714_v4 = vld [vmem:[%s5382_s5 + $0x60] sm:$0xff] }
 0x1e6   :  { %1732 = vperm.xlu0 %3623, %v764_v15   ;;  %v703_v15 = vld [vmem:[%s5382_s5 + $0x8] sm:$0xff] }
 0x1ea   :  { %1772 = vperm.xlu0 %3623, %v772_v17   ;;  %v4246_v17 = vld [vmem:[%s5383_s9 + $0x8] sm:$0xff] }
 0x1eb   :  { %v1268_v27 = vmul.f32 %v4246_v17, %v703_v15  ;;  %v715_v15 = vld [vmem:[%s5382_s5 + $0x68] sm:$0xff] }
 0x215   :  { %v368_v25 = vpop.xlane.xlu0 %367 }
 0x216   :  { %3629 = vrcp.f32 %v368_v25  ;;  %v365_v26 = vpop.xlane.xlu1 %364  ;;  %v704_v25 = vld [vmem:[%s5382_s5 + $0x10] sm:$0xff] }
 0x217   :  { %3631 = vrcp.f32 %v365_v26  ;;  %v4254_v26 = vld [vmem:[%s5383_s9 + $0x10] sm:$0xff] }
 0x220   :  { %v3630_v47 = vpop.eup %3629 }
 0x221   :  { %v372_v49 = vmul.f32 %v3630_v47, %v4040_v35  ;;  %v3632_v53 = vpop.eup %3631  ;;  %v696_v35 = vld [vmem:[%s5380_s4 + $0x10] sm:$0xff]  ;;  %v706_v47 = vld [vmem:[%s5382_s5 + $0x20] sm:$0xff] }
 0x222   :  { %v371_v1 = vmul.f32 %v3632_v53, %v4048_v37  ;;  %v785_v37 = vmul.f32 %v775_v3, %v695_v54  ;;  %v786_v55 = vmul.f32 %v774_v29, %v696_v35  ;;  %v707_v53 = vld [vmem:[%s5382_s5 + $0x28] sm:$0xff]  ;;  %v4294_v54 = vld [vmem:[%s5383_s9 + $0x30] sm:$0xff] }
 0x223   :  { %3332 = vmatmul.mubr.msk.f32.vlgmr.msra.gmra.mrb[4].mxu1 %vm350_vm13, %v372_v49  ;;  %v1270_v49 = vmul.f32 %v4266_v38, %v705_v36  ;;  %v717_v36 = vld [vmem:[%s5382_s5 + $0x78] sm:$0xff] }
 0x224   :  { %3534 = vmatpush3.bf16.msra.mxu1 %v4089_v52  ;;  %3353 = vmatprep.mubr.msk.f32.mxu1 %vm109_vm0, %v784_v48  ;;  %v4274_v48 = vld [vmem:[%s5383_s9 + $0x20] sm:$0xff] }
 0x225   :  { %3536 = vmatprep.subr.bf16.mxu1 %v3535_v50  ;;  %3327 = vmatmul.mubr.msk.f32.vlgmr.msra.gmra.mrb[4].mxu0 %vm350_vm13, %v371_v1  ;;  %v4286_v1 = vld [vmem:[%s5383_s9 + $0x28] sm:$0xff] }
 0x226   :  { %3342 = vmatprep.mubr.msk.f32.mxu0 %vm3809_vm2, %v3808_v51  ;;  %v788_v51 = vmul.f32 %v774_v29, %v698_v57  ;;  %v1269_v29 = vmul.f32 %v4254_v26, %v704_v25  ;;  %v1272_v35 = vmul.f32 %v4286_v1, %v707_v53  ;;  %v710_v57 = vld [vmem:[%s5382_s5 + $0x40] sm:$0xff]  ;;  %v716_v25 = vld [vmem:[%s5382_s5 + $0x70] sm:$0xff]  ;;  %v719_v53 = vld [vmem:[%s5382_s5 + $0x88] sm:$0xff] }
 0x228   :  { %3538 = vmatpush3.bf16.msra.mxu1 %v3535_v50 }
 0x229   :  { %3556 = vmatprep.subr.bf16.mxu1 %v4089_v52 }
 0x22b   :  { %3354 = vmatmul.mubr.msk.f32.vlgmr.msra.gmra.mrb[6].mxu1 %vm109_vm0, %v785_v37 }
 0x22c   :  { %3558 = vmatpush3.bf16.msra.mxu1 %v4089_v52  ;;  %3356 = vmatprep.mubr.msk.f32.mxu1 %vm109_vm0, %v786_v55  ;;  %v701_v52 = vld [vmem:[%s5380_s4 + $0x38] sm:$0xff] }
 0x22d   :  { %3560 = vmatprep.subr.bf16.mxu1 %v3535_v50  ;;  %v791_v11 = vmul.f32 %v775_v3, %v701_v52  ;;  %v708_v3 = vld [vmem:[%s5382_s5 + $0x30] sm:$0xff]  ;;  %v709_v55 = vld [vmem:[%s5382_s5 + $0x38] sm:$0xff] }
 0x22e   :  { %v1273_v37 = vmul.f32 %v4294_v54, %v708_v3  ;;  %v713_v52 = vld [vmem:[%s5382_s5 + $0x58] sm:$0xff]  ;;  %v720_v3 = vld [vmem:[%s5382_s5 + $0x90] sm:$0xff] }
 0x22f   :  { %3357 = vmatmul.mubr.msk.f32.gmra.mrb[8].mxu1 %vm109_vm0, %v787_v58  ;;  %v1274_v58 = vmul.f32 %v4306_v56, %v709_v55  ;;  %v721_v55 = vld [vmem:[%s5382_s5 + $0x98] sm:$0xff] }
 0x230   :  { %3359 = vmatprep.mubr.msk.f32.mxu1 %vm109_vm0, %v788_v51  ;;  %3562 = vmatpush3.bf16.msra.mxu1 %v3535_v50  ;;  %v1271_v50 = vmul.f32 %v4274_v48, %v706_v47  ;;  %v1275_v51 = vmul.f32 %v4235_v8, %v710_v57  ;;  %v718_v47 = vld [vmem:[%s5382_s5 + $0x80] sm:$0xff] }
 0x231   :  { %v722_v57 = vld [vmem:[%s5382_s5 + $0xa0] sm:$0xff] }
 0x233   :  { %3360 = vmatmul.mubr.msk.f32.gmra.mrb[10].mxu1 %vm109_vm0, %v789_v62  ;;  %v1276_v62 = vmul.f32 %v4246_v17, %v711_v59  ;;  %v723_v59 = vld [vmem:[%s5382_s5 + $0xa8] sm:$0xff] }
 0x234   :  { %3362 = vmatprep.mubr.msk.f32.mxu1 %vm109_vm0, %v790_v0  ;;  %v1277_v0 = vmul.f32 %v4254_v26, %v712_v60  ;;  %v724_v60 = vld [vmem:[%s5382_s5 + $0xb0] sm:$0xff] }
 0x237   :  { %3363 = vmatmul.mubr.msk.f32.gmra.mrb[12].mxu1 %vm109_vm0, %v791_v11  ;;  %v1278_v11 = vmul.f32 %v4266_v38, %v713_v52  ;;  %v725_v52 = vld [vmem:[%s5382_s5 + $0xb8] sm:$0xff] }
 0x238   :  { %3395 = vmatprep.mubr.msk.f32.mxu1 %vm109_vm0, %v1267_v13  ;;  %v1279_v13 = vmul.f32 %v4274_v48, %v714_v4  ;;  %v726_v4 = vld [vmem:[%s5382_s5 + $0xc0] sm:$0xff] }
 0x23b   :  { %3396 = vmatmul.mubr.msk.f32.vlgmr.msra.gmra.mrb[14].mxu1 %vm109_vm0, %v1268_v27  ;;  %v1280_v27 = vmul.f32 %v4286_v1, %v715_v15  ;;  %v727_v15 = vld [vmem:[%s5382_s5 + $0xc8] sm:$0xff] }
 0x23c   :  { %3398 = vmatprep.mubr.msk.f32.mxu1 %vm109_vm0, %v1269_v29  ;;  %v1281_v29 = vmul.f32 %v4294_v54, %v716_v25  ;;  %v728_v25 = vld [vmem:[%s5382_s5 + $0xd0] sm:$0xff] }
 0x23f   :  { %3399 = vmatmul.mubr.msk.f32.gmra.mrb[16].mxu1 %vm109_vm0, %v1270_v49  ;;  %v1282_v49 = vmul.f32 %v4306_v56, %v717_v36  ;;  %v730_v36 = vld [vmem:[%s5382_s5 + $0xe0] sm:$0xff] }
 0x240   :  { %3401 = vmatprep.mubr.msk.f32.mxu1 %vm109_vm0, %v1271_v50  ;;  %v1283_v50 = vmul.f32 %v4235_v8, %v718_v47 }
 0x243   :  { %3402 = vmatmul.mubr.msk.f32.gmra.mrb[18].mxu1 %vm109_vm0, %v1272_v35  ;;  %v1284_v35 = vmul.f32 %v4246_v17, %v719_v53 }
 0x244   :  { %3404 = vmatprep.mubr.msk.f32.mxu1 %vm109_vm0, %v1273_v37  ;;  %v1285_v37 = vmul.f32 %v4254_v26, %v720_v3  ;;  %v4432_v3 = vpop.permute.xlu0 %943 }
 0x247   :  { %3405 = vmatmul.mubr.msk.f32.gmra.mrb[20].mxu1 %vm109_vm0, %v1274_v58  ;;  %v1286_v58 = vmul.f32 %v4266_v38, %v721_v55 }
 0x248   :  { %3407 = vmatprep.mubr.msk.f32.mxu1 %vm109_vm0, %v1275_v51  ;;  %v1287_v51 = vmul.f32 %v4274_v48, %v722_v57 }
 0x24b   :  { %3408 = vmatmul.mubr.msk.f32.gmra.mrb[22].mxu1 %vm109_vm0, %v1276_v62  ;;  %v1288_v62 = vmul.f32 %v4286_v1, %v723_v59 }
 0x24c   :  { %3410 = vmatprep.mubr.msk.f32.mxu1 %vm109_vm0, %v1277_v0  ;;  %v1289_v0 = vmul.f32 %v4294_v54, %v724_v60 }
 0x24f   :  { %3411 = vmatmul.mubr.msk.f32.gmra.mrb[24].mxu1 %vm109_vm0, %v1278_v11  ;;  %v1290_v11 = vmul.f32 %v4306_v56, %v725_v52 }
 0x250   :  { %3413 = vmatprep.mubr.msk.f32.mxu1 %vm109_vm0, %v1279_v13  ;;  %v1291_v13 = vmul.f32 %v4235_v8, %v726_v4  ;;  %v729_v8 = vld [vmem:[%s5382_s5 + $0xd8] sm:$0xff] }
 0x251   :  { %v1294_v47 = vmul.f32 %v4266_v38, %v729_v8 }
 0x253   :  { %3414 = vmatmul.mubr.msk.f32.gmra.mrb[26].mxu1 %vm109_vm0, %v1280_v27  ;;  %v1292_v27 = vmul.f32 %v4246_v17, %v727_v15  ;;  %v1295_v17 = vmul.f32 %v4274_v48, %v730_v36  ;;  %v733_v48 = vld [vmem:[%s5382_s5 + $0xf8] sm:$0xff] }
 0x254   :  { %3416 = vmatprep.mubr.msk.f32.mxu1 %vm109_vm0, %v1281_v29  ;;  %v1293_v29 = vmul.f32 %v4254_v26, %v728_v25  ;;  %v731_v26 = vld [vmem:[%s5382_s5 + $0xe8] sm:$0xff]  ;;  %v1298_v53 = vmul.f32 %v4306_v56, %v733_v48 }
 0x257   :  { %3417 = vmatmul.mubr.msk.f32.gmra.mrb[28].mxu1 %vm109_vm0, %v1282_v49  ;;  %v732_v49 = vld [vmem:[%s5382_s5 + $0xf0] sm:$0xff] }
 0x258   :  { %3419 = vmatprep.mubr.msk.f32.mxu1 %vm109_vm0, %v1283_v50  ;;  %v1296_v50 = vmul.f32 %v4286_v1, %v731_v26  ;;  %v1297_v38 = vmul.f32 %v4294_v54, %v732_v49 }
 0x25b   :  { %3420 = vmatmul.mubr.msk.f32.gmra.mrb[30].mxu1 %vm109_vm0, %v1284_v35  ;;  %v4434_v35 = vpop.permute.xlu0 %1622 }
 0x25c   :  { %3422 = vmatprep.mubr.msk.f32.mxu1 %vm109_vm0, %v1285_v37 }
 0x25f   :  { %3423 = vmatmul.mubr.msk.f32.gmra.mrb[32].mxu1 %vm109_vm0, %v1286_v58  ;;  %v4436_v1 = vpop.permute.xlu0 %1662 }
 0x260   :  { %3425 = vmatprep.mubr.msk.f32.mxu1 %vm109_vm0, %v1287_v51 }
 0x263   :  { %3426 = vmatmul.mubr.msk.f32.gmra.mrb[34].mxu1 %vm109_vm0, %v1288_v62  ;;  %v4438_v37 = vpop.permute.xlu0 %1627  ;;  %v83_v62 = vld [vmem:[%s5375_s13] sm:$0x3] }
 0x264   :  { %3428 = vmatprep.mubr.msk.f32.mxu1 %vm109_vm0, %v1289_v0  ;;  %v4479_v8 = vrot.slane %v83_v62, %v3915_v6 }
 0x267   :  { %3429 = vmatmul.mubr.msk.f32.gmra.mrb[36].mxu1 %vm109_vm0, %v1290_v11  ;;  %v4440_v54 = vpop.permute.xlu0 %1667  ;;  %v4472_v11 = vrot.slane %v83_v62, %v3912_v5 }
 0x268   :  { %3431 = vmatprep.mubr.msk.f32.mxu1 %vm109_vm0, %v1291_v13 }
 0x269   :  { %v966_v13 = vmul.f32 %v4472_v11, %v4052_v39  ;;  %v965_v15 = vmul.f32 %v4472_v11, %v4026_v30  ;;  %v967_v39 = vmul.f32 %v4472_v11, %v4032_v32  ;;  %v970_v62 = vmul.f32 %v4472_v11, %v4064_v43 }
 0x26b   :  { %3432 = vmatmul.mubr.msk.f32.gmra.mrb[38].mxu1 %vm109_vm0, %v1292_v27  ;;  %v4442_v55 = vpop.permute.xlu0 %1707 }
 0x26c   :  { %3434 = vmatprep.mubr.msk.f32.mxu1 %vm109_vm0, %v1293_v29 }
 0x26f   :  { %3435 = vmatmul.mubr.msk.f32.gmra.mrb[40].mxu1 %vm109_vm0, %v1294_v47  ;;  %v4444_v57 = vpop.permute.xlu0 %1632 }
 0x270   :  { %3437 = vmatprep.mubr.msk.f32.mxu1 %vm109_vm0, %v1295_v17  ;;  %v968_v17 = vmul.f32 %v4472_v11, %v4058_v41 }
 0x273   :  { %3438 = vmatmul.mubr.msk.f32.gmra.mrb[42].mxu1 %vm109_vm0, %v1296_v50  ;;  %v4446_v58 = vpop.permute.xlu0 %1672 }
 0x274   :  { %3440 = vmatprep.mubr.msk.f32.mxu1 %vm109_vm0, %v1297_v38 }
 0x277   :  { %3441 = vmatmul.mubr.msk.f32.gmra.mrb[44].mxu1 %vm109_vm0, %v1298_v53  ;;  %v4448_v56 = vpop.permute.xlu0 %1742 }
 0x27b   :  { %v4450_v51 = vpop.permute.xlu0 %1677 }
 0x27f   :  { %v4469_v4 = vpop.permute.xlu0 %1712 }
 0x283   :  { %v4481_v36 = vpop.permute.xlu0 %1642 }
 0x2f6   :  { %v4452_v59 = vpop.f32.mrb[4].mxu1 }
 0x2f7   :  { %5393 = vst [vmem:[#allocation3_spill] sm:$0xff] %v4452_v59  ;;  %3056 = vst.msk [vmem:[%s5384_s14 + $0x8] sm:$0xff] %vm109_vm0, %v4452_v59  ;;  %v3333_v60 = vpop.f32.mrb[5].mxu1 }
 0x2f8   :  { %v4462_v0 = vpop.f32.mrb[4].mxu0 }
 0x2f9   :  { %5394 = vst [vmem:[#allocation4_spill] sm:$0xff] %v4462_v0  ;;  %3055 = vst.msk [vmem:[%s5384_s14] sm:$0xff] %vm109_vm0, %v4462_v0  ;;  %v3328_v52 = vpop.f32.mrb[5].mxu0 }
 0x2fe   :  { %v3355_v25 = vpop.f32.mrb[6].mxu1 }
 0x2ff   :  { %v974_v27 = vadd.f32 %v3355_v25, %v966_v13  ;;  %v882_v29 = vpop.f32.mrb[7].mxu1  ;;  %v4491_v13 = vpop.permute.xlu0 %1752  ;;  %v969_v25 = vmul.f32 %v4472_v11, %v4432_v3 }
 0x300   :  { %v973_v47 = vadd.f32 %v965_v15, %v882_v29 }
 0x301   :  { %vm982_vm4 = vcmp.gt.f32.partialorder %v974_v27, 0.0  ;;  %v990_v26 = vmul.f32 0.2, %v974_v27 }
 0x302   :  { %vm981_vm5 = vcmp.gt.f32.partialorder %v973_v47, 0.0  ;;  %v989_v49 = vmul.f32 0.2, %v973_v47  ;;  %v3358_v30 = vpop.f32.mrb[8].mxu1 }
 0x303   :  { %v976_v50 = vadd.f32 %v3358_v30, %v968_v17  ;;  %v892_v38 = vpop.f32.mrb[9].mxu1  ;;  %v998_v48 = vsel %vm982_vm4, %v974_v27, %v990_v26  ;;  %v972_v30 = vmul.f32 %v4472_v11, %v4070_v45 }
 0x304   :  { %v975_v53 = vadd.f32 %v967_v39, %v892_v38  ;;  %v1010_v6 = vmul.f32 %v4479_v8, %v998_v48  ;;  %v997_v60 = vsel %vm981_vm5, %v973_v47, %v989_v49 }
 0x305   :  { %vm984_vm6 = vcmp.gt.f32.partialorder %v976_v50, 0.0  ;;  %v992_v41 = vmul.f32 0.2, %v976_v50  ;;  %v1009_v52 = vmul.f32 %v4479_v8, %v997_v60 }
 0x306   :  { %vm983_vm7 = vcmp.gt.f32.partialorder %v975_v53, 0.0  ;;  %v991_v32 = vmul.f32 0.2, %v975_v53  ;;  %v3361_v15 = vpop.f32.mrb[10].mxu1  ;;  %v1020_v27 = vsel %vm109_vm0, %v1010_v6, 0.0  ;;  %v971_v6 = vmul.f32 %v4472_v11, %v4038_v34 }
 0x307   :  { %v978_v29 = vadd.f32 %v3361_v15, %v970_v62  ;;  %v902_v17 = vpop.f32.mrb[11].mxu1  ;;  %1021 = vadd.xlane.f32.xlu1 %v1020_v27  ;;  %v1017_v47 = vsel %vm109_vm0, %v1009_v52, 0.0  ;;  %v1000_v43 = vsel %vm984_vm6, %v976_v50, %v992_v41  ;;  %v4505_v15 = vpop.permute.xlu0 %1687  ;;  %v1781_v34 = vmul.f32 %v4438_v37, %v4472_v11 }
 0x308   :  { %v977_v26 = vadd.f32 %v969_v25, %v902_v17  ;;  %1018 = vadd.xlane.f32.xlu0 %v1017_v47  ;;  %v999_v39 = vsel %vm983_vm7, %v975_v53, %v991_v32  ;;  %v1012_v49 = vmul.f32 %v4479_v8, %v1000_v43  ;;  %v1780_v43 = vmul.f32 %v4434_v35, %v4472_v11 }
 0x309   :  { %vm986_vm8 = vcmp.gt.f32.partialorder %v978_v29, 0.0  ;;  %v994_v38 = vmul.f32 0.2, %v978_v29  ;;  %v1011_v48 = vmul.f32 %v4479_v8, %v999_v39 }
 0x30a   :  { %vm985_vm9 = vcmp.gt.f32.partialorder %v977_v26, 0.0  ;;  %v993_v60 = vmul.f32 0.2, %v977_v26  ;;  %v3364_v62 = vpop.f32.mrb[12].mxu1  ;;  %v1026_v50 = vsel %vm109_vm0, %v1012_v49, 0.0 }
 0x30b   :  { %v980_v41 = vadd.f32 %v3364_v62, %v972_v30  ;;  %v912_v52 = vpop.f32.mrb[13].mxu1  ;;  %v1023_v53 = vsel %vm109_vm0, %v1011_v48, 0.0  ;;  %v1002_v32 = vsel %vm986_vm8, %v978_v29, %v994_v38  ;;  %v1783_v62 = vmul.f32 %v4134_v63, %v4472_v11 }
 0x30c   :  { %v979_v45 = vadd.f32 %v971_v6, %v912_v52  ;;  %1024 = vadd.xlane.f32.xlu1 %v1023_v53  ;;  %1027 = vadd.xlane.f32.xlu0 %v1026_v50  ;;  %v1001_v25 = vsel %vm985_vm9, %v977_v26, %v993_v60  ;;  %v1014_v27 = vmul.f32 %v4479_v8, %v1002_v32  ;;  %v4520_v52 = vpop.permute.xlu0 %1722 }
 0x30d   :  { %vm988_vm10 = vcmp.gt.f32.partialorder %v980_v41, 0.0  ;;  %v996_v17 = vmul.f32 0.2, %v980_v41  ;;  %v1013_v47 = vmul.f32 %v4479_v8, %v1001_v25  ;;  %v1782_v50 = vmul.f32 %v4444_v57, %v4472_v11 }
 0x30e   :  { %vm987_vm11 = vcmp.gt.f32.partialorder %v979_v45, 0.0  ;;  %v995_v29 = vmul.f32 0.2, %v979_v45  ;;  %v3397_v39 = vpop.f32.mrb[14].mxu1  ;;  %v1032_v49 = vsel %vm109_vm0, %v1014_v27, 0.0  ;;  %v1785_v57 = vmul.f32 %v4160_v16, %v4472_v11 }
 0x30f   :  { %v1813_v30 = vadd.f32 %v3397_v39, %v1781_v34  ;;  %v1461_v38 = vpop.f32.mrb[15].mxu1  ;;  %v1029_v26 = vsel %vm109_vm0, %v1013_v47, 0.0  ;;  %v1004_v48 = vsel %vm988_vm10, %v980_v41, %v996_v17  ;;  %v1784_v39 = vmul.f32 %v4481_v36, %v4472_v11 }
 0x310   :  { %v1812_v6 = vadd.f32 %v1780_v43, %v1461_v38  ;;  %1030 = vadd.xlane.f32.xlu0 %v1029_v26  ;;  %1033 = vadd.xlane.f32.xlu1 %v1032_v49  ;;  %v1016_v37 = vmul.f32 %v4479_v8, %v1004_v48  ;;  %v1003_v60 = vsel %vm987_vm11, %v979_v45, %v995_v29 }
 0x311   :  { %vm1845_vm12 = vcmp.gt.f32.partialorder %v1813_v30, 0.0  ;;  %v1877_v35 = vmul.f32 0.2, %v1813_v30  ;;  %v1015_v45 = vmul.f32 %v4479_v8, %v1003_v60  ;;  %v1787_v16 = vmul.f32 %v4171_v21, %v4472_v11  ;;  %v1653_v60 = vpop.permute.xlu0 %1652 }
 0x312   :  { %vm1844_vm13 = vcmp.gt.f32.partialorder %v1812_v6, 0.0  ;;  %v1876_v53 = vmul.f32 0.2, %v1812_v6  ;;  %v3400_v32 = vpop.f32.mrb[16].mxu1  ;;  %v1038_v41 = vsel %vm109_vm0, %v1016_v37, 0.0 }
 0x313   :  { %v1815_v25 = vadd.f32 %v3400_v32, %v1783_v62  ;;  %v1471_v27 = vpop.f32.mrb[17].mxu1  ;;  %v1909_v34 = vsel %vm1845_vm12, %v1813_v30, %v1877_v35 }
 0x314   :  { %v1814_v17 = vadd.f32 %v1782_v50, %v1471_v27  ;;  %1039 = vadd.xlane.f32.xlu0 %v1038_v41  ;;  %v1941_v63 = vmul.f32 %v1909_v34, %v4479_v8  ;;  %v1908_v47 = vsel %vm1844_vm13, %v1812_v6, %v1876_v53  ;;  %v1035_v6 = vsel %vm109_vm0, %v1015_v45, 0.0 }
 0x315   :  { %vm1847_vm14 = vcmp.gt.f32.partialorder %v1815_v25, 0.0  ;;  %v1879_v43 = vmul.f32 0.2, %v1815_v25  ;;  %v1940_v29 = vmul.f32 %v1908_v47, %v4479_v8  ;;  %v1786_v50 = vmul.f32 %v1653_v60, %v4472_v11 }
 0x316   :  { %vm1846_vm15 = vcmp.gt.f32.partialorder %v1814_v17, 0.0  ;;  %v1878_v49 = vmul.f32 0.2, %v1814_v17  ;;  %v3403_v30 = vpop.f32.mrb[18].mxu1  ;;  %v1975_v38 = vsel %vm109_vm0, %v1941_v63, 0.0 }
 0x317   :  { %v1817_v26 = vadd.f32 %v3403_v30, %v1785_v57  ;;  %v1481_v48 = vpop.f32.mrb[19].mxu1  ;;  %1976 = vadd.xlane.f32.xlu1 %v1975_v38  ;;  %v1911_v37 = vsel %vm1847_vm14, %v1815_v25, %v1879_v43  ;;  %v1972_v32 = vsel %vm109_vm0, %v1940_v29, 0.0  ;;  %v1789_v43 = vmul.f32 %v4440_v54, %v4472_v11 }
 0x318   :  { %v1816_v62 = vadd.f32 %v1784_v39, %v1481_v48  ;;  %1036 = vadd.xlane.f32.xlu0 %v1035_v6  ;;  %v1943_v35 = vmul.f32 %v1911_v37, %v4479_v8  ;;  %v1910_v36 = vsel %vm1846_vm15, %v1814_v17, %v1878_v49  ;;  %v1788_v17 = vmul.f32 %v4436_v1, %v4472_v11 }
 0x319   :  { %vm1849_vm3 = vcmp.gt.f32.partialorder %v1817_v26, 0.0  ;;  %v1881_v53 = vmul.f32 0.2, %v1817_v26  ;;  %v1942_v34 = vmul.f32 %v1910_v36, %v4479_v8  ;;  %v1790_v54 = vmul.f32 %v4446_v58, %v4472_v11 }
 0x31a   :  { %vm1848_vm1 = vcmp.gt.f32.partialorder %v1816_v62, 0.0  ;;  %v1880_v41 = vmul.f32 0.2, %v1816_v62  ;;  %v3406_v27 = vpop.f32.mrb[20].mxu1  ;;  %v1981_v25 = vsel %vm109_vm0, %v1943_v35, 0.0 }
 0x31b   :  { %v1819_v21 = vadd.f32 %v3406_v27, %v1787_v16  ;;  %v1491_v45 = vpop.f32.mrb[21].mxu1  ;;  %1973 = vadd.xlane.f32.xlu1 %v1972_v32  ;;  %v1913_v63 = vsel %vm1849_vm3, %v1817_v26, %v1881_v53  ;;  %v1978_v38 = vsel %vm109_vm0, %v1942_v34, 0.0 }
 0x31c   :  { %v1818_v47 = vadd.f32 %v1786_v50, %v1491_v45  ;;  %1982 = vadd.xlane.f32.xlu0 %v1981_v25  ;;  %v1912_v57 = vsel %vm1848_vm1, %v1816_v62, %v1880_v41  ;;  %v1945_v26 = vmul.f32 %v1913_v63, %v4479_v8  ;;  %v1791_v62 = vmul.f32 %v4450_v51, %v4472_v11  ;;  %v4552_v50 = vpop.permute.xlu0 %1762 }
 0x31d   :  { %vm1851_vm2 = vcmp.gt.f32.partialorder %v1819_v21, 0.0  ;;  %v1883_v29 = vmul.f32 0.2, %v1819_v21  ;;  %v1944_v39 = vmul.f32 %v1912_v57, %v4479_v8 }
 0x31e   :  { %vm1850_vm4 = vcmp.gt.f32.partialorder %v1818_v47, 0.0  ;;  %v1882_v49 = vmul.f32 0.2, %v1818_v47  ;;  %v3409_v30 = vpop.f32.mrb[22].mxu1  ;;  %v1987_v41 = vsel %vm109_vm0, %v1945_v26, 0.0 }
 0x31f   :  { %v1821_v48 = vadd.f32 %v3409_v30, %v1789_v43  ;;  %v1501_v6 = vpop.f32.mrb[23].mxu1  ;;  %1979 = vadd.xlane.f32.xlu1 %v1978_v38  ;;  %v1984_v1 = vsel %vm109_vm0, %v1944_v39, 0.0  ;;  %v1915_v37 = vsel %vm1851_vm2, %v1819_v21, %v1883_v29 }
 0x320   :  { %v1820_v16 = vadd.f32 %v1788_v17, %v1501_v6  ;;  %1985 = vadd.xlane.f32.xlu0 %v1984_v1  ;;  %v1914_v60 = vsel %vm1850_vm4, %v1818_v47, %v1882_v49  ;;  %v1947_v27 = vmul.f32 %v1915_v37, %v4479_v8  ;;  %v1792_v17 = vmul.f32 %v4155_v14, %v4472_v11  ;;  %v1698_v6 = vpop.permute.xlu0 %1697 }
 0x321   :  { %vm1853_vm5 = vcmp.gt.f32.partialorder %v1821_v48, 0.0  ;;  %v1885_v35 = vmul.f32 0.2, %v1821_v48  ;;  %v1946_v36 = vmul.f32 %v1914_v60, %v4479_v8  ;;  %v1793_v47 = vmul.f32 %v4505_v15, %v4472_v11 }
 0x322   :  { %vm1852_vm6 = vcmp.gt.f32.partialorder %v1820_v16, 0.0  ;;  %v1884_v53 = vmul.f32 0.2, %v1820_v16  ;;  %v3412_v32 = vpop.f32.mrb[24].mxu1  ;;  %v1993_v39 = vsel %vm109_vm0, %v1947_v27, 0.0  ;;  %v1794_v37 = vmul.f32 %v4169_v20, %v4472_v11 }
 0x323   :  { %v1823_v58 = vadd.f32 %v3412_v32, %v1791_v62  ;;  %v1511_v25 = vpop.f32.mrb[25].mxu1  ;;  %1988 = vadd.xlane.f32.xlu1 %v1987_v41  ;;  %v1990_v34 = vsel %vm109_vm0, %v1946_v36, 0.0  ;;  %v1917_v21 = vsel %vm1853_vm5, %v1821_v48, %v1885_v35 }
 0x324   :  { %v1822_v51 = vadd.f32 %v1790_v54, %v1511_v25  ;;  %1991 = vadd.xlane.f32.xlu0 %v1990_v34  ;;  %v1949_v45 = vmul.f32 %v1917_v21, %v4479_v8  ;;  %v1916_v63 = vsel %vm1852_vm6, %v1820_v16, %v1884_v53  ;;  %v1795_v54 = vmul.f32 %v1698_v6, %v4472_v11 }
 0x325   :  { %vm1855_vm7 = vcmp.gt.f32.partialorder %v1823_v58, 0.0  ;;  %v1887_v57 = vmul.f32 0.2, %v1823_v58  ;;  %v1948_v48 = vmul.f32 %v1916_v63, %v4479_v8  ;;  %v1797_v25 = vmul.f32 %v4442_v55, %v4472_v11 }
 0x326   :  { %vm1854_vm8 = vcmp.gt.f32.partialorder %v1822_v51, 0.0  ;;  %v1886_v43 = vmul.f32 0.2, %v1822_v51  ;;  %v3415_v29 = vpop.f32.mrb[26].mxu1  ;;  %v1999_v49 = vsel %vm109_vm0, %v1949_v45, 0.0 }
 0x327   :  { %v1825_v30 = vadd.f32 %v3415_v29, %v1793_v47  ;;  %v1521_v38 = vpop.f32.mrb[27].mxu1  ;;  %1994 = vadd.xlane.f32.xlu1 %v1993_v39  ;;  %v1919_v26 = vsel %vm1855_vm7, %v1823_v58, %v1887_v57  ;;  %v1996_v41 = vsel %vm109_vm0, %v1948_v48, 0.0 }
 0x328   :  { %v1824_v14 = vadd.f32 %v1792_v17, %v1521_v38  ;;  %2000 = vadd.xlane.f32.xlu0 %v1999_v49  ;;  %v1951_v15 = vmul.f32 %v1919_v26, %v4479_v8  ;;  %v1918_v1 = vsel %vm1854_vm8, %v1822_v51, %v1886_v43  ;;  %v1796_v51 = vmul.f32 %v4129_v61, %v4472_v11 }
 0x329   :  { %vm1857_vm9 = vcmp.gt.f32.partialorder %v1825_v30, 0.0  ;;  %v1889_v16 = vmul.f32 0.2, %v1825_v30  ;;  %v1950_v36 = vmul.f32 %v1918_v1, %v4479_v8  ;;  %v1798_v26 = vmul.f32 %v4469_v4, %v4472_v11 }
 0x32a   :  { %vm1856_vm10 = vcmp.gt.f32.partialorder %v1824_v14, 0.0  ;;  %v1888_v60 = vmul.f32 0.2, %v1824_v14  ;;  %v3418_v62 = vpop.f32.mrb[28].mxu1  ;;  %v2005_v35 = vsel %vm109_vm0, %v1951_v15, 0.0  ;;  %v1801_v4 = vmul.f32 %v4167_v19, %v4472_v11 }
 0x32b   :  { %v1827_v53 = vadd.f32 %v3418_v62, %v1795_v54  ;;  %v1531_v32 = vpop.f32.mrb[29].mxu1  ;;  %2006 = vadd.xlane.f32.xlu1 %v2005_v35  ;;  %v1921_v20 = vsel %vm1857_vm9, %v1825_v30, %v1889_v16  ;;  %v2002_v17 = vsel %vm109_vm0, %v1950_v36, 0.0  ;;  %v1799_v30 = vmul.f32 %v4147_v9, %v4472_v11 }
 0x32c   :  { %v1826_v27 = vadd.f32 %v1794_v37, %v1531_v32  ;;  %1997 = vadd.xlane.f32.xlu0 %v1996_v41  ;;  %v1920_v58 = vsel %vm1856_vm10, %v1824_v14, %v1888_v60  ;;  %v1953_v29 = vmul.f32 %v1921_v20, %v4479_v8  ;;  %v1800_v36 = vmul.f32 %v4520_v52, %v4472_v11 }
 0x32d   :  { %vm1859_vm11 = vcmp.gt.f32.partialorder %v1827_v53, 0.0  ;;  %v1891_v34 = vmul.f32 0.2, %v1827_v53  ;;  %v1952_v21 = vmul.f32 %v1920_v58, %v4479_v8  ;;  %v1803_v52 = vmul.f32 %v4175_v23, %v4472_v11 }
 0x32e   :  { %vm1858_vm12 = vcmp.gt.f32.partialorder %v1826_v27, 0.0  ;;  %v1890_v45 = vmul.f32 0.2, %v1826_v27  ;;  %v3421_v63 = vpop.f32.mrb[30].mxu1  ;;  %v2011_v37 = vsel %vm109_vm0, %v1953_v29, 0.0 }
 0x32f   :  { %v1829_v47 = vadd.f32 %v3421_v63, %v1797_v25  ;;  %v1541_v57 = vpop.f32.mrb[31].mxu1  ;;  %v2008_v43 = vsel %vm109_vm0, %v1952_v21, 0.0  ;;  %v1923_v39 = vsel %vm1859_vm11, %v1827_v53, %v1891_v34 }
 0x330   :  { %v1828_v55 = vadd.f32 %v1796_v51, %v1541_v57  ;;  %2003 = vadd.xlane.f32.xlu0 %v2002_v17  ;;  %2009 = vadd.xlane.f32.xlu1 %v2008_v43  ;;  %v1922_v49 = vsel %vm1858_vm12, %v1826_v27, %v1890_v45  ;;  %v1955_v14 = vmul.f32 %v1923_v39, %v4479_v8  ;;  %v1733_v45 = vpop.permute.xlu0 %1732 }
 0x331   :  { %vm1861_vm13 = vcmp.gt.f32.partialorder %v1829_v47, 0.0  ;;  %v1893_v61 = vmul.f32 0.2, %v1829_v47  ;;  %v1954_v38 = vmul.f32 %v1922_v49, %v4479_v8  ;;  %v1802_v17 = vmul.f32 %v1733_v45, %v4472_v11 }
 0x332   :  { %vm1860_vm14 = vcmp.gt.f32.partialorder %v1828_v55, 0.0  ;;  %v1892_v48 = vmul.f32 0.2, %v1828_v55  ;;  %v3424_v6 = vpop.f32.mrb[32].mxu1  ;;  %v2017_v41 = vsel %vm109_vm0, %v1955_v14, 0.0 }
 0x333   :  { %v1831_v15 = vadd.f32 %v3424_v6, %v1799_v30  ;;  %v1551_v1 = vpop.f32.mrb[33].mxu1  ;;  %v2014_v54 = vsel %vm109_vm0, %v1954_v38, 0.0  ;;  %v1925_v60 = vsel %vm1861_vm13, %v1829_v47, %v1893_v61  ;;  %v1804_v6 = vmul.f32 %v4448_v56, %v4472_v11 }
 0x334   :  { %v1830_v16 = vadd.f32 %v1798_v26, %v1551_v1  ;;  %2012 = vadd.xlane.f32.xlu0 %v2011_v37  ;;  %2015 = vadd.xlane.f32.xlu1 %v2014_v54  ;;  %v1924_v9 = vsel %vm1860_vm14, %v1828_v55, %v1892_v48  ;;  %v1957_v25 = vmul.f32 %v1925_v60, %v4479_v8 }
 0x335   :  { %vm1863_vm15 = vcmp.gt.f32.partialorder %v1831_v15, 0.0  ;;  %v1895_v62 = vmul.f32 0.2, %v1831_v15  ;;  %v1956_v35 = vmul.f32 %v1924_v9, %v4479_v8  ;;  %v1805_v26 = vmul.f32 %v4142_v7, %v4472_v11 }
 0x336   :  { %vm1862_vm3 = vcmp.gt.f32.partialorder %v1830_v16, 0.0  ;;  %v1894_v53 = vmul.f32 0.2, %v1830_v16  ;;  %v3427_v32 = vpop.f32.mrb[34].mxu1  ;;  %v2023_v55 = vsel %vm109_vm0, %v1957_v25, 0.0  ;;  %v1811_v25 = vmul.f32 %v4177_v24, %v4472_v11 }
 0x337   :  { %v1833_v27 = vadd.f32 %v3427_v32, %v1801_v4  ;;  %v1561_v58 = vpop.f32.mrb[35].mxu1  ;;  %v2020_v20 = vsel %vm109_vm0, %v1956_v35, 0.0  ;;  %v1927_v34 = vsel %vm1863_vm15, %v1831_v15, %v1895_v62  ;;  %v1807_v4 = vmul.f32 %v4165_v18, %v4472_v11 }
 0x338   :  { %v1832_v19 = vadd.f32 %v1800_v36, %v1561_v58  ;;  %2018 = vadd.xlane.f32.xlu0 %v2017_v41  ;;  %2021 = vadd.xlane.f32.xlu1 %v2020_v20  ;;  %v1959_v21 = vmul.f32 %v1927_v34, %v4479_v8  ;;  %v1926_v51 = vsel %vm1862_vm3, %v1830_v16, %v1894_v53 }
 0x339   :  { %vm1865_vm1 = vcmp.gt.f32.partialorder %v1833_v27, 0.0  ;;  %v1897_v63 = vmul.f32 0.2, %v1833_v27  ;;  %v1958_v49 = vmul.f32 %v1926_v51, %v4479_v8  ;;  %v1806_v62 = vmul.f32 %v4491_v13, %v4472_v11 }
 0x33a   :  { %vm1864_vm2 = vcmp.gt.f32.partialorder %v1832_v19, 0.0  ;;  %v1896_v47 = vmul.f32 0.2, %v1832_v19  ;;  %v3430_v57 = vpop.f32.mrb[36].mxu1  ;;  %v2029_v43 = vsel %vm109_vm0, %v1959_v21, 0.0  ;;  %v1809_v18 = vmul.f32 %v4173_v22, %v4472_v11 }
 0x33b   :  { %v1835_v29 = vadd.f32 %v3430_v57, %v1803_v52  ;;  %v1571_v39 = vpop.f32.mrb[37].mxu1  ;;  %v1929_v30 = vsel %vm1865_vm1, %v1833_v27, %v1897_v63  ;;  %v2026_v16 = vsel %vm109_vm0, %v1958_v49, 0.0  ;;  %v1808_v52 = vmul.f32 %v4552_v50, %v4472_v11  ;;  %v55_v50 = vld [vmem:[%s5385_s11] sm:$0xff]  ;;  %v56_v49 = vld [vmem:[%s5385_s11 + $0x8] sm:$0xff] }
 0x33c   :  { %v1834_v61 = vadd.f32 %v1802_v17, %v1571_v39  ;;  %2024 = vadd.xlane.f32.xlu0 %v2023_v55  ;;  %2030 = vadd.xlane.f32.xlu1 %v2029_v43  ;;  %v1961_v23 = vmul.f32 %v1929_v30, %v4479_v8  ;;  %v1928_v38 = vsel %vm1864_vm2, %v1832_v19, %v1896_v47  ;;  %v1773_v17 = vpop.permute.xlu0 %1772 }
 0x33d   :  { %v1899_v48 = vmul.f32 0.2, %v1835_v29  ;;  %vm1867_vm5 = vcmp.gt.f32.partialorder %v1835_v29, 0.0  ;;  %v1960_v9 = vmul.f32 %v1928_v38, %v4479_v8  ;;  %v3526_v38 = vpack.c.bf16 %v56_v49, %v55_v50 }
 0x33e   :  { %vm1866_vm4 = vcmp.gt.f32.partialorder %v1834_v61, 0.0  ;;  %v1898_v14 = vmul.f32 0.2, %v1834_v61  ;;  %v3433_v15 = vpop.f32.mrb[38].mxu1  ;;  %v2035_v1 = vsel %vm109_vm0, %v1961_v23, 0.0  ;;  %v3810_v23 = vmov 0.0|0.0  }
 0x33f   :  { %v1837_v37 = vadd.f32 %v3433_v15, %v1805_v26  ;;  %v1581_v54 = vpop.f32.mrb[39].mxu1  ;;  %v1931_v53 = vsel %vm1867_vm5, %v1835_v29, %v1899_v48  ;;  %v2032_v27 = vsel %vm109_vm0, %v1960_v9, 0.0  ;;  %3525 = vmatprep.subr.bf16.mxu0 %v3810_v23  ;;  %v1810_v26 = vmul.f32 %v1773_v17, %v4472_v11  ;;  %v57_v15 = vld [vmem:[%s5385_s11 + $0x10] sm:$0xff]  ;;  %v58_v11 = vld [vmem:[%s5385_s11 + $0x18] sm:$0xff]  ;;  %v63_v17 = vld [vmem:[%s5379_s12 + $0x20] sm:$0xff] }
 0x340   :  { %v1836_v60 = vadd.f32 %v1804_v6, %v1581_v54  ;;  %2027 = vadd.xlane.f32.xlu0 %v2026_v16  ;;  %2036 = vadd.xlane.f32.xlu1 %v2035_v1  ;;  %v1930_v7 = vsel %vm1866_vm4, %v1834_v61, %v1898_v14  ;;  %v1963_v51 = vmul.f32 %v1931_v53, %v4479_v8  ;;  %v68_v53 = vld [vmem:[%s5379_s12 + $0x48] sm:$0xff] }
 0x341   :  { %vm1869_vm6 = vcmp.gt.f32.partialorder %v1837_v37, 0.0  ;;  %v1901_v56 = vmul.f32 0.2, %v1837_v37  ;;  %v1962_v58 = vmul.f32 %v1930_v7, %v4479_v8  ;;  %3527 = vmatpush3.bf16.msra.mxu0 %v3526_v38 }
 0x342   :  { %vm1868_vm7 = vcmp.gt.f32.partialorder %v1836_v60, 0.0  ;;  %v1900_v35 = vmul.f32 0.2, %v1836_v60  ;;  %v3436_v36 = vpop.f32.mrb[40].mxu1  ;;  %v2041_v61 = vsel %vm109_vm0, %v1963_v51, 0.0  ;;  %3528 = vmatprep.subr.bf16.mxu0 %v3810_v23 }
 0x343   :  { %v1839_v32 = vadd.f32 %v3436_v36, %v1807_v4  ;;  %v1591_v41 = vpop.f32.mrb[41].mxu1  ;;  %v1933_v20 = vsel %vm1869_vm6, %v1837_v37, %v1901_v56  ;;  %v2038_v57 = vsel %vm109_vm0, %v1962_v58, 0.0  ;;  %v3529_v56 = vpack.c.bf16 %v58_v11, %v57_v15  ;;  %v67_v36 = vld [vmem:[%s5379_s12 + $0x40] sm:$0xff] }
 0x344   :  { %v1838_v34 = vadd.f32 %v1806_v62, %v1591_v41  ;;  %2033 = vadd.xlane.f32.xlu0 %v2032_v27  ;;  %v1932_v13 = vsel %vm1868_vm7, %v1836_v60, %v1900_v35  ;;  %v1965_v22 = vmul.f32 %v1933_v20, %v4479_v8  ;;  %v4659_v58 = vpack.c.bf16 %v68_v53, %v67_v36  ;;  %v53_v20 = vld [vmem:[%s5386_s3] sm:$0x3]  ;;  %s3814_s3 = smov 96  }
 0x345   :  { %vm1871_vm8 = vcmp.gt.f32.partialorder %v1839_v32, 0.0  ;;  %v1903_v19 = vmul.f32 0.2, %v1839_v32  ;;  %v1964_v21 = vmul.f32 %v1932_v13, %v4479_v8  ;;  %3530 = vmatpush3.bf16.msra.mxu0 %v3529_v56  ;;  %v69_v13 = vld [vmem:[%s5379_s12 + $0x50] sm:$0xff] }
 0x346   :  { %vm1870_vm9 = vcmp.gt.f32.partialorder %v1838_v34, 0.0  ;;  %v1902_v45 = vmul.f32 0.2, %v1838_v34  ;;  %v3439_v63 = vpop.f32.mrb[42].mxu1  ;;  %v2047_v14 = vsel %vm109_vm0, %v1965_v22, 0.0  ;;  %3540 = vmatprep.subr.bf16.mxu0 %v4659_v58 }
 0x347   :  { %v1841_v47 = vadd.f32 %v3439_v63, %v1809_v18  ;;  %v1601_v24 = vpop.f32.mrb[43].mxu1  ;;  %v2044_v43 = vsel %vm109_vm0, %v1964_v21, 0.0  ;;  %v1935_v55 = vsel %vm1871_vm8, %v1839_v32, %v1903_v19  ;;  %v70_v19 = vld [vmem:[%s5379_s12 + $0x58] sm:$0xff] }
 0x348   :  { %v1840_v29 = vadd.f32 %v1808_v52, %v1601_v24  ;;  %2039 = vadd.xlane.f32.xlu0 %v2038_v57  ;;  %2045 = vadd.xlane.f32.xlu1 %v2044_v43  ;;  %v1934_v39 = vsel %vm1870_vm9, %v1838_v34, %v1902_v45  ;;  %v1967_v16 = vmul.f32 %v1935_v55, %v4479_v8  ;;  %vm643_vm9 = vcmask 7168  }
 0x349   :  { %vm1873_vm10 = vcmp.gt.f32.partialorder %v1841_v47, 0.0  ;;  %v1905_v30 = vmul.f32 0.2, %v1841_v47  ;;  %v1966_v54 = vmul.f32 %v1934_v39, %v4479_v8  ;;  %3343 = vmatmul.mubr.msk.f32.vlgmr.msra.gmra.mrb[6].mxu0 %vm109_vm0, %v53_v20  ;;  %v4678_v45 = vpack.c.bf16 %v70_v19, %v69_v13 }
 0x34a   :  { %vm1872_vm11 = vcmp.gt.f32.partialorder %v1840_v29, 0.0  ;;  %v1904_v48 = vmul.f32 0.2, %v1840_v29  ;;  %v3442_v6 = vpop.f32.mrb[44].mxu1  ;;  %v2053_v41 = vsel %vm109_vm0, %v1967_v16, 0.0  ;;  %3542 = vmatpush3.bf16.msra.mxu0 %v4659_v58 }
 0x34b   :  { %v1843_v1 = vadd.f32 %v3442_v6, %v1811_v25  ;;  %v1611_v37 = vpop.f32.mrb[45].mxu1  ;;  %v1937_v9 = vsel %vm1873_vm10, %v1841_v47, %v1905_v30  ;;  %v2050_v32 = vsel %vm109_vm0, %v1966_v54, 0.0  ;;  %3544 = vmatprep.subr.bf16.mxu0 %v4678_v45 }
 0x34c   :  { %v1842_v60 = vadd.f32 %v1810_v26, %v1611_v37  ;;  %2048 = vadd.xlane.f32.xlu0 %v2047_v14  ;;  %2042 = vadd.xlane.f32.xlu1 %v2041_v61  ;;  %v1936_v7 = vsel %vm1872_vm11, %v1840_v29, %v1904_v48  ;;  %v1969_v35 = vmul.f32 %v1937_v9, %v4479_v8 }
 0x34d   :  { %vm1875_vm12 = vcmp.gt.f32.partialorder %v1843_v1, 0.0  ;;  %v1907_v4 = vmul.f32 0.2, %v1843_v1  ;;  %v1968_v27 = vmul.f32 %v1936_v7, %v4479_v8 }
 0x34e   :  { %vm1874_vm13 = vcmp.gt.f32.partialorder %v1842_v60, 0.0  ;;  %v1906_v62 = vmul.f32 0.2, %v1842_v60  ;;  %v2059_v34 = vsel %vm109_vm0, %v1969_v35, 0.0  ;;  %3546 = vmatpush3.bf16.msra.mxu0 %v4678_v45 }
 0x34f   :  { %v1939_v25 = vsel %vm1875_vm12, %v1843_v1, %v1907_v4  ;;  %v2056_v21 = vsel %vm109_vm0, %v1968_v27, 0.0  ;;  %vm3076_vm12 = vcmask 785920  }
 0x350   :  { %2051 = vadd.xlane.f32.xlu0 %v2050_v32  ;;  %2054 = vadd.xlane.f32.xlu1 %v2053_v41  ;;  %v1938_v18 = vsel %vm1874_vm13, %v1842_v60, %v1906_v62  ;;  %v1971_v52 = vmul.f32 %v1939_v25, %v4479_v8  ;;  %vm3089_vm13 = vcmask 1048320  }
 0x351   :  { %v1970_v51 = vmul.f32 %v1938_v18, %v4479_v8  ;;  %v64_v8 = vld [vmem:[%s5379_s12 + $0x28] sm:$0xff] }
 0x352   :  { %v2065_v22 = vsel %vm109_vm0, %v1971_v52, 0.0  ;;  %v4690_v47 = vpack.c.bf16 %v64_v8, %v63_v17 }
 0x353   :  { %v2062_v63 = vsel %vm109_vm0, %v1970_v51, 0.0 }
 0x354   :  { %2057 = vadd.xlane.f32.xlu0 %v2056_v21  ;;  %2060 = vadd.xlane.f32.xlu1 %v2059_v34 }
 0x355   :  { %3548 = vmatprep.subr.bf16.mxu0 %v4690_v47 }
 0x358   :  { %2063 = vadd.xlane.f32.xlu0 %v2062_v63  ;;  %2066 = vadd.xlane.f32.xlu1 %v2065_v22 }
 0x394   :  { %v1022_v24 = vpop.xlane.xlu1 %1021 }
 0x395   :  { %v1019_v57 = vpop.xlane.xlu0 %1018 }
 0x399   :  { %v1028_v43 = vpop.xlane.xlu0 %1027  ;;  %v1025_v29 = vpop.xlane.xlu1 %1024 }
 0x39d   :  { %v1031_v39 = vpop.xlane.xlu0 %1030  ;;  %v1034_v55 = vpop.xlane.xlu1 %1033 }
 0x39e   :  { %v1044_v49 = vmax.f32 %v1022_v24, %v1034_v55  ;;  %v1041_v15 = vmax.f32 %v1019_v57, %v1031_v39 }
 0x3a1   :  { %v1040_v50 = vpop.xlane.xlu0 %1039 }
 0x3a2   :  { %v1045_v30 = vmax.f32 %v1028_v43, %v1040_v50 }
 0x3a4   :  { %v1046_v61 = vmax.f32 %v1044_v49, %v1045_v30  ;;  %v4693_v23 = vpop.xlane.xlu1 %1976 }
 0x3a5   :  { %v1037_v38 = vpop.xlane.xlu0 %1036 }
 0x3a6   :  { %v1048_v26 = vsub.f32 %v1022_v24, %v1046_v61  ;;  %v1050_v48 = vsub.f32 %v1028_v43, %v1046_v61  ;;  %v1052_v6 = vsub.f32 %v1034_v55, %v1046_v61  ;;  %v1054_v14 = vsub.f32 %v1040_v50, %v1046_v61 }
 0x3a7   :  { %v1042_v1 = vmax.f32 %v1025_v29, %v1037_v38 }
 0x3a8   :  { %v1057_v37 = vmul.f32 1.442695, %v1048_v26  ;;  %v1061_v54 = vmul.f32 1.442695, %v1050_v48  ;;  %v4695_v16 = vpop.xlane.xlu1 %1973  ;;  %v1065_v9 = vmul.f32 1.442695, %v1052_v6 }
 0x3a9   :  { %v1043_v11 = vmax.f32 %v1041_v15, %v1042_v1  ;;  %v4697_v60 = vpop.xlane.xlu0 %1982  ;;  %v1069_v7 = vmul.f32 1.442695, %v1054_v14 }
 0x3aa   :  { %3633 = vpow2.f32 %v1057_v37 }
 0x3ab   :  { %3635 = vpow2.f32 %v1061_v54  ;;  %v1047_v4 = vsub.f32 %v1019_v57, %v1043_v11  ;;  %v1049_v56 = vsub.f32 %v1025_v29, %v1043_v11  ;;  %v1051_v62 = vsub.f32 %v1031_v39, %v1043_v11 }
 0x3ac   :  { %v1053_v35 = vsub.f32 %v1037_v38, %v1043_v11  ;;  %v4699_v36 = vpop.xlane.xlu1 %1979  ;;  %3637 = vpow2.f32 %v1065_v9  ;;  %v4732_v9 = vld [vmem:[%s5380_s4 + $0x8] sm:$0xff] }
 0x3ad   :  { %v1055_v53 = vmul.f32 1.442695, %v1047_v4  ;;  %v1059_v32 = vmul.f32 1.442695, %v1049_v56  ;;  %v4701_v41 = vpop.xlane.xlu0 %1985  ;;  %3639 = vpow2.f32 %v1069_v7  ;;  %v1063_v27 = vmul.f32 1.442695, %v1051_v62 }
 0x3ae   :  { %v1067_v20 = vmul.f32 1.442695, %v1053_v35  ;;  %v4738_v7 = vld [vmem:[%s5380_s4 + $0x18] sm:$0xff] }
 0x3af   :  { %3641 = vpow2.f32 %v1055_v53 }
 0x3b0   :  { %3643 = vpow2.f32 %v1059_v32  ;;  %v4703_v18 = vpop.xlane.xlu1 %1988 }
 0x3b1   :  { %v4705_v25 = vpop.xlane.xlu0 %1991  ;;  %3645 = vpow2.f32 %v1063_v27 }
 0x3b2   :  { %3647 = vpow2.f32 %v1067_v20 }
 0x3b4   :  { %v3634_v34 = vpop.eup %3633  ;;  %v4707_v13 = vpop.xlane.xlu1 %1994 }
 0x3b5   :  { %v3636_v19 = vpop.eup %3635  ;;  %v4709_v21 = vpop.xlane.xlu0 %2000 }
 0x3b6   :  { %v1074_v51 = vadd.f32 %v3636_v19, %v3634_v34  ;;  %v3638_v52 = vpop.eup %3637 }
 0x3b7   :  { %v3640_v63 = vpop.eup %3639 }
 0x3b8   :  { %v1075_v22 = vadd.f32 %v3638_v52, %v1074_v51  ;;  %v4711_v17 = vpop.xlane.xlu1 %2006 }
 0x3b9   :  { %v3642_v8 = vpop.eup %3641  ;;  %v4713_v24 = vpop.xlane.xlu0 %1997 }
 0x3ba   :  { %v3644_v57 = vpop.eup %3643  ;;  %v1076_v43 = vadd.f32 %v3640_v63, %v1075_v22 }
 0x3bb   :  { %v1071_v29 = vadd.f32 %v3644_v57, %v3642_v8  ;;  %v3646_v39 = vpop.eup %3645 }
 0x3bc   :  { %3649 = vrcp.f32 %v1076_v43  ;;  %v3648_v30 = vpop.eup %3647  ;;  %v4756_v43 = vld [vmem:[%s5380_s4] sm:$0xff] }
 0x3bd   :  { %v1072_v55 = vadd.f32 %v3646_v39, %v1071_v29  ;;  %v4715_v50 = vpop.xlane.xlu0 %2003  ;;  %v4717_v49 = vpop.xlane.xlu1 %2009 }
 0x3bf   :  { %v1073_v61 = vadd.f32 %v3648_v30, %v1072_v55 }
 0x3c1   :  { %3651 = vrcp.f32 %v1073_v61  ;;  %v4719_v38 = vpop.xlane.xlu0 %2012  ;;  %v4721_v26 = vpop.xlane.xlu1 %2015 }
 0x3c5   :  { %v4723_v48 = vpop.xlane.xlu0 %2018  ;;  %v4725_v6 = vpop.xlane.xlu1 %2021 }
 0x3c6   :  { %v3650_v14 = vpop.eup %3649 }
 0x3c7   :  { %v1080_v15 = vmul.f32 %v3650_v14, %v3634_v34  ;;  %v1082_v1 = vmul.f32 %v3650_v14, %v3636_v19  ;;  %v1084_v54 = vmul.f32 %v3650_v14, %v3638_v52  ;;  %v1086_v19 = vmul.f32 %v3650_v14, %v3640_v63  ;;  %v4750_v52 = vld [vmem:[%s5380_s4 + $0x28] sm:$0xff]  ;;  %v4762_v63 = vld [vmem:[%s5380_s4 + $0x10] sm:$0xff] }
 0x3c9   :  { %v4727_v37 = vpop.xlane.xlu0 %2024  ;;  %v1088_v11 = vmul.f32 %v4732_v9, %v1080_v15  ;;  %v1090_v4 = vmul.f32 %v4738_v7, %v1082_v1  ;;  %v4741_v62 = vpop.xlane.xlu1 %2030  ;;  %v1092_v22 = vmul.f32 %v4750_v52, %v1084_v54 }
 0x3cb   :  { %v3652_v56 = vpop.eup %3651  ;;  %v1102_v35 = vsel %vm109_vm0, %v1088_v11, 0.0  ;;  %v1103_v53 = vsel %vm109_vm0, %v1090_v4, 0.0  ;;  %v4786_v4 = vld [vmem:[%s5380_s4 + $0x38] sm:$0xff] }
 0x3cc   :  { %v1079_v32 = vmul.f32 %v3652_v56, %v3642_v8  ;;  %v1081_v27 = vmul.f32 %v3652_v56, %v3644_v57  ;;  %v1083_v20 = vmul.f32 %v3652_v56, %v3646_v39  ;;  %v1085_v34 = vmul.f32 %v3652_v56, %v3648_v30  ;;  %v4768_v39 = vld [vmem:[%s5380_s4 + $0x20] sm:$0xff]  ;;  %v4774_v30 = vld [vmem:[%s5380_s4 + $0x30] sm:$0xff]  ;;  %s3813_s4 = smov 64  }
 0x3cd   :  { %v4745_v51 = vpop.xlane.xlu0 %2027  ;;  %v1104_v29 = vadd.f32 %v1103_v53, %v1102_v35  ;;  %v4779_v1 = vpop.xlane.xlu1 %2036  ;;  %v1094_v56 = vmul.f32 %v4786_v4, %v1086_v19  ;;  %v1105_v35 = vsel %vm109_vm0, %v1092_v22, 0.0  ;;  %v2068_v53 = vmax.f32 %v4695_v16, %v4713_v24 }
 0x3ce   :  { %v1087_v8 = vmul.f32 %v4756_v43, %v1079_v32  ;;  %v1089_v57 = vmul.f32 %v4762_v63, %v1081_v27  ;;  %v1091_v55 = vmul.f32 %v4768_v39, %v1083_v20  ;;  %v1093_v61 = vmul.f32 %v4774_v30, %v1085_v34  ;;  %v65_v34 = vld [vmem:[%s5379_s12 + $0x30] sm:$0xff] }
 0x3cf   :  { %v1106_v27 = vadd.f32 %v1105_v35, %v1104_v29  ;;  %v2071_v22 = vmax.f32 %v4693_v23, %v4709_v21 }
 0x3d0   :  { %v1095_v14 = vsel %vm109_vm0, %v1087_v8, 0.0  ;;  %v1096_v15 = vsel %vm109_vm0, %v1089_v57, 0.0  ;;  %v1098_v32 = vsel %vm109_vm0, %v1091_v55, 0.0  ;;  %v66_v8 = vld [vmem:[%s5379_s12 + $0x38] sm:$0xff]  ;;  %v2069_v57 = vmax.f32 %v2068_v53, %v4725_v6 }
 0x3d1   :  { %v4781_v54 = vpop.xlane.xlu0 %2033  ;;  %v1097_v11 = vadd.f32 %v1096_v15, %v1095_v14  ;;  %v1100_v19 = vsel %vm109_vm0, %v1093_v61, 0.0  ;;  %v1107_v15 = vsel %vm109_vm0, %v1094_v56, 0.0  ;;  %v2072_v0 = vmax.f32 %v2071_v22, %v4727_v37 }
 0x3d2   :  { %v1108_v35 = vadd.f32 %v1107_v15, %v1106_v27  ;;  %v4820_v27 = vld [vmem:[%s5373_s0] sm:$0xff] }
 0x3d3   :  { %v1099_v20 = vadd.f32 %v1098_v32, %v1097_v11  ;;  %v4806_v32 = vpack.c.bf16 %v66_v8, %v65_v34  ;;  %v2077_v8 = vmax.f32 %v4697_v60, %v4711_v17 }
 0x3d5   :  { %v4803_v14 = vpop.xlane.xlu0 %2039  ;;  %v1101_v55 = vadd.f32 %v1100_v19, %v1099_v20  ;;  %v2046_v29 = vpop.xlane.xlu1 %2045  ;;  %v2078_v15 = vmax.f32 %v2077_v8, %v4741_v62 }
 0x3d6   :  { %v2070_v11 = vmax.f32 %v2069_v57, %v2046_v29  ;;  %v2074_v57 = vmax.f32 %v4699_v36, %v4715_v50 }
 0x3d7   :  { %3373 = vmatprep.mubr.msk.f32.mxu0 %vm109_vm0, %v1101_v55 }
 0x3d8   :  { %v2092_v53 = vsub.f32 %v4695_v16, %v2070_v11  ;;  %v2100_v61 = vsub.f32 %v4713_v24, %v2070_v11  ;;  %v2108_v59 = vsub.f32 %v4725_v6, %v2070_v11  ;;  %v2116_v5 = vsub.f32 %v2046_v29, %v2070_v11  ;;  %3374 = vmatmul.mubr.msk.f32.vlgmr.msra.gmra.mrb[8].mxu0 %vm109_vm0, %v1108_v35 }
 0x3d9   :  { %3550 = vmatpush3.bf16.msra.mxu0 %v4690_v47  ;;  %v2049_v56 = vpop.xlane.xlu0 %2048  ;;  %v4815_v20 = vpop.xlane.xlu1 %2042  ;;  %3384 = vmatprep.mubr.msk.f32.mxu0 %vm109_vm0, %v4820_v27 }
 0x3da   :  { %v2124_v16 = vmul.f32 1.442695, %v2092_v53  ;;  %v2140_v24 = vmul.f32 1.442695, %v2100_v61  ;;  %v2156_v34 = vmul.f32 1.442695, %v2108_v59  ;;  %v2073_v6 = vmax.f32 %v2072_v0, %v2049_v56  ;;  %3552 = vmatprep.subr.bf16.mxu0 %v4806_v32 }
 0x3db   :  { %v2172_v19 = vmul.f32 1.442695, %v2116_v5  ;;  %v2075_v59 = vmax.f32 %v2074_v57, %v4745_v51  ;;  %v2083_v5 = vmax.f32 %v4703_v18, %v4719_v38 }
 0x3dc   :  { %3653 = vpow2.f32 %v2124_v16  ;;  %v2093_v22 = vsub.f32 %v4693_v23, %v2073_v6  ;;  %v2101_v55 = vsub.f32 %v4709_v21, %v2073_v6  ;;  %v2109_v29 = vsub.f32 %v4727_v37, %v2073_v6 }
 0x3dd   :  { %3655 = vpow2.f32 %v2140_v24  ;;  %v2117_v0 = vsub.f32 %v2049_v56, %v2073_v6  ;;  %3554 = vmatpush3.bf16.msra.mxu0 %v4806_v32  ;;  %v2052_v11 = vpop.xlane.xlu0 %2051  ;;  %v2055_v35 = vpop.xlane.xlu1 %2054  ;;  %v2080_v16 = vmax.f32 %v4701_v41, %v4717_v49  ;;  %v2084_v56 = vmax.f32 %v2083_v5, %v4779_v1  ;;  %v4844_v6 = vld [vmem:[%s5373_s0 + $0x8] sm:$0xff] }
 0x3de   :  { %3657 = vpow2.f32 %v2156_v34  ;;  %v2126_v53 = vmul.f32 1.442695, %v2093_v22  ;;  %v2142_v23 = vmul.f32 1.442695, %v2101_v55  ;;  %3564 = vmatprep.subr.bf16.mxu0 %v4659_v58  ;;  %v2158_v21 = vmul.f32 1.442695, %v2109_v29 }
 0x3df   :  { %3659 = vpow2.f32 %v2172_v19  ;;  %v2076_v37 = vmax.f32 %v2075_v59, %v2052_v11  ;;  %v2079_v61 = vmax.f32 %v2078_v15, %v2055_v35  ;;  %v2174_v24 = vmul.f32 1.442695, %v2117_v0 }
 0x3e0   :  { %3661 = vpow2.f32 %v2126_v53  ;;  %3385 = vmatmul.mubr.msk.f32.vlgmr.msra.gmra.mrb[8].mxu0 %vm109_vm0, %v4844_v6  ;;  %v2081_v22 = vmax.f32 %v2080_v16, %v4781_v54 }
 0x3e1   :  { %3663 = vpow2.f32 %v2142_v23  ;;  %v2094_v34 = vsub.f32 %v4699_v36, %v2076_v37  ;;  %v2102_v8 = vsub.f32 %v4715_v50, %v2076_v37  ;;  %v2110_v57 = vsub.f32 %v4745_v51, %v2076_v37  ;;  %v2058_v19 = vpop.xlane.xlu0 %2057  ;;  %3566 = vmatpush3.bf16.msra.mxu0 %v4659_v58  ;;  %v4856_v5 = vpop.xlane.xlu1 %2060 }
 0x3e2   :  { %v2118_v55 = vsub.f32 %v2052_v11, %v2076_v37  ;;  %v2095_v29 = vsub.f32 %v4697_v60, %v2079_v61  ;;  %v2103_v15 = vsub.f32 %v4711_v17, %v2079_v61  ;;  %3568 = vmatprep.subr.bf16.mxu0 %v4678_v45  ;;  %3665 = vpow2.f32 %v2158_v21 }
 0x3e3   :  { %v2128_v59 = vmul.f32 1.442695, %v2094_v34  ;;  %v2144_v0 = vmul.f32 1.442695, %v2102_v8  ;;  %v2160_v36 = vmul.f32 1.442695, %v2110_v57  ;;  %3667 = vpow2.f32 %v2174_v24 }
 0x3e4   :  { %v2176_v50 = vmul.f32 1.442695, %v2118_v55  ;;  %v2111_v51 = vsub.f32 %v4741_v62, %v2079_v61  ;;  %v2119_v58 = vsub.f32 %v2055_v35, %v2079_v61  ;;  %v2086_v11 = vmax.f32 %v4705_v25, %v4721_v26 }
 0x3e5   :  { %3669 = vpow2.f32 %v2128_v59  ;;  %v2130_v60 = vmul.f32 1.442695, %v2095_v29  ;;  %v2082_v53 = vmax.f32 %v2081_v22, %v2058_v19  ;;  %3570 = vmatpush3.bf16.msra.mxu0 %v4678_v45  ;;  %v2146_v23 = vmul.f32 1.442695, %v2103_v15  ;;  %v4871_v24 = vpop.xlane.xlu0 %2063 }
 0x3e6   :  { %v4862_v17 = vpop.eup %3653  ;;  %3671 = vpow2.f32 %v2144_v0  ;;  %v2162_v21 = vmul.f32 1.442695, %v2111_v51  ;;  %v2085_v37 = vmax.f32 %v2084_v56, %v4856_v5  ;;  %3572 = vmatprep.subr.bf16.mxu0 %v4690_v47  ;;  %v2087_v34 = vmax.f32 %v2086_v11, %v4803_v14 }
 0x3e7   :  { %v4866_v16 = vpop.eup %3655  ;;  %3673 = vpow2.f32 %v2160_v36  ;;  %v2096_v62 = vsub.f32 %v4701_v41, %v2082_v53  ;;  %v2104_v35 = vsub.f32 %v4717_v49, %v2082_v53  ;;  %v2112_v61 = vsub.f32 %v4781_v54, %v2082_v53 }
 0x3e8   :  { %v4873_v45 = vpop.eup %3657  ;;  %v2188_v56 = vadd.f32 %v4866_v16, %v4862_v17  ;;  %3675 = vpow2.f32 %v2176_v50  ;;  %v2178_v8 = vmul.f32 1.442695, %v2119_v58  ;;  %v2120_v22 = vsub.f32 %v2058_v19, %v2082_v53  ;;  %v4896_v53 = vpop.xlane.xlu1 %2066 }
 0x3e9   :  { %v4878_v57 = vpop.eup %3659  ;;  %3677 = vpow2.f32 %v2130_v60  ;;  %v2132_v41 = vmul.f32 1.442695, %v2096_v62  ;;  %v2089_v49 = vmax.f32 %v4707_v13, %v4723_v48  ;;  %v2088_v29 = vmax.f32 %v2087_v34, %v4871_v24 }
 0x3ea   :  { %v4880_v55 = vpop.eup %3661  ;;  %v2189_v54 = vadd.f32 %v4873_v45, %v2188_v56  ;;  %3679 = vpow2.f32 %v2146_v23  ;;  %v2148_v59 = vmul.f32 1.442695, %v2104_v35  ;;  %v2164_v0 = vmul.f32 1.442695, %v2112_v61 }
 0x3eb   :  { %v4886_v15 = vpop.eup %3663  ;;  %3681 = vpow2.f32 %v2162_v21  ;;  %v2097_v36 = vsub.f32 %v4703_v18, %v2085_v37  ;;  %v2105_v51 = vsub.f32 %v4719_v38, %v2085_v37  ;;  %v2180_v11 = vmul.f32 1.442695, %v2120_v22 }
 0x3ec   :  { %v2190_v19 = vadd.f32 %v4878_v57, %v2189_v54  ;;  %v2191_v50 = vadd.f32 %v4886_v15, %v4880_v55  ;;  %3683 = vpow2.f32 %v2178_v8  ;;  %v4893_v58 = vpop.eup %3665  ;;  %v2113_v60 = vsub.f32 %v4779_v1, %v2085_v37 }
 0x3ed   :  { %3685 = vpow2.f32 %v2132_v41  ;;  %v4898_v23 = vpop.eup %3667  ;;  %v2090_v21 = vmax.f32 %v2089_v49, %v4815_v20  ;;  %v2121_v62 = vsub.f32 %v4856_v5, %v2085_v37  ;;  %v2134_v38 = vmul.f32 1.442695, %v2097_v36 }
 0x3ee   :  { %3687 = vrcp.f32 %v2190_v19  ;;  %v2192_v18 = vadd.f32 %v4893_v58, %v2191_v50  ;;  %v2098_v61 = vsub.f32 %v4705_v25, %v2088_v29  ;;  %v2150_v56 = vmul.f32 1.442695, %v2105_v51 }
 0x3ef   :  { %v4903_v35 = vpop.eup %3669  ;;  %3689 = vpow2.f32 %v2148_v59  ;;  %v2091_v8 = vmax.f32 %v2090_v21, %v4896_v53  ;;  %v2166_v5 = vmul.f32 1.442695, %v2113_v60  ;;  %v2106_v37 = vsub.f32 %v4721_v26, %v2088_v29 }
 0x3f0   :  { %v4906_v34 = vpop.eup %3671  ;;  %v2193_v1 = vadd.f32 %v4898_v23, %v2192_v18  ;;  %3691 = vpow2.f32 %v2164_v0  ;;  %v2182_v25 = vmul.f32 1.442695, %v2121_v62  ;;  %v2114_v54 = vsub.f32 %v4803_v14, %v2088_v29 }
 0x3f1   :  { %v4910_v22 = vpop.eup %3673  ;;  %v2194_v41 = vadd.f32 %v4906_v34, %v4903_v35  ;;  %3693 = vpow2.f32 %v2180_v11  ;;  %v2122_v36 = vsub.f32 %v4871_v24, %v2088_v29  ;;  %v2136_v19 = vmul.f32 1.442695, %v2098_v61 }
 0x3f2   :  { %v4915_v49 = vpop.eup %3675  ;;  %3695 = vrcp.f32 %v2193_v1  ;;  %v2099_v51 = vsub.f32 %v4707_v13, %v2091_v8  ;;  %v2107_v26 = vsub.f32 %v4723_v48, %v2091_v8  ;;  %v2115_v11 = vsub.f32 %v4815_v20, %v2091_v8 }
 0x3f3   :  { %v4918_v59 = vpop.eup %3677  ;;  %v2195_v0 = vadd.f32 %v4910_v22, %v2194_v41  ;;  %3697 = vpow2.f32 %v2134_v38  ;;  %v2152_v21 = vmul.f32 1.442695, %v2106_v37  ;;  %v2168_v29 = vmul.f32 1.442695, %v2114_v54 }
 0x3f4   :  { %v4922_v50 = vpop.eup %3679  ;;  %3699 = vpow2.f32 %v2150_v56  ;;  %v2184_v48 = vmul.f32 1.442695, %v2122_v36  ;;  %v2123_v20 = vsub.f32 %v4896_v53, %v2091_v8  ;;  %v2138_v61 = vmul.f32 1.442695, %v2099_v51 }
 0x3f5   :  { %v4927_v60 = vpop.eup %3681  ;;  %v2196_v14 = vadd.f32 %v4915_v49, %v2195_v0  ;;  %v2197_v18 = vadd.f32 %v4922_v50, %v4918_v59  ;;  %3701 = vpow2.f32 %v2166_v5  ;;  %v2154_v1 = vmul.f32 1.442695, %v2107_v26 }
 0x3f6   :  { %v4932_v24 = vpop.eup %3683  ;;  %3703 = vpow2.f32 %v2182_v25  ;;  %v2170_v56 = vmul.f32 1.442695, %v2115_v11 }
 0x3f7   :  { %v4934_v62 = vpop.eup %3685  ;;  %3705 = vrcp.f32 %v2196_v14  ;;  %v2198_v13 = vadd.f32 %v4927_v60, %v2197_v18  ;;  %v3774_v18 = vld [vmem:[%s5382_s5 + $0xc0] sm:$0xff] }
 0x3f8   :  { %v3688_v38 = vpop.eup %3687  ;;  %3707 = vpow2.f32 %v2136_v19  ;;  %v2186_v19 = vmul.f32 1.442695, %v2123_v20 }
 0x3f9   :  { %v4938_v41 = vpop.eup %3689  ;;  %v2199_v5 = vadd.f32 %v4932_v24, %v2198_v13  ;;  %3709 = vpow2.f32 %v2152_v21  ;;  %v2220_v37 = vmul.f32 %v3688_v38, %v4862_v17  ;;  %v2228_v25 = vmul.f32 %v3688_v38, %v4866_v16  ;;  %v3771_v17 = vld [vmem:[%s5382_s5] sm:$0xff] }
 0x3fa   :  { %v4943_v54 = vpop.eup %3691  ;;  %v2200_v0 = vadd.f32 %v4938_v41, %v4934_v62  ;;  %3711 = vpow2.f32 %v2168_v29  ;;  %v2236_v53 = vmul.f32 %v3688_v38, %v4873_v45  ;;  %v2244_v8 = vmul.f32 %v3688_v38, %v4878_v57  ;;  %v3772_v16 = vld [vmem:[%s5382_s5 + $0x40] sm:$0xff] }
 0x3fb   :  { %v4949_v36 = vpop.eup %3693  ;;  %3713 = vrcp.f32 %v2199_v5  ;;  %v2252_v51 = vmul.f32 %v3771_v17, %v2220_v37  ;;  %v2260_v26 = vmul.f32 %v3772_v16, %v2228_v25  ;;  %v3773_v45 = vld [vmem:[%s5382_s5 + $0x80] sm:$0xff] }
 0x3fc   :  { %v3696_v11 = vpop.eup %3695  ;;  %v2201_v14 = vadd.f32 %v4943_v54, %v2200_v0  ;;  %3715 = vpow2.f32 %v2184_v48  ;;  %v2268_v57 = vmul.f32 %v3773_v45, %v2236_v53  ;;  %v2276_v21 = vmul.f32 %v3774_v18, %v2244_v8 }
 0x3fd   :  { %v4964_v29 = vpop.eup %3697  ;;  %v2245_v13 = vmul.f32 %v3696_v11, %v4898_v23  ;;  %3717 = vpow2.f32 %v2138_v61  ;;  %v2284_v20 = vsel %vm109_vm0, %v2252_v51, 0.0  ;;  %v2285_v38 = vsel %vm109_vm0, %v2260_v26, 0.0 }
 0x3fe   :  { %v4969_v48 = vpop.eup %3699  ;;  %v2202_v5 = vadd.f32 %v4949_v36, %v2201_v14  ;;  %3719 = vpow2.f32 %v2154_v1  ;;  %v2286_v37 = vadd.f32 %v2285_v38, %v2284_v20  ;;  %v2287_v25 = vsel %vm109_vm0, %v2268_v57, 0.0 }
 0x3ff   :  { %v4973_v0 = vpop.eup %3701  ;;  %v2203_v53 = vadd.f32 %v4969_v48, %v4964_v29  ;;  %3721 = vpow2.f32 %v2170_v56  ;;  %v2289_v23 = vsel %vm109_vm0, %v2276_v21, 0.0  ;;  %v2221_v61 = vmul.f32 %v3696_v11, %v4880_v55  ;;  %v3775_v56 = vld [vmem:[%s5382_s5 + $0x8] sm:$0xff] }
 0x400   :  { %v4979_v8 = vpop.eup %3703  ;;  %3723 = vrcp.f32 %v2202_v5  ;;  %v2288_v17 = vadd.f32 %v2287_v25, %v2286_v37  ;;  %v2229_v51 = vmul.f32 %v3696_v11, %v4886_v15  ;;  %v2237_v1 = vmul.f32 %v3696_v11, %v4893_v58  ;;  %v3776_v55 = vld [vmem:[%s5382_s5 + $0xc8] sm:$0xff] }
 0x401   :  { %v3706_v16 = vpop.eup %3705  ;;  %v2204_v26 = vadd.f32 %v4973_v0, %v2203_v53  ;;  %3725 = vpow2.f32 %v2186_v19  ;;  %v2253_v14 = vmul.f32 %v3775_v56, %v2221_v61  ;;  %v2277_v45 = vmul.f32 %v3776_v55, %v2245_v13  ;;  %v3777_v15 = vld [vmem:[%s5382_s5 + $0x48] sm:$0xff]  ;;  %v3780_v55 = vld [vmem:[%s5382_s5 + $0x50] sm:$0xff] }
 0x402   :  { %v4990_v57 = vpop.eup %3707  ;;  %v2290_v18 = vadd.f32 %v2289_v23, %v2288_v17  ;;  %v2261_v58 = vmul.f32 %v3777_v15, %v2229_v51  ;;  %v3778_v19 = vld [vmem:[%s5382_s5 + $0x88] sm:$0xff]  ;;  %v2222_v21 = vmul.f32 %v3706_v16, %v4903_v35  ;;  %v2230_v37 = vmul.f32 %v3706_v16, %v4906_v34  ;;  %v3779_v34 = vld [vmem:[%s5382_s5 + $0x10] sm:$0xff] }
 0x403   :  { %v2269_v11 = vmul.f32 %v3778_v19, %v2237_v1  ;;  %v4999_v20 = vpop.eup %3709  ;;  %v2205_v38 = vadd.f32 %v4979_v8, %v2204_v26  ;;  %v2291_v13 = vsel %vm109_vm0, %v2253_v14, 0.0  ;;  %v2296_v5 = vsel %vm109_vm0, %v2277_v45, 0.0 }
 0x404   :  { %v5005_v25 = vpop.eup %3711  ;;  %v2206_v53 = vadd.f32 %v4999_v20, %v4990_v57  ;;  %3451 = vmatprep.mubr.msk.f32.mxu0 %vm109_vm0, %v2290_v18  ;;  %v2292_v23 = vsel %vm109_vm0, %v2261_v58, 0.0  ;;  %v2238_v61 = vmul.f32 %v3706_v16, %v4910_v22  ;;  %v2246_v1 = vmul.f32 %v3706_v16, %v4915_v49  ;;  %v3781_v22 = vld [vmem:[%s5382_s5 + $0x90] sm:$0xff] }
 0x405   :  { %v2294_v35 = vsel %vm109_vm0, %v2269_v11, 0.0  ;;  %v3714_v17 = vpop.eup %3713  ;;  %3727 = vrcp.f32 %v2205_v38  ;;  %v2293_v51 = vadd.f32 %v2292_v23, %v2291_v13  ;;  %v2254_v26 = vmul.f32 %v3779_v34, %v2222_v21  ;;  %v3782_v58 = vld [vmem:[%s5382_s5 + $0xd0] sm:$0xff] }
 0x406   :  { %v5017_v56 = vpop.eup %3715  ;;  %v2207_v14 = vadd.f32 %v5005_v25, %v2206_v53  ;;  %v2262_v45 = vmul.f32 %v3780_v55, %v2230_v37  ;;  %v2270_v18 = vmul.f32 %v3781_v22, %v2238_v61  ;;  %v2223_v49 = vmul.f32 %v3714_v17, %v4918_v59 }
 0x407   :  { %v5027_v16 = vpop.eup %3717  ;;  %v2295_v15 = vadd.f32 %v2294_v35, %v2293_v51  ;;  %v2278_v19 = vmul.f32 %v3782_v58, %v2246_v1  ;;  %v2298_v11 = vsel %vm109_vm0, %v2254_v26, 0.0  ;;  %v2231_v21 = vmul.f32 %v3714_v17, %v4922_v50  ;;  %v3783_v26 = vld [vmem:[%s5382_s5 + $0x18] sm:$0xff] }
 0x408   :  { %v5034_v38 = vpop.eup %3719  ;;  %v2208_v13 = vadd.f32 %v5017_v56, %v2207_v14  ;;  %v2299_v37 = vsel %vm109_vm0, %v2262_v45, 0.0  ;;  %v2301_v59 = vsel %vm109_vm0, %v2270_v18, 0.0  ;;  %v2239_v53 = vmul.f32 %v3714_v17, %v4927_v60  ;;  %v3784_v60 = vld [vmem:[%s5382_s5 + $0x58] sm:$0xff] }
 0x409   :  { %v5040_v23 = vpop.eup %3721  ;;  %v2209_v35 = vadd.f32 %v5034_v38, %v5027_v16  ;;  %v2297_v61 = vadd.f32 %v2296_v5, %v2295_v15  ;;  %v2300_v51 = vadd.f32 %v2299_v37, %v2298_v11  ;;  %v2303_v1 = vsel %vm109_vm0, %v2278_v19, 0.0 }
 0x40a   :  { %v3724_v50 = vpop.eup %3723  ;;  %3729 = vrcp.f32 %v2208_v13  ;;  %v2247_v34 = vmul.f32 %v3714_v17, %v4932_v24  ;;  %v2255_v14 = vmul.f32 %v3783_v26, %v2223_v49  ;;  %v2263_v55 = vmul.f32 %v3784_v60, %v2231_v21  ;;  %v3785_v24 = vld [vmem:[%s5382_s5 + $0x98] sm:$0xff] }
 0x40b   :  { %v5052_v45 = vpop.eup %3725  ;;  %v2210_v5 = vadd.f32 %v5040_v23, %v2209_v35  ;;  %3452 = vmatmul.mubr.msk.f32.vlgmr.msra.gmra.mrb[10].mxu0 %vm109_vm0, %v2297_v61  ;;  %v2302_v22 = vadd.f32 %v2301_v59, %v2300_v51  ;;  %v2271_v17 = vmul.f32 %v3785_v24, %v2239_v53  ;;  %v2224_v18 = vmul.f32 %v3724_v50, %v4934_v62  ;;  %v3786_v49 = vld [vmem:[%s5382_s5 + $0xd8] sm:$0xff]  ;;  %v3787_v53 = vld [vmem:[%s5382_s5 + $0x20] sm:$0xff] }
 0x40c   :  { %3574 = vmatpush3.bf16.msra.mxu0 %v4690_v47  ;;  %v2279_v15 = vmul.f32 %v3786_v49, %v2247_v34  ;;  %v2305_v58 = vsel %vm109_vm0, %v2255_v14, 0.0  ;;  %v2306_v19 = vsel %vm109_vm0, %v2263_v55, 0.0  ;;  %v2232_v11 = vmul.f32 %v3724_v50, %v4938_v41 }
 0x40d   :  { %v2211_v21 = vadd.f32 %v5052_v45, %v2210_v5  ;;  %v2304_v13 = vadd.f32 %v2303_v1, %v2302_v22  ;;  %v2307_v37 = vadd.f32 %v2306_v19, %v2305_v58  ;;  %3576 = vmatprep.subr.bf16.mxu0 %v4806_v32  ;;  %v2308_v62 = vsel %vm109_vm0, %v2271_v17, 0.0  ;;  %v3788_v1 = vld [vmem:[%s5382_s5 + $0x60] sm:$0xff] }
 0x40e   :  { %v2240_v47 = vmul.f32 %v3724_v50, %v4943_v54  ;;  %v2248_v59 = vmul.f32 %v3724_v50, %v4949_v36  ;;  %v2256_v35 = vmul.f32 %v3787_v53, %v2224_v18  ;;  %v2310_v51 = vsel %vm109_vm0, %v2279_v15, 0.0  ;;  %v3789_v54 = vld [vmem:[%s5382_s5 + $0xa0] sm:$0xff] }
 0x40f   :  { %v3728_v61 = vpop.eup %3727  ;;  %3731 = vrcp.f32 %v2211_v21  ;;  %3454 = vmatprep.mubr.msk.f32.mxu0 %vm109_vm0, %v2304_v13  ;;  %v2309_v41 = vadd.f32 %v2308_v62, %v2307_v37  ;;  %v2264_v34 = vmul.f32 %v3788_v1, %v2232_v11  ;;  %v3790_v50 = vld [vmem:[%s5382_s5 + $0xe0] sm:$0xff]  ;;  %v3794_v21 = vld [vmem:[%s5382_s5 + $0xe8] sm:$0xff]  ;;  %v3795_v1 = vld [vmem:[%s5382_s5 + $0x30] sm:$0xff] }
 0x410   :  { %v2272_v36 = vmul.f32 %v3789_v54, %v2240_v47  ;;  %v2280_v26 = vmul.f32 %v3790_v50, %v2248_v59  ;;  %v2312_v14 = vsel %vm109_vm0, %v2256_v35, 0.0  ;;  %v2225_v60 = vmul.f32 %v3728_v61, %v4964_v29  ;;  %3578 = vmatpush3.bf16.msra.mxu0 %v4806_v32  ;;  %v3791_v29 = vld [vmem:[%s5382_s5 + $0x28] sm:$0xff] }
 0x411   :  { %v2311_v55 = vadd.f32 %v2310_v51, %v2309_v41  ;;  %v2313_v5 = vsel %vm109_vm0, %v2264_v34, 0.0  ;;  %v2233_v22 = vmul.f32 %v3728_v61, %v4969_v48  ;;  %v2241_v24 = vmul.f32 %v3728_v61, %v4973_v0  ;;  %v3792_v32 = vld [vmem:[%s5382_s5 + $0x68] sm:$0xff] }
 0x412   :  { %v2314_v17 = vadd.f32 %v2313_v5, %v2312_v14  ;;  %v2249_v18 = vmul.f32 %v3728_v61, %v4979_v8  ;;  %v2315_v49 = vsel %vm109_vm0, %v2272_v36, 0.0  ;;  %v2257_v15 = vmul.f32 %v3791_v29, %v2225_v60  ;;  %v3793_v48 = vld [vmem:[%s5382_s5 + $0xa8] sm:$0xff] }
 0x413   :  { %3455 = vmatmul.mubr.msk.f32.gmra.mrb[12].mxu0 %vm109_vm0, %v2311_v55  ;;  %v2265_v58 = vmul.f32 %v3792_v32, %v2233_v22  ;;  %v2273_v0 = vmul.f32 %v3793_v48, %v2241_v24  ;;  %v2317_v11 = vsel %vm109_vm0, %v2280_v26, 0.0  ;;  %v3798_v26 = vld [vmem:[%s5382_s5 + $0xf0] sm:$0xff] }
 0x414   :  { %v3730_v8 = vpop.eup %3729  ;;  %v2316_v19 = vadd.f32 %v2315_v49, %v2314_v17  ;;  %v2281_v13 = vmul.f32 %v3794_v21, %v2249_v18  ;;  %v2319_v37 = vsel %vm109_vm0, %v2257_v15, 0.0  ;;  %v3799_v15 = vld [vmem:[%s5382_s5 + $0x38] sm:$0xff] }
 0x415   :  { %v2320_v62 = vsel %vm109_vm0, %v2265_v58, 0.0  ;;  %v2226_v47 = vmul.f32 %v3730_v8, %v4990_v57  ;;  %v2234_v35 = vmul.f32 %v3730_v8, %v4999_v20  ;;  %v2322_v61 = vsel %vm109_vm0, %v2273_v0, 0.0  ;;  %v3796_v57 = vld [vmem:[%s5382_s5 + $0x70] sm:$0xff] }
 0x416   :  { %v2318_v59 = vadd.f32 %v2317_v11, %v2316_v19  ;;  %v2321_v53 = vadd.f32 %v2320_v62, %v2319_v37  ;;  %v2242_v41 = vmul.f32 %v3730_v8, %v5005_v25  ;;  %v2250_v51 = vmul.f32 %v3730_v8, %v5017_v56  ;;  %v3797_v25 = vld [vmem:[%s5382_s5 + $0xb0] sm:$0xff] }
 0x417   :  { %v2258_v34 = vmul.f32 %v3795_v1, %v2226_v47  ;;  %v2266_v36 = vmul.f32 %v3796_v57, %v2234_v35  ;;  %v2324_v50 = vsel %vm109_vm0, %v2281_v13, 0.0 }
 0x418   :  { %3457 = vmatprep.mubr.msk.f32.mxu0 %vm109_vm0, %v2318_v59  ;;  %v2323_v54 = vadd.f32 %v2322_v61, %v2321_v53  ;;  %v2274_v56 = vmul.f32 %v3797_v25, %v2242_v41  ;;  %v2282_v14 = vmul.f32 %v3798_v26, %v2250_v51 }
 0x419   :  { %v3732_v20 = vpop.eup %3731  ;;  %v2326_v60 = vsel %vm109_vm0, %v2258_v34, 0.0  ;;  %v2327_v5 = vsel %vm109_vm0, %v2266_v36, 0.0  ;;  %v3803_v34 = vld [vmem:[%s5381_s8] sm:$0xff]  ;;  %v3804_v36 = vld [vmem:[%s5381_s8 + $0x8] sm:$0xff] }
 0x41a   :  { %v2325_v55 = vadd.f32 %v2324_v50, %v2323_v54  ;;  %v2227_v22 = vmul.f32 %v3732_v20, %v5027_v16  ;;  %v2235_v24 = vmul.f32 %v3732_v20, %v5034_v38  ;;  %v2328_v17 = vadd.f32 %v2327_v5, %v2326_v60  ;;  %v3800_v16 = vld [vmem:[%s5382_s5 + $0x78] sm:$0xff] }
 0x41b   :  { %v2243_v18 = vmul.f32 %v3732_v20, %v5040_v23  ;;  %v2329_v49 = vsel %vm109_vm0, %v2274_v56, 0.0  ;;  %v2251_v29 = vmul.f32 %v3732_v20, %v5052_v45  ;;  %v3801_v23 = vld [vmem:[%s5382_s5 + $0xb8] sm:$0xff]  ;;  %v2331_v0 = vsel %vm109_vm0, %v2282_v14, 0.0 }
 0x41c   :  { %3458 = vmatmul.mubr.msk.f32.gmra.mrb[14].mxu0 %vm109_vm0, %v2325_v55  ;;  %v2259_v32 = vmul.f32 %v3799_v15, %v2227_v22  ;;  %v2267_v58 = vmul.f32 %v3800_v16, %v2235_v24  ;;  %v2330_v38 = vadd.f32 %v2329_v49, %v2328_v17  ;;  %v3802_v45 = vld [vmem:[%s5382_s5 + $0xf8] sm:$0xff]  ;;  %v5156_v53 = vpop.f32.mrb[6].mxu0 }
 0x41d   :  { %v2275_v48 = vmul.f32 %v3801_v23, %v2243_v18  ;;  %v2283_v8 = vmul.f32 %v3802_v45, %v2251_v29  ;;  %v3344_v35 = vpop.f32.mrb[7].mxu0 }
 0x41e   :  { %v2333_v19 = vsel %vm109_vm0, %v2259_v32, 0.0  ;;  %v2334_v11 = vsel %vm109_vm0, %v2267_v58, 0.0  ;;  %v2332_v21 = vadd.f32 %v2331_v0, %v2330_v38  ;;  %v3811_v58 = vmov 1966171168  }
 0x41f   :  { %v2335_v13 = vadd.f32 %v2334_v11, %v2333_v19  ;;  %v2336_v37 = vsel %vm109_vm0, %v2275_v48, 0.0  ;;  %v2338_v47 = vsel %vm109_vm0, %v2283_v8, 0.0  ;;  %v594_v38 = vunpack.c.l.s4 %v3811_v58 }
 0x420   :  { %3460 = vmatprep.mubr.msk.f32.mxu0 %vm109_vm0, %v2332_v21 }
 0x421   :  { %v2337_v62 = vadd.f32 %v2336_v37, %v2335_v13  ;;  %v595_v23 = vunpack.c.0.s8 %v594_v38 }
 0x423   :  { %v2339_v59 = vadd.f32 %v2338_v47, %v2337_v62  ;;  %v598_v19 = vsub.s32 %v595_v23, %v3897_v2 }
 0x425   :  { %3461 = vmatmul.mubr.msk.f32.gmra.mrb[16].mxu0 %vm109_vm0, %v2339_v59 }
 0x426   :  { %3471 = vmatprep.mubr.msk.f32.mxu0 %vm109_vm0, %v4756_v43  ;;  %v73_v43 = vld [vmem:[%s5379_s12 + $0x70] sm:$0xff] }
 0x429   :  { %3472 = vmatmul.mubr.msk.f32.vlgmr.msra.gmra.mrb[10].mxu0 %vm109_vm0, %v4732_v9  ;;  %v71_v9 = vld [vmem:[%s5379_s12 + $0x60] sm:$0xff] }
 0x42a   :  { %3474 = vmatprep.mubr.msk.f32.mxu0 %vm109_vm0, %v4762_v63 }
 0x42d   :  { %3475 = vmatmul.mubr.msk.f32.gmra.mrb[12].mxu0 %vm109_vm0, %v4738_v7  ;;  %v72_v7 = vld [vmem:[%s5379_s12 + $0x68] sm:$0xff] }
 0x42e   :  { %3477 = vmatprep.mubr.msk.f32.mxu0 %vm109_vm0, %v4768_v39  ;;  %v3579_v63 = vpack.c.bf16 %v72_v7, %v71_v9 }
 0x430   :  { %3580 = vmatprep.subr.bf16.mxu0 %v3579_v63 }
 0x431   :  { %3478 = vmatmul.mubr.msk.f32.gmra.mrb[14].mxu0 %vm109_vm0, %v4750_v52  ;;  %v74_v52 = vld [vmem:[%s5379_s12 + $0x78] sm:$0xff] }
 0x432   :  { %3480 = vmatprep.mubr.msk.f32.mxu0 %vm109_vm0, %v4774_v30  ;;  %v3583_v39 = vpack.c.bf16 %v74_v52, %v73_v43  ;;  %3582 = vmatpush3.bf16.msra.mxu0 %v3579_v63 }
 0x434   :  { %3584 = vmatprep.subr.bf16.mxu0 %v3583_v39 }
 0x435   :  { %3481 = vmatmul.mubr.msk.f32.gmra.mrb[16].mxu0 %vm109_vm0, %v4786_v4 }
 0x436   :  { %3586 = vmatpush3.bf16.msra.mxu0 %v3583_v39 }
 0x4b3   :  { %v5186_v30 = vpop.f32.mrb[8].mxu0 }
 0x4b4   :  { %v5188_v4 = vpop.f32.mrb[9].mxu0 }
 0x4fc   :  { %v5190_v61 = vpop.f32.mrb[10].mxu0 }
 0x4fd   :  { %v2599_v41 = vmax.f32 %v5190_v61, 0.0  ;;  %v5193_v51 = vpop.f32.mrb[11].mxu0 }
 0x4fe   :  { %v2598_v1 = vmax.f32 %v5193_v51, 0.0 }
 0x4ff   :  { %v2607_v20 = vmul.f32 %v3804_v36, %v2599_v41 }
 0x500   :  { %v2606_v54 = vmul.f32 %v3803_v34, %v2598_v1  ;;  %v5201_v57 = vpop.f32.mrb[12].mxu0 }
 0x501   :  { %v2601_v50 = vmax.f32 %v5201_v57, 0.0  ;;  %v5209_v25 = vpop.f32.mrb[13].mxu0 }
 0x502   :  { %v2600_v56 = vmax.f32 %v5209_v25, 0.0  ;;  %3491 = vmatprep.mubr.msk.f32.mxu0 %vm109_vm0, %v2606_v54 }
 0x503   :  { %3492 = vmatmul.mubr.msk.f32.vlgmr.msra.gmra.mrb[18].mxu0 %vm109_vm0, %v2607_v20  ;;  %v2609_v60 = vmul.f32 %v3804_v36, %v2601_v50 }
 0x504   :  { %v2608_v26 = vmul.f32 %v3803_v34, %v2600_v56  ;;  %v5216_v14 = vpop.f32.mrb[14].mxu0 }
 0x505   :  { %v2603_v55 = vmax.f32 %v5216_v14, 0.0  ;;  %v5221_v5 = vpop.f32.mrb[15].mxu0  ;;  %v78_v14 = vld [vmem:[%s5379_s12 + $0x98] sm:$0xff] }
 0x506   :  { %v2602_v22 = vmax.f32 %v5221_v5, 0.0  ;;  %3494 = vmatprep.mubr.msk.f32.mxu0 %vm109_vm0, %v2608_v26 }
 0x507   :  { %3495 = vmatmul.mubr.msk.f32.gmra.mrb[20].mxu0 %vm109_vm0, %v2609_v60  ;;  %v2611_v18 = vmul.f32 %v3804_v36, %v2603_v55 }
 0x508   :  { %v2610_v24 = vmul.f32 %v3803_v34, %v2602_v22  ;;  %v5228_v17 = vpop.f32.mrb[16].mxu0 }
 0x509   :  { %v2605_v49 = vmax.f32 %v5228_v17, 0.0  ;;  %v5233_v29 = vpop.f32.mrb[17].mxu0 }
 0x50a   :  { %v2604_v15 = vmax.f32 %v5233_v29, 0.0  ;;  %3497 = vmatprep.mubr.msk.f32.mxu0 %vm109_vm0, %v2610_v24 }
 0x50b   :  { %3498 = vmatmul.mubr.msk.f32.gmra.mrb[22].mxu0 %vm109_vm0, %v2611_v18  ;;  %v2613_v16 = vmul.f32 %v3804_v36, %v2605_v49 }
 0x50c   :  { %v2612_v32 = vmul.f32 %v3803_v34, %v2604_v15 }
 0x50e   :  { %3500 = vmatprep.mubr.msk.f32.mxu0 %vm109_vm0, %v2612_v32 }
 0x50f   :  { %3501 = vmatmul.mubr.msk.f32.gmra.mrb[24].mxu0 %vm109_vm0, %v2613_v16 }
 0x5d6   :  { %v3493_v48 = vpop.f32.mrb[18].mxu0 }
 0x5d7   :  { %v2756_v0 = vadd.f32 %v3493_v48, %v4056_v40  ;;  %v2704_v45 = vpop.f32.mrb[19].mxu0  ;;  %v599_v40 = vrot.slane %v5156_v53, %v598_v19 }
 0x5d8   :  { %v2755_v8 = vadd.f32 %v4030_v31, %v2704_v45 }
 0x5d9   :  { %vm2764_vm14 = vcmp.gt.f32.partialorder %v2756_v0, 0.0  ;;  %v2772_v11 = vmul.f32 0.2, %v2756_v0  ;;  %v600_v36 = vcombine.high %v599_v40, %v599_v40 }
 0x5da   :  { %vm2763_vm15 = vcmp.gt.f32.partialorder %v2755_v8, 0.0  ;;  %v2771_v21 = vmul.f32 0.2, %v2755_v8  ;;  %v3496_v13 = vpop.f32.mrb[20].mxu0 }
 0x5db   :  { %v2758_v37 = vadd.f32 %v3496_v13, %v4062_v42  ;;  %v2714_v62 = vpop.f32.mrb[21].mxu0  ;;  %v2780_v47 = vsel %vm2764_vm14, %v2756_v0, %v2772_v11  ;;  %v2751_v42 = vmul.f32 %v4024_v28, %v4432_v3  ;;  %v614_v11 = vrot.slane %v600_v36, %v598_v19 }
 0x5dc   :  { %v2757_v59 = vadd.f32 %v4036_v33, %v2714_v62  ;;  %v2792_v35 = vmul.f32 %v3930_v12, %v2780_v47  ;;  %v2779_v9 = vsel %vm2763_vm15, %v2755_v8, %v2771_v21  ;;  %v5395_v21 = vld [vmem:[#allocation2_spill] sm:$0xff] }
 0x5dd   :  { %vm2766_vm3 = vcmp.gt.f32.partialorder %v2758_v37, 0.0  ;;  %v2774_v31 = vmul.f32 0.2, %v2758_v37  ;;  %v2791_v2 = vmul.f32 %v3930_v12, %v2779_v9 }
 0x5de   :  { %vm2765_vm1 = vcmp.gt.f32.partialorder %v2757_v59, 0.0  ;;  %v2773_v7 = vmul.f32 0.2, %v2757_v59  ;;  %v3499_v43 = vpop.f32.mrb[22].mxu0  ;;  %v2802_v63 = vsel %vm109_vm0, %v2792_v35, 0.0 }
 0x5df   :  { %v2760_v52 = vadd.f32 %v3499_v43, %v4068_v44  ;;  %2803 = vadd.xlane.f32.xlu0 %v2802_v63  ;;  %v2724_v33 = vpop.f32.mrb[23].mxu0  ;;  %v2782_v39 = vsel %vm2766_vm3, %v2758_v37, %v2774_v31  ;;  %v2799_v18 = vsel %vm109_vm0, %v2791_v2, 0.0  ;;  %v607_v44 = vrot.slane %v599_v40, %v598_v19  ;;  %v81_v63 = vld [vmem:[%s5379_s12 + $0xb0] sm:$0xff] }
 0x5e0   :  { %v2759_v34 = vadd.f32 %v2751_v42, %v2724_v33  ;;  %v2794_v53 = vmul.f32 %v3930_v12, %v2782_v39  ;;  %v2781_v54 = vsel %vm2765_vm1, %v2757_v59, %v2773_v7  ;;  %v622_v19 = vrot.slane %v614_v11, %v5395_v21  ;;  %v79_v7 = vld [vmem:[%s5379_s12 + $0xa0] sm:$0xff]  ;;  %v76_v33 = vld [vmem:[%s5379_s12 + $0x88] sm:$0xff] }
 0x5e1   :  { %vm2768_vm2 = vcmp.gt.f32.partialorder %v2760_v52, 0.0  ;;  %v2776_v20 = vmul.f32 0.2, %v2760_v52  ;;  %v2793_v26 = vmul.f32 %v3930_v12, %v2781_v54  ;;  %v618_v13 = vrot.slane %v607_v44, %v5395_v21 }
 0x5e2   :  { %vm2767_vm4 = vcmp.gt.f32.partialorder %v2759_v34, 0.0  ;;  %v2775_v60 = vmul.f32 0.2, %v2759_v34  ;;  %v3502_v24 = vpop.f32.mrb[24].mxu0  ;;  %v2808_v28 = vsel %vm109_vm0, %v2794_v53, 0.0  ;;  %v626_v2 = vmul.f32 %v4844_v6, %v622_v19  ;;  %v82_v6 = vld [vmem:[%s5379_s12 + $0xb8] sm:$0xff] }
 0x5e3   :  { %v2762_v3 = vadd.f32 %v3502_v24, %v4074_v46  ;;  %2800 = vadd.xlane.f32.xlu0 %v2799_v18  ;;  %2809 = vadd.xlane.f32.xlu1 %v2808_v28  ;;  %v2734_v32 = vpop.f32.mrb[25].mxu0  ;;  %v2784_v16 = vsel %vm2768_vm2, %v2760_v52, %v2776_v20  ;;  %v2805_v8 = vsel %vm109_vm0, %v2793_v26, 0.0  ;;  %v625_v9 = vmul.f32 %v4820_v27, %v618_v13  ;;  %v80_v27 = vld [vmem:[%s5379_s12 + $0xa8] sm:$0xff]  ;;  %v75_v52 = vld [vmem:[%s5379_s12 + $0x80] sm:$0xff] }
 0x5e4   :  { %v2761_v58 = vadd.f32 %v4044_v10, %v2734_v32  ;;  %v2783_v38 = vsel %vm2767_vm4, %v2759_v34, %v2775_v60  ;;  %v2796_v23 = vmul.f32 %v3930_v12, %v2784_v16  ;;  %v3587_v43 = vpack.c.bf16 %v80_v27, %v79_v7  ;;  %v51_v28 = vld [vmem:[%s5387_s2] sm:$0xff]  ;;  %v52_v16 = vld [vmem:[%s5387_s2 + $0x8] sm:$0xff] }
 0x5e5   :  { %vm2770_vm5 = vcmp.gt.f32.partialorder %v2762_v3, 0.0  ;;  %v2778_v48 = vmul.f32 0.2, %v2762_v3  ;;  %v2795_v0 = vmul.f32 %v3930_v12, %v2783_v38  ;;  %v627_v40 = vsel %vm109_vm0, %v625_v9, 0.0 }
 0x5e6   :  { %vm2769_vm6 = vcmp.gt.f32.partialorder %v2761_v58, 0.0  ;;  %v2777_v45 = vmul.f32 0.2, %v2761_v58  ;;  %v2814_v59 = vsel %vm109_vm0, %v2796_v23, 0.0  ;;  %3588 = vmatprep.subr.bf16.mxu0 %v3587_v43  ;;  %v3591_v42 = vpack.c.bf16 %v82_v6, %v81_v63 }
 0x5e7   :  { %2806 = vadd.xlane.f32.xlu1 %v2805_v8  ;;  %v2811_v46 = vsel %vm109_vm0, %v2795_v0, 0.0  ;;  %v2786_v37 = vsel %vm2770_vm5, %v2762_v3, %v2778_v48  ;;  %3590 = vmatpush3.bf16.msra.mxu0 %v3587_v43  ;;  %v5295_v39 = vpack.c.bf16 %v76_v33, %v75_v52  ;;  %vm639_vm7 = vcmp.gt.f32.partialorder %v51_v28, 0.0 }
 0x5e8   :  { %2812 = vadd.xlane.f32.xlu0 %v2811_v46  ;;  %v2785_v10 = vsel %vm2769_vm6, %v2761_v58, %v2777_v45  ;;  %v2798_v62 = vmul.f32 %v3930_v12, %v2786_v37  ;;  %3592 = vmatprep.subr.bf16.mxu0 %v3591_v42  ;;  %vm640_vm10 = vcmp.gt.f32.partialorder %v52_v16, 0.0 }
 0x5e9   :  { %v2797_v47 = vmul.f32 %v3930_v12, %v2785_v10  ;;  %v630_v12 = vsel %vm109_vm0, %v626_v2, 0.0 }
 0x5ea   :  { %v2820_v31 = vsel %vm109_vm0, %v2798_v62, 0.0 }
 0x5eb   :  { %v2817_v35 = vsel %vm109_vm0, %v2797_v47, 0.0  ;;  %3594 = vmatpush3.bf16.msra.mxu0 %v3591_v42 }
 0x5ec   :  { %2815 = vadd.xlane.f32.xlu0 %v2814_v59  ;;  %2818 = vadd.xlane.f32.xlu1 %v2817_v35 }
 0x5ed   :  { %3596 = vmatprep.subr.bf16.mxu0 %v5295_v39 }
 0x5f0   :  { %628 = vadd.xlane.f32.xlu0 %v627_v40  ;;  %2821 = vadd.xlane.f32.xlu1 %v2820_v31 }
 0x5f4   :  { %631 = vadd.xlane.f32.xlu1 %v630_v12 }
 0x66c   :  { %v2804_v34 = vpop.xlane.xlu0 %2803 }
 0x670   :  { %v2801_v53 = vpop.xlane.xlu0 %2800  ;;  %v2810_v54 = vpop.xlane.xlu1 %2809 }
 0x674   :  { %v2807_v36 = vpop.xlane.xlu1 %2806 }
 0x675   :  { %v2813_v20 = vpop.xlane.xlu0 %2812 }
 0x676   :  { %v2823_v24 = vmax.f32 %v2801_v53, %v2813_v20 }
 0x679   :  { %v2816_v26 = vpop.xlane.xlu0 %2815  ;;  %v2819_v60 = vpop.xlane.xlu1 %2818 }
 0x67a   :  { %v2824_v18 = vmax.f32 %v2807_v36, %v2819_v60  ;;  %v2826_v0 = vmax.f32 %v2804_v34, %v2816_v26 }
 0x67c   :  { %v2825_v44 = vmax.f32 %v2823_v24, %v2824_v18 }
 0x67d   :  { %v629_v3 = vpop.xlane.xlu0 %628  ;;  %v2822_v32 = vpop.xlane.xlu1 %2821 }
 0x67e   :  { %v2829_v58 = vsub.f32 %v2801_v53, %v2825_v44  ;;  %v2831_v38 = vsub.f32 %v2807_v36, %v2825_v44  ;;  %v2833_v23 = vsub.f32 %v2813_v20, %v2825_v44  ;;  %v2835_v48 = vsub.f32 %v2819_v60, %v2825_v44 }
 0x67f   :  { %vm633_vm8 = vcmp.gt.f32.partialorder %v629_v3, 0.0  ;;  %v635_v45 = vmul.f32 0.2, %v629_v3  ;;  %v2827_v8 = vmax.f32 %v2810_v54, %v2822_v32 }
 0x680   :  { %v2837_v11 = vmul.f32 1.442695, %v2829_v58  ;;  %v2841_v46 = vmul.f32 1.442695, %v2831_v38  ;;  %v2845_v21 = vmul.f32 1.442695, %v2833_v23 }
 0x681   :  { %v2849_v13 = vmul.f32 1.442695, %v2835_v48  ;;  %v637_v37 = vsel %vm633_vm8, %v629_v3, %v635_v45  ;;  %v2828_v10 = vmax.f32 %v2826_v0, %v2827_v8  ;;  %v632_v62 = vpop.xlane.xlu1 %631 }
 0x682   :  { %3733 = vpow2.f32 %v2837_v11  ;;  %v641_v47 = vsel %vm639_vm7, %v637_v37, -9e+15  ;;  %vm634_vm11 = vcmp.gt.f32.partialorder %v632_v62, 0.0  ;;  %v636_v59 = vmul.f32 0.2, %v632_v62 }
 0x683   :  { %3735 = vpow2.f32 %v2841_v46  ;;  %v644_v35 = vsel %vm643_vm9, %v641_v47, -inf  ;;  %v2830_v9 = vsub.f32 %v2804_v34, %v2828_v10  ;;  %v2832_v19 = vsub.f32 %v2810_v54, %v2828_v10 }
 0x684   :  { %v645_v40 = vrot.slane %v644_v35, 4  ;;  %v2834_v31 = vsub.f32 %v2816_v26, %v2828_v10  ;;  %v2836_v2 = vsub.f32 %v2822_v32, %v2828_v10  ;;  %3737 = vpow2.f32 %v2845_v21 }
 0x685   :  { %v2839_v12 = vmul.f32 1.442695, %v2830_v9  ;;  %v2843_v7 = vmul.f32 1.442695, %v2832_v19  ;;  %v638_v27 = vsel %vm634_vm11, %v632_v62, %v636_v59  ;;  %3739 = vpow2.f32 %v2849_v13 }
 0x686   :  { %v646_v43 = vmax.f32 %v644_v35, %v645_v40  ;;  %v2847_v63 = vmul.f32 1.442695, %v2834_v31  ;;  %v642_v6 = vsel %vm640_vm10, %v638_v27, -9e+15  ;;  %v2851_v33 = vmul.f32 1.442695, %v2836_v2 }
 0x687   :  { %3741 = vpow2.f32 %v2839_v12  ;;  %v651_v42 = vsel %vm643_vm9, %v642_v6, -inf }
 0x688   :  { %v647_v52 = vrot.slane %v646_v43, 2  ;;  %3743 = vpow2.f32 %v2843_v7  ;;  %v652_v34 = vrot.slane %v651_v42, 4 }
 0x689   :  { %3745 = vpow2.f32 %v2847_v63 }
 0x68a   :  { %v648_v53 = vmax.f32 %v646_v43, %v647_v52  ;;  %v653_v54 = vmax.f32 %v651_v42, %v652_v34  ;;  %3747 = vpow2.f32 %v2851_v33 }
 0x68c   :  { %v3734_v36 = vpop.eup %3733  ;;  %v649_v20 = vrot.slane %v648_v53, 1  ;;  %v654_v26 = vrot.slane %v653_v54, 2 }
 0x68d   :  { %v3736_v60 = vpop.eup %3735 }
 0x68e   :  { %v2853_v24 = vadd.f32 %v3736_v60, %v3734_v36  ;;  %v650_v18 = vmax.f32 %v648_v53, %v649_v20  ;;  %v655_v28 = vmax.f32 %v653_v54, %v654_v26  ;;  %v3738_v44 = vpop.eup %3737 }
 0x68f   :  { %v3740_v3 = vpop.eup %3739 }
 0x690   :  { %v2854_v32 = vadd.f32 %v3738_v44, %v2853_v24  ;;  %v658_v16 = vsub.f32 %v641_v47, %v650_v18  ;;  %v656_v58 = vrot.slane %v655_v28, 1 }
 0x691   :  { %v3742_v38 = vpop.eup %3741 }
 0x692   :  { %v3744_v23 = vpop.eup %3743  ;;  %v2855_v48 = vadd.f32 %v3740_v3, %v2854_v32  ;;  %v660_v0 = vmul.f32 1.442695, %v658_v16  ;;  %v657_v45 = vmax.f32 %v655_v28, %v656_v58 }
 0x693   :  { %v2856_v8 = vadd.f32 %v3744_v23, %v3742_v38  ;;  %v3746_v11 = vpop.eup %3745 }
 0x694   :  { %3749 = vrcp.f32 %v2855_v48  ;;  %v659_v46 = vsub.f32 %v642_v6, %v657_v45  ;;  %v3748_v13 = vpop.eup %3747 }
 0x695   :  { %3751 = vpow2.f32 %v660_v0  ;;  %v2857_v21 = vadd.f32 %v3746_v11, %v2856_v8  ;;  %v1266_v0 = vmax.f32 %v5186_v30, 0.0  ;;  %v3806_v30 = vld [vmem:[%s5373_s0 + $0x8] sm:$0xff] }
 0x696   :  { %v662_v37 = vmul.f32 1.442695, %v659_v46 }
 0x697   :  { %v2858_v10 = vadd.f32 %v3748_v13, %v2857_v21 }
 0x698   :  { %3753 = vpow2.f32 %v662_v37 }
 0x699   :  { %3755 = vrcp.f32 %v2858_v10 }
 0x69e   :  { %v3750_v62 = vpop.eup %3749 }
 0x69f   :  { %v3752_v59 = vpop.eup %3751  ;;  %v2861_v47 = vmul.f32 %v3750_v62, %v3734_v36  ;;  %v2863_v35 = vmul.f32 %v3750_v62, %v3736_v60  ;;  %v2865_v9 = vmul.f32 %v3750_v62, %v3738_v44  ;;  %v2867_v19 = vmul.f32 %v3750_v62, %v3740_v3 }
 0x6a0   :  { %v664_v40 = vsel %vm643_vm9, %v3752_v59, 0.0 }
 0x6a1   :  { %v665_v31 = vrot.slane %v664_v40, 4  ;;  %v2869_v2 = vmul.f32 %v2861_v47, %v2598_v1  ;;  %v2871_v12 = vmul.f32 %v2863_v35, %v2600_v56  ;;  %v2873_v27 = vmul.f32 %v2865_v9, %v2602_v22  ;;  %v5396_v35 = vld [vmem:[#allocation3_spill] sm:$0xff] }
 0x6a2   :  { %v3754_v7 = vpop.eup %3753  ;;  %v2875_v43 = vmul.f32 %v2867_v19, %v2604_v15  ;;  %v5397_v19 = vld [vmem:[#allocation4_spill] sm:$0xff] }
 0x6a3   :  { %v3756_v63 = vpop.eup %3755  ;;  %v666_v6 = vadd.f32 %v665_v31, %v664_v40  ;;  %v671_v42 = vsel %vm643_vm9, %v3754_v7, 0.0  ;;  %v2877_v52 = vsel %vm109_vm0, %v2869_v2, 0.0  ;;  %v2878_v33 = vsel %vm109_vm0, %v2871_v12, 0.0 }
 0x6a4   :  { %v2862_v51 = vmul.f32 %v3756_v63, %v3742_v38  ;;  %v2864_v1 = vmul.f32 %v3756_v63, %v3744_v23  ;;  %v2866_v34 = vmul.f32 %v3756_v63, %v3746_v11  ;;  %v2868_v25 = vmul.f32 %v3756_v63, %v3748_v13 }
 0x6a5   :  { %v667_v56 = vrot.slane %v666_v6, 2  ;;  %v672_v53 = vrot.slane %v671_v42, 4  ;;  %v2879_v54 = vadd.f32 %v2878_v33, %v2877_v52  ;;  %v2880_v5 = vsel %vm109_vm0, %v2873_v27, 0.0 }
 0x6a6   :  { %v2870_v22 = vmul.f32 %v2862_v51, %v2599_v41  ;;  %v2872_v29 = vmul.f32 %v2864_v1, %v2601_v50  ;;  %v2874_v26 = vmul.f32 %v2866_v34, %v2603_v55  ;;  %v2876_v60 = vmul.f32 %v2868_v25, %v2605_v49  ;;  %v77_v50 = vld [vmem:[%s5379_s12 + $0x90] sm:$0xff] }
 0x6a7   :  { %v668_v15 = vadd.f32 %v667_v56, %v666_v6  ;;  %v673_v36 = vadd.f32 %v672_v53, %v671_v42  ;;  %v2881_v20 = vadd.f32 %v2880_v5, %v2879_v54  ;;  %v2882_v24 = vsel %vm109_vm0, %v2875_v43, 0.0 }
 0x6a8   :  { %v2884_v18 = vsel %vm109_vm0, %v2870_v22, 0.0  ;;  %v2885_v28 = vsel %vm109_vm0, %v2872_v29, 0.0  ;;  %v2887_v57 = vsel %vm109_vm0, %v2874_v26, 0.0  ;;  %v2889_v3 = vsel %vm109_vm0, %v2876_v60, 0.0 }
 0x6a9   :  { %v2883_v61 = vadd.f32 %v2882_v24, %v2881_v20  ;;  %v2886_v41 = vadd.f32 %v2885_v28, %v2884_v18  ;;  %v669_v44 = vrot.slane %v668_v15, 1  ;;  %v674_v55 = vrot.slane %v673_v36, 2 }
 0x6aa   :  { %v3599_v58 = vpack.c.bf16 %v78_v14, %v77_v50  ;;  %v1265_v38 = vmax.f32 %v5188_v4, 0.0 }
 0x6ab   :  { %3511 = vmatprep.mubr.msk.f32.mxu0 %vm109_vm0, %v2883_v61  ;;  %v2888_v17 = vadd.f32 %v2887_v57, %v2886_v41  ;;  %v670_v49 = vadd.f32 %v669_v44, %v668_v15  ;;  %v675_v32 = vadd.f32 %v674_v55, %v673_v36 }
 0x6ad   :  { %v2890_v16 = vadd.f32 %v2889_v3, %v2888_v17  ;;  %3757 = vrcp.f32 %v670_v49  ;;  %v676_v23 = vrot.slane %v675_v32, 1 }
 0x6af   :  { %3512 = vmatmul.mubr.msk.f32.vlgmr.msra.gmra.mrb[26].mxu0 %vm109_vm0, %v2890_v16  ;;  %v677_v48 = vadd.f32 %v676_v23, %v675_v32 }
 0x6b0   :  { %3598 = vmatpush3.bf16.msra.mxu0 %v5295_v39  ;;  %3522 = vmatprep.mubr.msk.f32.mxu0 %vm109_vm0, %v1265_v38  ;;  %v3805_v39 = vld [vmem:[%s5373_s0] sm:$0xff] }
 0x6b1   :  { %3600 = vmatprep.subr.bf16.mxu0 %v3599_v58  ;;  %3759 = vrcp.f32 %v677_v48 }
 0x6b4   :  { %3602 = vmatpush3.bf16.msra.mxu0 %v3599_v58 }
 0x6b7   :  { %v3758_v45 = vpop.eup %3757  ;;  %3523 = vmatmul.mubr.msk.f32.vlgmr.msra.gmra.mrb[26].mxu0 %vm109_vm0, %v1266_v0  ;;  %vm3065_vm0 = vcmask 523520  }
 0x6b8   :  { %v680_v8 = vmul.f32 %v3758_v45, %v3752_v59 }
 0x6ba   :  { %684 = vperm.xlu0 %3623, %v680_v8  }
 0x6bb   :  { %v3760_v11 = vpop.eup %3759 }
 0x6bc   :  { %v681_v4 = vmul.f32 %v3760_v11, %v3754_v7 }
 0x6be   :  { %689 = vperm.xlu1 %3624, %v681_v4  }
 0x739   :  { %v685_v46 = vpop.permute.xlu0 %684 }
 0x73a   :  { %v692_v21 = vmul.f32 %v3805_v39, %v685_v46 }
 0x73c   :  { %3059 = vrot.lane.b32.xlu1 %v692_v21, %s3812_s7 }
 0x73d   :  { %v690_v13 = vpop.permute.xlu1 %689 }
 0x73e   :  { %v693_v37 = vmul.f32 %v3806_v30, %v690_v13 }
 0x740   :  { %3061 = vrot.lane.b32.xlu0 %v693_v37, %s3812_s7 }
 0x78a   :  { %v3524_v10 = vpop.f32.mrb[26].mxu0 }
 0x78b   :  { %v3054_v62 = vmax.f32 %v3524_v10, 0.0  ;;  %v3044_v59 = vpop.f32.mrb[27].mxu0 }
 0x78c   :  { %v3053_v47 = vmax.f32 %v3044_v59, 0.0 }
 0x78d   :  { %v3080_v9 = vadd.f32 %v3054_v62, %v5396_v35  ;;  %3072 = vrot.lane.b32.xlu0 %v3054_v62, %s3813_s4 }
 0x78e   :  { %v3079_v40 = vadd.f32 %v3053_v47, %v5397_v19  ;;  %3070 = vrot.lane.b32.xlu1 %v3053_v47, %s3813_s4 }
 0x791   :  { %3085 = vrot.lane.b32.xlu0 %v3080_v9, %s3814_s3 }
 0x792   :  { %3083 = vrot.lane.b32.xlu1 %v3079_v40, %s3814_s3 }
 0x7ae   :  { %v3060_v31 = vpop.permute.xlu1 %3059 }
 0x7af   :  { %3066 = vst.msk [vmem:[%s5384_s14] sm:$0xff] %vm3065_vm0, %v3060_v31 }
 0x7b2   :  { %v3062_v2 = vpop.permute.xlu0 %3061 }
 0x7b3   :  { %3067 = vst.msk [vmem:[%s5384_s14 + $0x8] sm:$0xff] %vm3065_vm0, %v3062_v2 }
 0x7ff   :  { %v3073_v12 = vpop.permute.xlu0 %3072 }
 0x800   :  { %3078 = vst.msk [vmem:[%s5384_s14 + $0x8] sm:$0xff] %vm3076_vm12, %v3073_v12  ;;  %v3071_v7 = vpop.permute.xlu1 %3070 }
 0x801   :  { %3077 = vst.msk [vmem:[%s5384_s14] sm:$0xff] %vm3076_vm12, %v3071_v7 }
 0x803   :  { %v3086_v27 = vpop.permute.xlu0 %3085 }
 0x804   :  { %3091 = vst.msk [vmem:[%s5384_s14 + $0x8] sm:$0xff] %vm3089_vm13, %v3086_v27  ;;  %v3084_v43 = vpop.permute.xlu1 %3083 }
 0x805   :  { %3090 = vst.msk [vmem:[%s5384_s14] sm:$0xff] %vm3089_vm13, %v3084_v43 }

</bundles_post_ra>
